<compile_context>
chip_gen: v7x
topology: tpu7x:2x2x1
jax: 0.10.0
libtpu: 0.0.40
codegen_flags: <defaults>
</compile_context>

<pallas_src>
import math

import jax
import jax.numpy as jnp
import numpy as np
from jax.experimental import pallas as pl
from jax.experimental.pallas import tpu as pltpu

EPS = 1e-5                        # PyTorch BatchNorm1d default eps
VMEM_LIMIT = 32 * 1024 * 1024     # safe explicit scoped-VMEM budget on v5e/v6e/v7x


def _round_up(x, m):
    return (x + m - 1) // m * m


# ---------------------------------------------------------------------------
# Host/XLA-side parameter folding (runs once at trace time; params are constants)
# ---------------------------------------------------------------------------
def _bn_fold(prm):
    scale = prm["gamma"] / jnp.sqrt(prm["rvar"] + EPS)
    bias = prm["beta"] - prm["rmean"] * scale
    return scale, bias


def _fold_input_cols(x_blc, k, s, p):
    """Stride-folded im2col of the raw (B, L, Cin) input -> (B, L_out, ceil(k/s)*s*Cin)."""
    Bt, L, Cin = x_blc.shape
    L_out = (L + 2 * p - k) // s + 1
    noff = -(-k // s)                       # ceil(k / s)
    L_total = (L_out - 1 + noff) * s
    right = L_total - p - L
    if right >= 0:
        x_pad = jnp.pad(x_blc, ((0, 0), (p, right), (0, 0)))
    else:
        x_pad = jnp.pad(x_blc, ((0, 0), (p, 0), (0, 0)))[:, :L_total, :]
    xr = x_pad.reshape(Bt, L_total // s, s * Cin)
    cols = jnp.concatenate([xr[:, o:o + L_out, :] for o in range(noff)], axis=-1)
    return cols, L_out                      # contraction index = tap*Cin + cin


def _fold_conv1_weights(prm, kc, kc_pad, cout_pad):
    """Conv1 weight as a (kc_pad, cout_pad) matmul matrix with BN scale folded in."""
    w = prm["w"]                             # (Cout, Cin, K) PyTorch layout
    Cout, Cin, K = w.shape
    scale, bias = _bn_fold(prm)
    wt = jnp.transpose(w, (2, 1, 0)) * scale[None, None, :]        # (K, Cin, Cout)
    wt = jnp.pad(wt, ((0, kc // Cin - K), (0, 0), (0, 0))).reshape(kc, Cout)
    wt = jnp.pad(wt, ((0, kc_pad - kc), (0, cout_pad - Cout)))
    b = jnp.pad(bias, (0, cout_pad - Cout)).reshape(1, cout_pad)
    return wt.astype(jnp.bfloat16), b.astype(jnp.float32)


def _tap_weights(prm, cin_pad, cout_pad):
    """Per-tap weight stack (K, cin_pad, cout_pad) with BN scale folded in."""
    w = prm["w"]
    Cout, Cin, K = w.shape
    scale, bias = _bn_fold(prm)
    wt = jnp.transpose(w, (2, 1, 0)) * scale[None, None, :]        # (K, Cin, Cout)
    wt = jnp.pad(wt, ((0, 0), (0, cin_pad - Cin), (0, cout_pad - Cout)))
    b = jnp.pad(bias, (0, cout_pad - Cout)).reshape(1, cout_pad)
    return wt.astype(jnp.bfloat16), b.astype(jnp.float32)


# ---------------------------------------------------------------------------
# Fused kernel: conv1 .. conv4 + shortcut residual + NCL flatten + 3 vis Linears
# ---------------------------------------------------------------------------
def _make_fused_kernel(geom):
    # geom[name] = (k, s, p, l_in, l_out)

    def _sels(k, s, p, l_in, l_out):
        # Sel_t[i, j] = 1  iff  j == i*s + t - p   (zero rows implement the conv padding)
        ii = jax.lax.broadcasted_iota(jnp.int32, (l_out, l_in), 0)
        jj = jax.lax.broadcasted_iota(jnp.int32, (l_out, l_in), 1)
        return [jnp.where(jj == ii * s + (t - p), 1.0, 0.0).astype(jnp.bfloat16)
                for t in range(k)]

    def _conv_taps(h_b, w_ref, b_ref, sels, relu=True):
        # sum_t (Sel_t @ h) @ W_t  + bias  [+ ReLU]   -- all in VMEM/registers.
        cout = w_ref.shape[-1]
        l_out = sels[0].shape[0]
        acc = jnp.zeros((l_out, cout), jnp.float32)
        for t, sel in enumerate(sels):
            xt = jnp.dot(sel, h_b, preferred_element_type=jnp.float32)   # exact row select
            xt = xt.astype(jnp.bfloat16)
            acc = acc + jnp.dot(xt, w_ref[t], preferred_element_type=jnp.float32)
        y = acc + b_ref[...]
        return jnp.maximum(y, 0.0) if relu else y

    def kernel(cols1_ref, w1_ref, b1_ref,
               w2_ref, b2_ref, w3_ref, b3_ref, w4_ref, b4_ref,
               ws_ref, bs_ref,
               w0_ref, b0_ref, w1v_ref, b1v_ref, w2v_ref, b2v_ref,
               out_ref):
        sels2 = _sels(*geom["conv2"])
        sels3 = _sels(*geom["conv3"])
        sels4 = _sels(*geom["conv4"])
        selss = _sels(*geom["shortcut"])

        # conv1 (stride-folded im2col precomputed in the wrapper, lane-padded to 128)
        h1 = jnp.dot(cols1_ref[...], w1_ref[...], preferred_element_type=jnp.float32)
        h1 = jnp.maximum(h1 + b1_ref[...], 0.0)                    # (L1, 128) f32
        h1b = h1.astype(jnp.bfloat16)

        sc = _conv_taps(h1b, ws_ref, bs_ref, selss)                # (L4, 256) shortcut branch
        h2 = _conv_taps(h1b, w2_ref, b2_ref, sels2).astype(jnp.bfloat16)   # (L2, 128)
        h3 = _conv_taps(h2, w3_ref, b3_ref, sels3).astype(jnp.bfloat16)    # (L3, 128)
        h4 = _conv_taps(h3, w4_ref, b4_ref, sels4) + sc            # (L4, 256) f32

        # vis_layer_0 with the NCL flatten folded into per-position weight slabs
        y = b0_ref[...]                                            # (1, 256) f32
        for l in range(h4.shape[0]):
            y = y + jnp.dot(h4[l:l + 1, :].astype(jnp.bfloat16), w0_ref[l],
                            preferred_element_type=jnp.float32)
        # vis_layer_1 (hidden zero-padded 32 -> 128) and vis_layer_2
        y = jnp.dot(y.astype(jnp.bfloat16), w1v_ref[...],
                    preferred_element_type=jnp.float32) + b1v_ref[...]
        y = jnp.dot(y.astype(jnp.bfloat16), w2v_ref[...],
                    preferred_element_type=jnp.float32) + b2v_ref[...]
        out_ref[...] = y.astype(out_ref.dtype)                     # (1, 512) lane-dense store

    return kernel


# ---------------------------------------------------------------------------
# Fused forward over a (B_total, 1, L) batch (backbone.forward_freeze + vis MLP)
# ---------------------------------------------------------------------------
def model_freeze_fused(x_ncl, params):
    enc, vis = params["backbone"], params["vis"]
    Bt, cin, L = x_ncl.shape
    assert cin == 1, cin
    x_nlc = jnp.transpose(x_ncl, (0, 2, 1)).astype(jnp.float32)    # NCL -> NLC

    # conv1: tiny raw input -> stride-folded cols in the wrapper, lane-padded to 128
    p1 = enc["conv1"]
    cols1, L1 = _fold_input_cols(x_nlc, p1["k"], p1["s"], p1["p"])
    K1 = cols1.shape[-1]
    K1P = _round_up(K1, 128)
    cols1 = jnp.pad(cols1, ((0, 0), (0, 0), (0, K1P - K1))).astype(jnp.bfloat16)

    C1P = 128
    W1, b1 = _fold_conv1_weights(p1, K1, K1P, C1P)                 # (K1P, 128), (1, 128)
    W2, b2 = _tap_weights(enc["conv2"], C1P, 128)                  # (3, 128, 128)
    W3, b3 = _tap_weights(enc["conv3"], 128, 128)                  # (3, 128, 128)
    W4, b4 = _tap_weights(enc["conv4"], 128, 256)                  # (3, 128, 256)
    WS, bS = _tap_weights(enc["shortcut"], C1P, 256)               # (15, 128, 256)

    def _lout(lin, prm):
        return (lin + 2 * prm["p"] - prm["k"]) // prm["s"] + 1

    L2 = _lout(L1, enc["conv2"])
    L3 = _lout(L2, enc["conv3"])
    L4 = _lout(L3, enc["conv4"])
    assert _lout(L1, enc["shortcut"]) == L4

    # vis weights: fold the NCL flatten (emb[c*L4 + l] = h[l, c]) into w0's row order
    C4 = enc["conv4"]["w"].shape[0]
    w0 = vis["w0"]
    assert w0.shape[0] == C4 * L4, (w0.shape, C4 * L4)
    D0 = w0.shape[1]
    W0 = jnp.transpose(w0.reshape(C4, L4, D0), (1, 0, 2)).astype(jnp.bfloat16)   # (L4, 256, 256)
    b0 = vis["b0"].astype(jnp.float32)
    D1 = vis["w1"].shape[1]
    D1P = _round_up(D1, 128)
    W1v = jnp.pad(vis["w1"], ((0, 0), (0, D1P - D1))).astype(jnp.bfloat16)       # (256, 128)
    b1v = jnp.pad(vis["b1"], ((0, 0), (0, D1P - D1))).astype(jnp.float32)
    W2v = jnp.pad(vis["w2"], ((0, D1P - D1), (0, 0))).astype(jnp.bfloat16)       # (128, 512)
    b2v = vis["b2"].astype(jnp.float32)
    Dout = vis["w2"].shape[1]

    geom = {
        "conv2": (enc["conv2"]["k"], enc["conv2"]["s"], enc["conv2"]["p"], L1, L2),
        "conv3": (enc["conv3"]["k"], enc["conv3"]["s"], enc["conv3"]["p"], L2, L3),
        "conv4": (enc["conv4"]["k"], enc["conv4"]["s"], enc["conv4"]["p"], L3, L4),
        "shortcut": (enc["shortcut"]["k"], enc["shortcut"]["s"], enc["shortcut"]["p"], L1, L4),
    }
    kernel = _make_fused_kernel(geom)

    const2 = lambda i: (0, 0)
    const3 = lambda i: (0, 0, 0)

    out = pl.pallas_call(
        kernel,
        out_shape=jax.ShapeDtypeStruct((Bt, 1, Dout), jnp.float32),
        grid=(Bt,),
        in_specs=[
            pl.BlockSpec((None, L1, K1P), lambda i: (i, 0, 0)),    # per-batch conv1 cols
            pl.BlockSpec(W1.shape, const2), pl.BlockSpec(b1.shape, const2),
            pl.BlockSpec(W2.shape, const3), pl.BlockSpec(b2.shape, const2),
            pl.BlockSpec(W3.shape, const3), pl.BlockSpec(b3.shape, const2),
            pl.BlockSpec(W4.shape, const3), pl.BlockSpec(b4.shape, const2),
            pl.BlockSpec(WS.shape, const3), pl.BlockSpec(bS.shape, const2),
            pl.BlockSpec(W0.shape, const3), pl.BlockSpec(b0.shape, const2),
            pl.BlockSpec(W1v.shape, const2), pl.BlockSpec(b1v.shape, const2),
            pl.BlockSpec(W2v.shape, const2), pl.BlockSpec(b2v.shape, const2),
        ],
        out_specs=pl.BlockSpec((None, 1, Dout), lambda i: (i, 0, 0)),
        compiler_params=pltpu.CompilerParams(
            dimension_semantics=("parallel",),
            vmem_limit_bytes=VMEM_LIMIT),
    )(cols1, W1, b1, W2, b2, W3, b3, W4, b4, WS, bS,
      W0, b0, W1v, b1v, W2v, b2v)

    return out.reshape(Bt, Dout)


# ---------------------------------------------------------------------------
# ModelFreeze forward: both mixes batched into one fused kernel launch
# ---------------------------------------------------------------------------
def model_freeze_forward(mix_0, mix_1, params):
    B = mix_0.shape[0]
    x = jnp.concatenate([mix_0, mix_1], axis=0)                    # (2B, 1, L)
    y = model_freeze_fused(x, params)                              # (2B, 2*num_emed)
    n_spk = params["n_spk"]
    feats_0 = [y[:B, 2 * i:2 * i + 2] for i in range(n_spk)]
    feats_1 = [y[B:, 2 * i:2 * i + 2] for i in range(n_spk)]
    return feats_0, feats_1


# ---------------------------------------------------------------------------
# Deterministic parameter init
# ---------------------------------------------------------------------------
def init_conv_params(key, ch_in, ch_out, k, s, p):
    kw, kg, kb, km, kv = jax.random.split(key, 5)
    fan_in = ch_in * k
    w = jax.random.normal(kw, (ch_out, ch_in, k), jnp.float32) / math.sqrt(fan_in)
    gamma = 1.0 + 0.1 * jax.random.normal(kg, (ch_out,), jnp.float32)
    beta = 0.1 * jax.random.normal(kb, (ch_out,), jnp.float32)
    rmean = 0.1 * jax.random.normal(km, (ch_out,), jnp.float32)
    rvar = jnp.abs(jax.random.normal(kv, (ch_out,), jnp.float32)) + 0.5
    return dict(w=w, gamma=gamma, beta=beta, rmean=rmean, rvar=rvar, k=k, s=s, p=p)


def init_linear_params(key, d_in, d_out):
    kw, kb = jax.random.split(key)
    lim = 1.0 / math.sqrt(d_in)
    w = jax.random.uniform(kw, (d_in, d_out), jnp.float32, -lim, lim)
    b = jax.random.uniform(kb, (1, d_out), jnp.float32, -lim, lim)
    return w, b


# ---------------------------------------------------------------------------
# Pure-JAX f32 reference (same backbone stub)
# ---------------------------------------------------------------------------
def _conv_bn_relu_ref(x_ncl, prm):
    y = jax.lax.conv_general_dilated(
        x_ncl, prm["w"], window_strides=(prm["s"],),
        padding=[(prm["p"], prm["p"])],
        dimension_numbers=("NCH", "OIH", "NCH"))
    scale = prm["gamma"] / jnp.sqrt(prm["rvar"] + EPS)
    bias = prm["beta"] - prm["rmean"] * scale
    y = y * scale[None, :, None] + bias[None, :, None]
    return jnp.maximum(y, 0.0)


def forward_once_ref(x_ncl, params):
    enc = params["backbone"]
    x = _conv_bn_relu_ref(x_ncl, enc["conv1"])
    sc = _conv_bn_relu_ref(x, enc["shortcut"])
    x = _conv_bn_relu_ref(x, enc["conv2"])
    x = _conv_bn_relu_ref(x, enc["conv3"])
    x = _conv_bn_relu_ref(x, enc["conv4"]) + sc
    emb = x.reshape(x.shape[0], -1)
    mlp = params["vis"]
    y = emb @ mlp["w0"] + mlp["b0"]
    y = y @ mlp["w1"] + mlp["b1"]
    y = y @ mlp["w2"] + mlp["b2"]
    return [y[:, 2 * i:2 * i + 2] for i in range(params["n_spk"])]


if __name__ == "__main__":
    key = jax.random.PRNGKey(0)
    kx0, kx1, k1, k2, k3, k4, ks, kl0, kl1, kl2 = jax.random.split(key, 10)

    n_spk, num_emed = 4, 256
    B, L = 2, 64                  # encoder downsamples by 16 -> (B, 256, 4) -> 1024 = n_spk*num_emed
    mix_0 = jax.random.normal(kx0, (B, 1, L), jnp.float32)
    mix_1 = jax.random.normal(kx1, (B, 1, L), jnp.float32)

    w0, b0 = init_linear_params(kl0, n_spk * num_emed, 256)
    w1, b1 = init_linear_params(kl1, 256, 32)
    w2, b2 = init_linear_params(kl2, 32, 2 * num_emed)

    params = {
        "n_spk": n_spk,
        "backbone": {
            "conv1":    init_conv_params(k1,   1,  32,  7, 2, 3),
            "conv2":    init_conv_params(k2,  32,  64,  3, 2, 1),
            "conv3":    init_conv_params(k3,  64, 128,  3, 2, 1),
            "conv4":    init_conv_params(k4, 128, 256,  3, 2, 1),
            "shortcut": init_conv_params(ks,  32, 256, 15, 8, 7),
        },
        "vis": {"w0": w0, "b0": b0, "w1": w1, "b1": b1, "w2": w2, "b2": b2},
    }

    fwd = jax.jit(lambda a, b: model_freeze_forward(a, b, params))
    feats_0, feats_1 = fwd(mix_0, mix_1)
    jax.block_until_ready((feats_0, feats_1))

    ref_0 = forward_once_ref(mix_0, params)
    ref_1 = forward_once_ref(mix_1, params)

    got = np.asarray(jnp.concatenate(feats_0 + feats_1, axis=1))
    ref = np.asarray(jnp.concatenate(ref_0 + ref_1, axis=1))
    assert len(feats_0) == n_spk and feats_0[0].shape == (B, 2), feats_0[0].shape
    assert got.shape == (B, 4 * n_spk), got.shape
    # tolerance covers bf16 operands (f32 accumulation) across the fused conv + vis chain
    np.testing.assert_allclose(got, ref, rtol=3e-2, atol=3e-2)

    print("KERNEL_OK")
</pallas_src>

<mosaic_0001>
module attributes {stable_mosaic.version = 11 : i64} {
  func.func @kernel(%arg0: i32, %arg1: memref<1x32x128xbf16, #tpu.memory_space<vmem>>, %arg2: memref<128x128xbf16, #tpu.memory_space<vmem>>, %arg3: memref<1x128xf32, #tpu.memory_space<vmem>>, %arg4: memref<3x128x128xbf16, #tpu.memory_space<vmem>>, %arg5: memref<1x128xf32, #tpu.memory_space<vmem>>, %arg6: memref<3x128x128xbf16, #tpu.memory_space<vmem>>, %arg7: memref<1x128xf32, #tpu.memory_space<vmem>>, %arg8: memref<3x128x256xbf16, #tpu.memory_space<vmem>>, %arg9: memref<1x256xf32, #tpu.memory_space<vmem>>, %arg10: memref<15x128x256xbf16, #tpu.memory_space<vmem>>, %arg11: memref<1x256xf32, #tpu.memory_space<vmem>>, %arg12: memref<4x256x256xbf16, #tpu.memory_space<vmem>>, %arg13: memref<1x256xf32, #tpu.memory_space<vmem>>, %arg14: memref<256x128xbf16, #tpu.memory_space<vmem>>, %arg15: memref<1x128xf32, #tpu.memory_space<vmem>>, %arg16: memref<128x512xbf16, #tpu.memory_space<vmem>>, %arg17: memref<1x512xf32, #tpu.memory_space<vmem>>, %arg18: memref<1x1x512xf32, #tpu.memory_space<vmem>>) attributes {dimension_semantics = [#tpu.dimension_semantics<parallel>], iteration_bounds = array<i64: 4>, scalar_prefetch = 0 : i64, scratch_operands = 0 : i64, tpu.core_type = #tpu.core_type<tc>, window_params = [{transform_indices = @transform_0, window_bounds = array<i64: 1, 32, 128>}, {pipeline_mode = #tpu.pipeline_mode<synchronous>, transform_indices = @transform_1, window_bounds = array<i64: 128, 128>}, {pipeline_mode = #tpu.pipeline_mode<synchronous>, transform_indices = @transform_2, window_bounds = array<i64: 1, 128>}, {pipeline_mode = #tpu.pipeline_mode<synchronous>, transform_indices = @transform_3, window_bounds = array<i64: 3, 128, 128>}, {pipeline_mode = #tpu.pipeline_mode<synchronous>, transform_indices = @transform_4, window_bounds = array<i64: 1, 128>}, {pipeline_mode = #tpu.pipeline_mode<synchronous>, transform_indices = @transform_5, window_bounds = array<i64: 3, 128, 128>}, {pipeline_mode = #tpu.pipeline_mode<synchronous>, transform_indices = @transform_6, window_bounds = array<i64: 1, 128>}, {pipeline_mode = #tpu.pipeline_mode<synchronous>, transform_indices = @transform_7, window_bounds = array<i64: 3, 128, 256>}, {pipeline_mode = #tpu.pipeline_mode<synchronous>, transform_indices = @transform_8, window_bounds = array<i64: 1, 256>}, {pipeline_mode = #tpu.pipeline_mode<synchronous>, transform_indices = @transform_9, window_bounds = array<i64: 15, 128, 256>}, {pipeline_mode = #tpu.pipeline_mode<synchronous>, transform_indices = @transform_10, window_bounds = array<i64: 1, 256>}, {pipeline_mode = #tpu.pipeline_mode<synchronous>, transform_indices = @transform_11, window_bounds = array<i64: 4, 256, 256>}, {pipeline_mode = #tpu.pipeline_mode<synchronous>, transform_indices = @transform_12, window_bounds = array<i64: 1, 256>}, {pipeline_mode = #tpu.pipeline_mode<synchronous>, transform_indices = @transform_13, window_bounds = array<i64: 256, 128>}, {pipeline_mode = #tpu.pipeline_mode<synchronous>, transform_indices = @transform_14, window_bounds = array<i64: 1, 128>}, {pipeline_mode = #tpu.pipeline_mode<synchronous>, transform_indices = @transform_15, window_bounds = array<i64: 128, 512>}, {pipeline_mode = #tpu.pipeline_mode<synchronous>, transform_indices = @transform_16, window_bounds = array<i64: 1, 512>}, {transform_indices = @transform_17, window_bounds = array<i64: 1, 1, 512>}]} {
    %0 = tpu.iota {dimensions = array<i32: 0>} : vector<16x32xi32>
    %1 = tpu.iota {dimensions = array<i32: 1>} : vector<16x32xi32>
    %c2_i32 = arith.constant 2 : i32
    %2 = vector.broadcast %c2_i32 : i32 to vector<16x32xi32>
    %3 = arith.muli %0, %2 : vector<16x32xi32>
    %c-1_i32 = arith.constant -1 : i32
    %4 = vector.broadcast %c-1_i32 : i32 to vector<16x32xi32>
    %5 = arith.addi %3, %4 : vector<16x32xi32>
    %6 = arith.cmpi eq, %1, %5 : vector<16x32xi32>
    %cst = arith.constant 1.000000e+00 : f32
    %cst_0 = arith.constant 0.000000e+00 : f32
    %7 = vector.broadcast %cst : f32 to vector<16x32xf32>
    %8 = vector.broadcast %cst_0 : f32 to vector<16x32xf32>
    %9 = arith.select %6, %7, %8 : vector<16x32xi1>, vector<16x32xf32>
    %10 = arith.truncf %9 : vector<16x32xf32> to vector<16x32xbf16>
    %c2_i32_1 = arith.constant 2 : i32
    %11 = vector.broadcast %c2_i32_1 : i32 to vector<16x32xi32>
    %12 = arith.muli %0, %11 : vector<16x32xi32>
    %c0_i32 = arith.constant 0 : i32
    %13 = vector.broadcast %c0_i32 : i32 to vector<16x32xi32>
    %14 = arith.addi %12, %13 : vector<16x32xi32>
    %15 = arith.cmpi eq, %1, %14 : vector<16x32xi32>
    %cst_2 = arith.constant 1.000000e+00 : f32
    %cst_3 = arith.constant 0.000000e+00 : f32
    %16 = vector.broadcast %cst_2 : f32 to vector<16x32xf32>
    %17 = vector.broadcast %cst_3 : f32 to vector<16x32xf32>
    %18 = arith.select %15, %16, %17 : vector<16x32xi1>, vector<16x32xf32>
    %19 = arith.truncf %18 : vector<16x32xf32> to vector<16x32xbf16>
    %c2_i32_4 = arith.constant 2 : i32
    %20 = vector.broadcast %c2_i32_4 : i32 to vector<16x32xi32>
    %21 = arith.muli %0, %20 : vector<16x32xi32>
    %c1_i32 = arith.constant 1 : i32
    %22 = vector.broadcast %c1_i32 : i32 to vector<16x32xi32>
    %23 = arith.addi %21, %22 : vector<16x32xi32>
    %24 = arith.cmpi eq, %1, %23 : vector<16x32xi32>
    %cst_5 = arith.constant 1.000000e+00 : f32
    %cst_6 = arith.constant 0.000000e+00 : f32
    %25 = vector.broadcast %cst_5 : f32 to vector<16x32xf32>
    %26 = vector.broadcast %cst_6 : f32 to vector<16x32xf32>
    %27 = arith.select %24, %25, %26 : vector<16x32xi1>, vector<16x32xf32>
    %28 = arith.truncf %27 : vector<16x32xf32> to vector<16x32xbf16>
    %29 = tpu.iota {dimensions = array<i32: 0>} : vector<8x16xi32>
    %30 = tpu.iota {dimensions = array<i32: 1>} : vector<8x16xi32>
    %c2_i32_7 = arith.constant 2 : i32
    %31 = vector.broadcast %c2_i32_7 : i32 to vector<8x16xi32>
    %32 = arith.muli %29, %31 : vector<8x16xi32>
    %c-1_i32_8 = arith.constant -1 : i32
    %33 = vector.broadcast %c-1_i32_8 : i32 to vector<8x16xi32>
    %34 = arith.addi %32, %33 : vector<8x16xi32>
    %35 = arith.cmpi eq, %30, %34 : vector<8x16xi32>
    %cst_9 = arith.constant 1.000000e+00 : f32
    %cst_10 = arith.constant 0.000000e+00 : f32
    %36 = vector.broadcast %cst_9 : f32 to vector<8x16xf32>
    %37 = vector.broadcast %cst_10 : f32 to vector<8x16xf32>
    %38 = arith.select %35, %36, %37 : vector<8x16xi1>, vector<8x16xf32>
    %39 = arith.truncf %38 : vector<8x16xf32> to vector<8x16xbf16>
    %c2_i32_11 = arith.constant 2 : i32
    %40 = vector.broadcast %c2_i32_11 : i32 to vector<8x16xi32>
    %41 = arith.muli %29, %40 : vector<8x16xi32>
    %c0_i32_12 = arith.constant 0 : i32
    %42 = vector.broadcast %c0_i32_12 : i32 to vector<8x16xi32>
    %43 = arith.addi %41, %42 : vector<8x16xi32>
    %44 = arith.cmpi eq, %30, %43 : vector<8x16xi32>
    %cst_13 = arith.constant 1.000000e+00 : f32
    %cst_14 = arith.constant 0.000000e+00 : f32
    %45 = vector.broadcast %cst_13 : f32 to vector<8x16xf32>
    %46 = vector.broadcast %cst_14 : f32 to vector<8x16xf32>
    %47 = arith.select %44, %45, %46 : vector<8x16xi1>, vector<8x16xf32>
    %48 = arith.truncf %47 : vector<8x16xf32> to vector<8x16xbf16>
    %c2_i32_15 = arith.constant 2 : i32
    %49 = vector.broadcast %c2_i32_15 : i32 to vector<8x16xi32>
    %50 = arith.muli %29, %49 : vector<8x16xi32>
    %c1_i32_16 = arith.constant 1 : i32
    %51 = vector.broadcast %c1_i32_16 : i32 to vector<8x16xi32>
    %52 = arith.addi %50, %51 : vector<8x16xi32>
    %53 = arith.cmpi eq, %30, %52 : vector<8x16xi32>
    %cst_17 = arith.constant 1.000000e+00 : f32
    %cst_18 = arith.constant 0.000000e+00 : f32
    %54 = vector.broadcast %cst_17 : f32 to vector<8x16xf32>
    %55 = vector.broadcast %cst_18 : f32 to vector<8x16xf32>
    %56 = arith.select %53, %54, %55 : vector<8x16xi1>, vector<8x16xf32>
    %57 = arith.truncf %56 : vector<8x16xf32> to vector<8x16xbf16>
    %58 = tpu.iota {dimensions = array<i32: 0>} : vector<4x8xi32>
    %59 = tpu.iota {dimensions = array<i32: 1>} : vector<4x8xi32>
    %c2_i32_19 = arith.constant 2 : i32
    %60 = vector.broadcast %c2_i32_19 : i32 to vector<4x8xi32>
    %61 = arith.muli %58, %60 : vector<4x8xi32>
    %c-1_i32_20 = arith.constant -1 : i32
    %62 = vector.broadcast %c-1_i32_20 : i32 to vector<4x8xi32>
    %63 = arith.addi %61, %62 : vector<4x8xi32>
    %64 = arith.cmpi eq, %59, %63 : vector<4x8xi32>
    %cst_21 = arith.constant 1.000000e+00 : f32
    %cst_22 = arith.constant 0.000000e+00 : f32
    %65 = vector.broadcast %cst_21 : f32 to vector<4x8xf32>
    %66 = vector.broadcast %cst_22 : f32 to vector<4x8xf32>
    %67 = arith.select %64, %65, %66 : vector<4x8xi1>, vector<4x8xf32>
    %68 = arith.truncf %67 : vector<4x8xf32> to vector<4x8xbf16>
    %c2_i32_23 = arith.constant 2 : i32
    %69 = vector.broadcast %c2_i32_23 : i32 to vector<4x8xi32>
    %70 = arith.muli %58, %69 : vector<4x8xi32>
    %c0_i32_24 = arith.constant 0 : i32
    %71 = vector.broadcast %c0_i32_24 : i32 to vector<4x8xi32>
    %72 = arith.addi %70, %71 : vector<4x8xi32>
    %73 = arith.cmpi eq, %59, %72 : vector<4x8xi32>
    %cst_25 = arith.constant 1.000000e+00 : f32
    %cst_26 = arith.constant 0.000000e+00 : f32
    %74 = vector.broadcast %cst_25 : f32 to vector<4x8xf32>
    %75 = vector.broadcast %cst_26 : f32 to vector<4x8xf32>
    %76 = arith.select %73, %74, %75 : vector<4x8xi1>, vector<4x8xf32>
    %77 = arith.truncf %76 : vector<4x8xf32> to vector<4x8xbf16>
    %c2_i32_27 = arith.constant 2 : i32
    %78 = vector.broadcast %c2_i32_27 : i32 to vector<4x8xi32>
    %79 = arith.muli %58, %78 : vector<4x8xi32>
    %c1_i32_28 = arith.constant 1 : i32
    %80 = vector.broadcast %c1_i32_28 : i32 to vector<4x8xi32>
    %81 = arith.addi %79, %80 : vector<4x8xi32>
    %82 = arith.cmpi eq, %59, %81 : vector<4x8xi32>
    %cst_29 = arith.constant 1.000000e+00 : f32
    %cst_30 = arith.constant 0.000000e+00 : f32
    %83 = vector.broadcast %cst_29 : f32 to vector<4x8xf32>
    %84 = vector.broadcast %cst_30 : f32 to vector<4x8xf32>
    %85 = arith.select %82, %83, %84 : vector<4x8xi1>, vector<4x8xf32>
    %86 = arith.truncf %85 : vector<4x8xf32> to vector<4x8xbf16>
    %87 = tpu.iota {dimensions = array<i32: 0>} : vector<4x32xi32>
    %88 = tpu.iota {dimensions = array<i32: 1>} : vector<4x32xi32>
    %c8_i32 = arith.constant 8 : i32
    %89 = vector.broadcast %c8_i32 : i32 to vector<4x32xi32>
    %90 = arith.muli %87, %89 : vector<4x32xi32>
    %c-7_i32 = arith.constant -7 : i32
    %91 = vector.broadcast %c-7_i32 : i32 to vector<4x32xi32>
    %92 = arith.addi %90, %91 : vector<4x32xi32>
    %93 = arith.cmpi eq, %88, %92 : vector<4x32xi32>
    %cst_31 = arith.constant 1.000000e+00 : f32
    %cst_32 = arith.constant 0.000000e+00 : f32
    %94 = vector.broadcast %cst_31 : f32 to vector<4x32xf32>
    %95 = vector.broadcast %cst_32 : f32 to vector<4x32xf32>
    %96 = arith.select %93, %94, %95 : vector<4x32xi1>, vector<4x32xf32>
    %97 = arith.truncf %96 : vector<4x32xf32> to vector<4x32xbf16>
    %c8_i32_33 = arith.constant 8 : i32
    %98 = vector.broadcast %c8_i32_33 : i32 to vector<4x32xi32>
    %99 = arith.muli %87, %98 : vector<4x32xi32>
    %c-6_i32 = arith.constant -6 : i32
    %100 = vector.broadcast %c-6_i32 : i32 to vector<4x32xi32>
    %101 = arith.addi %99, %100 : vector<4x32xi32>
    %102 = arith.cmpi eq, %88, %101 : vector<4x32xi32>
    %cst_34 = arith.constant 1.000000e+00 : f32
    %cst_35 = arith.constant 0.000000e+00 : f32
    %103 = vector.broadcast %cst_34 : f32 to vector<4x32xf32>
    %104 = vector.broadcast %cst_35 : f32 to vector<4x32xf32>
    %105 = arith.select %102, %103, %104 : vector<4x32xi1>, vector<4x32xf32>
    %106 = arith.truncf %105 : vector<4x32xf32> to vector<4x32xbf16>
    %c8_i32_36 = arith.constant 8 : i32
    %107 = vector.broadcast %c8_i32_36 : i32 to vector<4x32xi32>
    %108 = arith.muli %87, %107 : vector<4x32xi32>
    %c-5_i32 = arith.constant -5 : i32
    %109 = vector.broadcast %c-5_i32 : i32 to vector<4x32xi32>
    %110 = arith.addi %108, %109 : vector<4x32xi32>
    %111 = arith.cmpi eq, %88, %110 : vector<4x32xi32>
    %cst_37 = arith.constant 1.000000e+00 : f32
    %cst_38 = arith.constant 0.000000e+00 : f32
    %112 = vector.broadcast %cst_37 : f32 to vector<4x32xf32>
    %113 = vector.broadcast %cst_38 : f32 to vector<4x32xf32>
    %114 = arith.select %111, %112, %113 : vector<4x32xi1>, vector<4x32xf32>
    %115 = arith.truncf %114 : vector<4x32xf32> to vector<4x32xbf16>
    %c8_i32_39 = arith.constant 8 : i32
    %116 = vector.broadcast %c8_i32_39 : i32 to vector<4x32xi32>
    %117 = arith.muli %87, %116 : vector<4x32xi32>
    %c-4_i32 = arith.constant -4 : i32
    %118 = vector.broadcast %c-4_i32 : i32 to vector<4x32xi32>
    %119 = arith.addi %117, %118 : vector<4x32xi32>
    %120 = arith.cmpi eq, %88, %119 : vector<4x32xi32>
    %cst_40 = arith.constant 1.000000e+00 : f32
    %cst_41 = arith.constant 0.000000e+00 : f32
    %121 = vector.broadcast %cst_40 : f32 to vector<4x32xf32>
    %122 = vector.broadcast %cst_41 : f32 to vector<4x32xf32>
    %123 = arith.select %120, %121, %122 : vector<4x32xi1>, vector<4x32xf32>
    %124 = arith.truncf %123 : vector<4x32xf32> to vector<4x32xbf16>
    %c8_i32_42 = arith.constant 8 : i32
    %125 = vector.broadcast %c8_i32_42 : i32 to vector<4x32xi32>
    %126 = arith.muli %87, %125 : vector<4x32xi32>
    %c-3_i32 = arith.constant -3 : i32
    %127 = vector.broadcast %c-3_i32 : i32 to vector<4x32xi32>
    %128 = arith.addi %126, %127 : vector<4x32xi32>
    %129 = arith.cmpi eq, %88, %128 : vector<4x32xi32>
    %cst_43 = arith.constant 1.000000e+00 : f32
    %cst_44 = arith.constant 0.000000e+00 : f32
    %130 = vector.broadcast %cst_43 : f32 to vector<4x32xf32>
    %131 = vector.broadcast %cst_44 : f32 to vector<4x32xf32>
    %132 = arith.select %129, %130, %131 : vector<4x32xi1>, vector<4x32xf32>
    %133 = arith.truncf %132 : vector<4x32xf32> to vector<4x32xbf16>
    %c8_i32_45 = arith.constant 8 : i32
    %134 = vector.broadcast %c8_i32_45 : i32 to vector<4x32xi32>
    %135 = arith.muli %87, %134 : vector<4x32xi32>
    %c-2_i32 = arith.constant -2 : i32
    %136 = vector.broadcast %c-2_i32 : i32 to vector<4x32xi32>
    %137 = arith.addi %135, %136 : vector<4x32xi32>
    %138 = arith.cmpi eq, %88, %137 : vector<4x32xi32>
    %cst_46 = arith.constant 1.000000e+00 : f32
    %cst_47 = arith.constant 0.000000e+00 : f32
    %139 = vector.broadcast %cst_46 : f32 to vector<4x32xf32>
    %140 = vector.broadcast %cst_47 : f32 to vector<4x32xf32>
    %141 = arith.select %138, %139, %140 : vector<4x32xi1>, vector<4x32xf32>
    %142 = arith.truncf %141 : vector<4x32xf32> to vector<4x32xbf16>
    %c8_i32_48 = arith.constant 8 : i32
    %143 = vector.broadcast %c8_i32_48 : i32 to vector<4x32xi32>
    %144 = arith.muli %87, %143 : vector<4x32xi32>
    %c-1_i32_49 = arith.constant -1 : i32
    %145 = vector.broadcast %c-1_i32_49 : i32 to vector<4x32xi32>
    %146 = arith.addi %144, %145 : vector<4x32xi32>
    %147 = arith.cmpi eq, %88, %146 : vector<4x32xi32>
    %cst_50 = arith.constant 1.000000e+00 : f32
    %cst_51 = arith.constant 0.000000e+00 : f32
    %148 = vector.broadcast %cst_50 : f32 to vector<4x32xf32>
    %149 = vector.broadcast %cst_51 : f32 to vector<4x32xf32>
    %150 = arith.select %147, %148, %149 : vector<4x32xi1>, vector<4x32xf32>
    %151 = arith.truncf %150 : vector<4x32xf32> to vector<4x32xbf16>
    %c8_i32_52 = arith.constant 8 : i32
    %152 = vector.broadcast %c8_i32_52 : i32 to vector<4x32xi32>
    %153 = arith.muli %87, %152 : vector<4x32xi32>
    %c0_i32_53 = arith.constant 0 : i32
    %154 = vector.broadcast %c0_i32_53 : i32 to vector<4x32xi32>
    %155 = arith.addi %153, %154 : vector<4x32xi32>
    %156 = arith.cmpi eq, %88, %155 : vector<4x32xi32>
    %cst_54 = arith.constant 1.000000e+00 : f32
    %cst_55 = arith.constant 0.000000e+00 : f32
    %157 = vector.broadcast %cst_54 : f32 to vector<4x32xf32>
    %158 = vector.broadcast %cst_55 : f32 to vector<4x32xf32>
    %159 = arith.select %156, %157, %158 : vector<4x32xi1>, vector<4x32xf32>
    %160 = arith.truncf %159 : vector<4x32xf32> to vector<4x32xbf16>
    %c8_i32_56 = arith.constant 8 : i32
    %161 = vector.broadcast %c8_i32_56 : i32 to vector<4x32xi32>
    %162 = arith.muli %87, %161 : vector<4x32xi32>
    %c1_i32_57 = arith.constant 1 : i32
    %163 = vector.broadcast %c1_i32_57 : i32 to vector<4x32xi32>
    %164 = arith.addi %162, %163 : vector<4x32xi32>
    %165 = arith.cmpi eq, %88, %164 : vector<4x32xi32>
    %cst_58 = arith.constant 1.000000e+00 : f32
    %cst_59 = arith.constant 0.000000e+00 : f32
    %166 = vector.broadcast %cst_58 : f32 to vector<4x32xf32>
    %167 = vector.broadcast %cst_59 : f32 to vector<4x32xf32>
    %168 = arith.select %165, %166, %167 : vector<4x32xi1>, vector<4x32xf32>
    %169 = arith.truncf %168 : vector<4x32xf32> to vector<4x32xbf16>
    %c8_i32_60 = arith.constant 8 : i32
    %170 = vector.broadcast %c8_i32_60 : i32 to vector<4x32xi32>
    %171 = arith.muli %87, %170 : vector<4x32xi32>
    %c2_i32_61 = arith.constant 2 : i32
    %172 = vector.broadcast %c2_i32_61 : i32 to vector<4x32xi32>
    %173 = arith.addi %171, %172 : vector<4x32xi32>
    %174 = arith.cmpi eq, %88, %173 : vector<4x32xi32>
    %cst_62 = arith.constant 1.000000e+00 : f32
    %cst_63 = arith.constant 0.000000e+00 : f32
    %175 = vector.broadcast %cst_62 : f32 to vector<4x32xf32>
    %176 = vector.broadcast %cst_63 : f32 to vector<4x32xf32>
    %177 = arith.select %174, %175, %176 : vector<4x32xi1>, vector<4x32xf32>
    %178 = arith.truncf %177 : vector<4x32xf32> to vector<4x32xbf16>
    %c8_i32_64 = arith.constant 8 : i32
    %179 = vector.broadcast %c8_i32_64 : i32 to vector<4x32xi32>
    %180 = arith.muli %87, %179 : vector<4x32xi32>
    %c3_i32 = arith.constant 3 : i32
    %181 = vector.broadcast %c3_i32 : i32 to vector<4x32xi32>
    %182 = arith.addi %180, %181 : vector<4x32xi32>
    %183 = arith.cmpi eq, %88, %182 : vector<4x32xi32>
    %cst_65 = arith.constant 1.000000e+00 : f32
    %cst_66 = arith.constant 0.000000e+00 : f32
    %184 = vector.broadcast %cst_65 : f32 to vector<4x32xf32>
    %185 = vector.broadcast %cst_66 : f32 to vector<4x32xf32>
    %186 = arith.select %183, %184, %185 : vector<4x32xi1>, vector<4x32xf32>
    %187 = arith.truncf %186 : vector<4x32xf32> to vector<4x32xbf16>
    %c8_i32_67 = arith.constant 8 : i32
    %188 = vector.broadcast %c8_i32_67 : i32 to vector<4x32xi32>
    %189 = arith.muli %87, %188 : vector<4x32xi32>
    %c4_i32 = arith.constant 4 : i32
    %190 = vector.broadcast %c4_i32 : i32 to vector<4x32xi32>
    %191 = arith.addi %189, %190 : vector<4x32xi32>
    %192 = arith.cmpi eq, %88, %191 : vector<4x32xi32>
    %cst_68 = arith.constant 1.000000e+00 : f32
    %cst_69 = arith.constant 0.000000e+00 : f32
    %193 = vector.broadcast %cst_68 : f32 to vector<4x32xf32>
    %194 = vector.broadcast %cst_69 : f32 to vector<4x32xf32>
    %195 = arith.select %192, %193, %194 : vector<4x32xi1>, vector<4x32xf32>
    %196 = arith.truncf %195 : vector<4x32xf32> to vector<4x32xbf16>
    %c8_i32_70 = arith.constant 8 : i32
    %197 = vector.broadcast %c8_i32_70 : i32 to vector<4x32xi32>
    %198 = arith.muli %87, %197 : vector<4x32xi32>
    %c5_i32 = arith.constant 5 : i32
    %199 = vector.broadcast %c5_i32 : i32 to vector<4x32xi32>
    %200 = arith.addi %198, %199 : vector<4x32xi32>
    %201 = arith.cmpi eq, %88, %200 : vector<4x32xi32>
    %cst_71 = arith.constant 1.000000e+00 : f32
    %cst_72 = arith.constant 0.000000e+00 : f32
    %202 = vector.broadcast %cst_71 : f32 to vector<4x32xf32>
    %203 = vector.broadcast %cst_72 : f32 to vector<4x32xf32>
    %204 = arith.select %201, %202, %203 : vector<4x32xi1>, vector<4x32xf32>
    %205 = arith.truncf %204 : vector<4x32xf32> to vector<4x32xbf16>
    %c8_i32_73 = arith.constant 8 : i32
    %206 = vector.broadcast %c8_i32_73 : i32 to vector<4x32xi32>
    %207 = arith.muli %87, %206 : vector<4x32xi32>
    %c6_i32 = arith.constant 6 : i32
    %208 = vector.broadcast %c6_i32 : i32 to vector<4x32xi32>
    %209 = arith.addi %207, %208 : vector<4x32xi32>
    %210 = arith.cmpi eq, %88, %209 : vector<4x32xi32>
    %cst_74 = arith.constant 1.000000e+00 : f32
    %cst_75 = arith.constant 0.000000e+00 : f32
    %211 = vector.broadcast %cst_74 : f32 to vector<4x32xf32>
    %212 = vector.broadcast %cst_75 : f32 to vector<4x32xf32>
    %213 = arith.select %210, %211, %212 : vector<4x32xi1>, vector<4x32xf32>
    %214 = arith.truncf %213 : vector<4x32xf32> to vector<4x32xbf16>
    %c8_i32_76 = arith.constant 8 : i32
    %215 = vector.broadcast %c8_i32_76 : i32 to vector<4x32xi32>
    %216 = arith.muli %87, %215 : vector<4x32xi32>
    %c7_i32 = arith.constant 7 : i32
    %217 = vector.broadcast %c7_i32 : i32 to vector<4x32xi32>
    %218 = arith.addi %216, %217 : vector<4x32xi32>
    %219 = arith.cmpi eq, %88, %218 : vector<4x32xi32>
    %cst_77 = arith.constant 1.000000e+00 : f32
    %cst_78 = arith.constant 0.000000e+00 : f32
    %220 = vector.broadcast %cst_77 : f32 to vector<4x32xf32>
    %221 = vector.broadcast %cst_78 : f32 to vector<4x32xf32>
    %222 = arith.select %219, %220, %221 : vector<4x32xi1>, vector<4x32xf32>
    %223 = arith.truncf %222 : vector<4x32xf32> to vector<4x32xbf16>
    %c0 = arith.constant 0 : index
    %c0_79 = arith.constant 0 : index
    %c0_80 = arith.constant 0 : index
    %224 = vector.load %arg1[%c0, %c0_79, %c0_80] : memref<1x32x128xbf16, #tpu.memory_space<vmem>>, vector<1x32x128xbf16>
    %225 = vector.shape_cast %224 : vector<1x32x128xbf16> to vector<32x128xbf16>
    %c0_81 = arith.constant 0 : index
    %c0_82 = arith.constant 0 : index
    %226 = vector.load %arg2[%c0_81, %c0_82] : memref<128x128xbf16, #tpu.memory_space<vmem>>, vector<128x128xbf16>
    %cst_83 = arith.constant dense<0.000000e+00> : vector<32x128xf32>
    %227 = tpu.matmul %225, %226, %cst_83 {dimension_numbers = #tpu.dot_dimension_numbers<[1], [0], [0], [1], [0, 0, 1, 1], [], []>} : vector<32x128xbf16>, vector<128x128xbf16>, vector<32x128xf32> -> vector<32x128xf32>
    %c0_84 = arith.constant 0 : index
    %c0_85 = arith.constant 0 : index
    %228 = vector.load %arg3[%c0_84, %c0_85] : memref<1x128xf32, #tpu.memory_space<vmem>>, vector<1x128xf32>
    %229 = vector.broadcast %228 : vector<1x128xf32> to vector<32x128xf32>
    %230 = arith.addf %227, %229 : vector<32x128xf32>
    %cst_86 = arith.constant 0.000000e+00 : f32
    %231 = vector.broadcast %cst_86 : f32 to vector<32x128xf32>
    %232 = arith.maximumf %230, %231 : vector<32x128xf32>
    %233 = arith.truncf %232 : vector<32x128xf32> to vector<32x128xbf16>
    %cst_87 = arith.constant 0.000000e+00 : f32
    %234 = vector.broadcast %cst_87 : f32 to vector<4x256xf32>
    %cst_88 = arith.constant dense<0.000000e+00> : vector<4x128xf32>
    %235 = tpu.matmul %97, %233, %cst_88 {dimension_numbers = #tpu.dot_dimension_numbers<[1], [0], [0], [1], [0, 0, 1, 1], [], []>} : vector<4x32xbf16>, vector<32x128xbf16>, vector<4x128xf32> -> vector<4x128xf32>
    %236 = arith.truncf %235 : vector<4x128xf32> to vector<4x128xbf16>
    %c0_89 = arith.constant 0 : index
    %c0_90 = arith.constant 0 : index
    %c0_91 = arith.constant 0 : index
    %237 = vector.load %arg10[%c0_89, %c0_90, %c0_91] : memref<15x128x256xbf16, #tpu.memory_space<vmem>>, vector<1x128x256xbf16>
    %238 = vector.shape_cast %237 : vector<1x128x256xbf16> to vector<128x256xbf16>
    %cst_92 = arith.constant dense<0.000000e+00> : vector<4x256xf32>
    %239 = tpu.matmul %236, %238, %cst_92 {dimension_numbers = #tpu.dot_dimension_numbers<[1], [0], [0], [1], [0, 0, 1, 1], [], []>} : vector<4x128xbf16>, vector<128x256xbf16>, vector<4x256xf32> -> vector<4x256xf32>
    %240 = arith.addf %234, %239 : vector<4x256xf32>
    %cst_93 = arith.constant dense<0.000000e+00> : vector<4x128xf32>
    %241 = tpu.matmul %106, %233, %cst_93 {dimension_numbers = #tpu.dot_dimension_numbers<[1], [0], [0], [1], [0, 0, 1, 1], [], []>} : vector<4x32xbf16>, vector<32x128xbf16>, vector<4x128xf32> -> vector<4x128xf32>
    %242 = arith.truncf %241 : vector<4x128xf32> to vector<4x128xbf16>
    %c1 = arith.constant 1 : index
    %c0_94 = arith.constant 0 : index
    %c0_95 = arith.constant 0 : index
    %243 = vector.load %arg10[%c1, %c0_94, %c0_95] : memref<15x128x256xbf16, #tpu.memory_space<vmem>>, vector<1x128x256xbf16>
    %244 = vector.shape_cast %243 : vector<1x128x256xbf16> to vector<128x256xbf16>
    %cst_96 = arith.constant dense<0.000000e+00> : vector<4x256xf32>
    %245 = tpu.matmul %242, %244, %cst_96 {dimension_numbers = #tpu.dot_dimension_numbers<[1], [0], [0], [1], [0, 0, 1, 1], [], []>} : vector<4x128xbf16>, vector<128x256xbf16>, vector<4x256xf32> -> vector<4x256xf32>
    %246 = arith.addf %240, %245 : vector<4x256xf32>
    %cst_97 = arith.constant dense<0.000000e+00> : vector<4x128xf32>
    %247 = tpu.matmul %115, %233, %cst_97 {dimension_numbers = #tpu.dot_dimension_numbers<[1], [0], [0], [1], [0, 0, 1, 1], [], []>} : vector<4x32xbf16>, vector<32x128xbf16>, vector<4x128xf32> -> vector<4x128xf32>
    %248 = arith.truncf %247 : vector<4x128xf32> to vector<4x128xbf16>
    %c2 = arith.constant 2 : index
    %c0_98 = arith.constant 0 : index
    %c0_99 = arith.constant 0 : index
    %249 = vector.load %arg10[%c2, %c0_98, %c0_99] : memref<15x128x256xbf16, #tpu.memory_space<vmem>>, vector<1x128x256xbf16>
    %250 = vector.shape_cast %249 : vector<1x128x256xbf16> to vector<128x256xbf16>
    %cst_100 = arith.constant dense<0.000000e+00> : vector<4x256xf32>
    %251 = tpu.matmul %248, %250, %cst_100 {dimension_numbers = #tpu.dot_dimension_numbers<[1], [0], [0], [1], [0, 0, 1, 1], [], []>} : vector<4x128xbf16>, vector<128x256xbf16>, vector<4x256xf32> -> vector<4x256xf32>
    %252 = arith.addf %246, %251 : vector<4x256xf32>
    %cst_101 = arith.constant dense<0.000000e+00> : vector<4x128xf32>
    %253 = tpu.matmul %124, %233, %cst_101 {dimension_numbers = #tpu.dot_dimension_numbers<[1], [0], [0], [1], [0, 0, 1, 1], [], []>} : vector<4x32xbf16>, vector<32x128xbf16>, vector<4x128xf32> -> vector<4x128xf32>
    %254 = arith.truncf %253 : vector<4x128xf32> to vector<4x128xbf16>
    %c3 = arith.constant 3 : index
    %c0_102 = arith.constant 0 : index
    %c0_103 = arith.constant 0 : index
    %255 = vector.load %arg10[%c3, %c0_102, %c0_103] : memref<15x128x256xbf16, #tpu.memory_space<vmem>>, vector<1x128x256xbf16>
    %256 = vector.shape_cast %255 : vector<1x128x256xbf16> to vector<128x256xbf16>
    %cst_104 = arith.constant dense<0.000000e+00> : vector<4x256xf32>
    %257 = tpu.matmul %254, %256, %cst_104 {dimension_numbers = #tpu.dot_dimension_numbers<[1], [0], [0], [1], [0, 0, 1, 1], [], []>} : vector<4x128xbf16>, vector<128x256xbf16>, vector<4x256xf32> -> vector<4x256xf32>
    %258 = arith.addf %252, %257 : vector<4x256xf32>
    %cst_105 = arith.constant dense<0.000000e+00> : vector<4x128xf32>
    %259 = tpu.matmul %133, %233, %cst_105 {dimension_numbers = #tpu.dot_dimension_numbers<[1], [0], [0], [1], [0, 0, 1, 1], [], []>} : vector<4x32xbf16>, vector<32x128xbf16>, vector<4x128xf32> -> vector<4x128xf32>
    %260 = arith.truncf %259 : vector<4x128xf32> to vector<4x128xbf16>
    %c4 = arith.constant 4 : index
    %c0_106 = arith.constant 0 : index
    %c0_107 = arith.constant 0 : index
    %261 = vector.load %arg10[%c4, %c0_106, %c0_107] : memref<15x128x256xbf16, #tpu.memory_space<vmem>>, vector<1x128x256xbf16>
    %262 = vector.shape_cast %261 : vector<1x128x256xbf16> to vector<128x256xbf16>
    %cst_108 = arith.constant dense<0.000000e+00> : vector<4x256xf32>
    %263 = tpu.matmul %260, %262, %cst_108 {dimension_numbers = #tpu.dot_dimension_numbers<[1], [0], [0], [1], [0, 0, 1, 1], [], []>} : vector<4x128xbf16>, vector<128x256xbf16>, vector<4x256xf32> -> vector<4x256xf32>
    %264 = arith.addf %258, %263 : vector<4x256xf32>
    %cst_109 = arith.constant dense<0.000000e+00> : vector<4x128xf32>
    %265 = tpu.matmul %142, %233, %cst_109 {dimension_numbers = #tpu.dot_dimension_numbers<[1], [0], [0], [1], [0, 0, 1, 1], [], []>} : vector<4x32xbf16>, vector<32x128xbf16>, vector<4x128xf32> -> vector<4x128xf32>
    %266 = arith.truncf %265 : vector<4x128xf32> to vector<4x128xbf16>
    %c5 = arith.constant 5 : index
    %c0_110 = arith.constant 0 : index
    %c0_111 = arith.constant 0 : index
    %267 = vector.load %arg10[%c5, %c0_110, %c0_111] : memref<15x128x256xbf16, #tpu.memory_space<vmem>>, vector<1x128x256xbf16>
    %268 = vector.shape_cast %267 : vector<1x128x256xbf16> to vector<128x256xbf16>
    %cst_112 = arith.constant dense<0.000000e+00> : vector<4x256xf32>
    %269 = tpu.matmul %266, %268, %cst_112 {dimension_numbers = #tpu.dot_dimension_numbers<[1], [0], [0], [1], [0, 0, 1, 1], [], []>} : vector<4x128xbf16>, vector<128x256xbf16>, vector<4x256xf32> -> vector<4x256xf32>
    %270 = arith.addf %264, %269 : vector<4x256xf32>
    %cst_113 = arith.constant dense<0.000000e+00> : vector<4x128xf32>
    %271 = tpu.matmul %151, %233, %cst_113 {dimension_numbers = #tpu.dot_dimension_numbers<[1], [0], [0], [1], [0, 0, 1, 1], [], []>} : vector<4x32xbf16>, vector<32x128xbf16>, vector<4x128xf32> -> vector<4x128xf32>
    %272 = arith.truncf %271 : vector<4x128xf32> to vector<4x128xbf16>
    %c6 = arith.constant 6 : index
    %c0_114 = arith.constant 0 : index
    %c0_115 = arith.constant 0 : index
    %273 = vector.load %arg10[%c6, %c0_114, %c0_115] : memref<15x128x256xbf16, #tpu.memory_space<vmem>>, vector<1x128x256xbf16>
    %274 = vector.shape_cast %273 : vector<1x128x256xbf16> to vector<128x256xbf16>
    %cst_116 = arith.constant dense<0.000000e+00> : vector<4x256xf32>
    %275 = tpu.matmul %272, %274, %cst_116 {dimension_numbers = #tpu.dot_dimension_numbers<[1], [0], [0], [1], [0, 0, 1, 1], [], []>} : vector<4x128xbf16>, vector<128x256xbf16>, vector<4x256xf32> -> vector<4x256xf32>
    %276 = arith.addf %270, %275 : vector<4x256xf32>
    %cst_117 = arith.constant dense<0.000000e+00> : vector<4x128xf32>
    %277 = tpu.matmul %160, %233, %cst_117 {dimension_numbers = #tpu.dot_dimension_numbers<[1], [0], [0], [1], [0, 0, 1, 1], [], []>} : vector<4x32xbf16>, vector<32x128xbf16>, vector<4x128xf32> -> vector<4x128xf32>
    %278 = arith.truncf %277 : vector<4x128xf32> to vector<4x128xbf16>
    %c7 = arith.constant 7 : index
    %c0_118 = arith.constant 0 : index
    %c0_119 = arith.constant 0 : index
    %279 = vector.load %arg10[%c7, %c0_118, %c0_119] : memref<15x128x256xbf16, #tpu.memory_space<vmem>>, vector<1x128x256xbf16>
    %280 = vector.shape_cast %279 : vector<1x128x256xbf16> to vector<128x256xbf16>
    %cst_120 = arith.constant dense<0.000000e+00> : vector<4x256xf32>
    %281 = tpu.matmul %278, %280, %cst_120 {dimension_numbers = #tpu.dot_dimension_numbers<[1], [0], [0], [1], [0, 0, 1, 1], [], []>} : vector<4x128xbf16>, vector<128x256xbf16>, vector<4x256xf32> -> vector<4x256xf32>
    %282 = arith.addf %276, %281 : vector<4x256xf32>
    %cst_121 = arith.constant dense<0.000000e+00> : vector<4x128xf32>
    %283 = tpu.matmul %169, %233, %cst_121 {dimension_numbers = #tpu.dot_dimension_numbers<[1], [0], [0], [1], [0, 0, 1, 1], [], []>} : vector<4x32xbf16>, vector<32x128xbf16>, vector<4x128xf32> -> vector<4x128xf32>
    %284 = arith.truncf %283 : vector<4x128xf32> to vector<4x128xbf16>
    %c8 = arith.constant 8 : index
    %c0_122 = arith.constant 0 : index
    %c0_123 = arith.constant 0 : index
    %285 = vector.load %arg10[%c8, %c0_122, %c0_123] : memref<15x128x256xbf16, #tpu.memory_space<vmem>>, vector<1x128x256xbf16>
    %286 = vector.shape_cast %285 : vector<1x128x256xbf16> to vector<128x256xbf16>
    %cst_124 = arith.constant dense<0.000000e+00> : vector<4x256xf32>
    %287 = tpu.matmul %284, %286, %cst_124 {dimension_numbers = #tpu.dot_dimension_numbers<[1], [0], [0], [1], [0, 0, 1, 1], [], []>} : vector<4x128xbf16>, vector<128x256xbf16>, vector<4x256xf32> -> vector<4x256xf32>
    %288 = arith.addf %282, %287 : vector<4x256xf32>
    %cst_125 = arith.constant dense<0.000000e+00> : vector<4x128xf32>
    %289 = tpu.matmul %178, %233, %cst_125 {dimension_numbers = #tpu.dot_dimension_numbers<[1], [0], [0], [1], [0, 0, 1, 1], [], []>} : vector<4x32xbf16>, vector<32x128xbf16>, vector<4x128xf32> -> vector<4x128xf32>
    %290 = arith.truncf %289 : vector<4x128xf32> to vector<4x128xbf16>
    %c9 = arith.constant 9 : index
    %c0_126 = arith.constant 0 : index
    %c0_127 = arith.constant 0 : index
    %291 = vector.load %arg10[%c9, %c0_126, %c0_127] : memref<15x128x256xbf16, #tpu.memory_space<vmem>>, vector<1x128x256xbf16>
    %292 = vector.shape_cast %291 : vector<1x128x256xbf16> to vector<128x256xbf16>
    %cst_128 = arith.constant dense<0.000000e+00> : vector<4x256xf32>
    %293 = tpu.matmul %290, %292, %cst_128 {dimension_numbers = #tpu.dot_dimension_numbers<[1], [0], [0], [1], [0, 0, 1, 1], [], []>} : vector<4x128xbf16>, vector<128x256xbf16>, vector<4x256xf32> -> vector<4x256xf32>
    %294 = arith.addf %288, %293 : vector<4x256xf32>
    %cst_129 = arith.constant dense<0.000000e+00> : vector<4x128xf32>
    %295 = tpu.matmul %187, %233, %cst_129 {dimension_numbers = #tpu.dot_dimension_numbers<[1], [0], [0], [1], [0, 0, 1, 1], [], []>} : vector<4x32xbf16>, vector<32x128xbf16>, vector<4x128xf32> -> vector<4x128xf32>
    %296 = arith.truncf %295 : vector<4x128xf32> to vector<4x128xbf16>
    %c10 = arith.constant 10 : index
    %c0_130 = arith.constant 0 : index
    %c0_131 = arith.constant 0 : index
    %297 = vector.load %arg10[%c10, %c0_130, %c0_131] : memref<15x128x256xbf16, #tpu.memory_space<vmem>>, vector<1x128x256xbf16>
    %298 = vector.shape_cast %297 : vector<1x128x256xbf16> to vector<128x256xbf16>
    %cst_132 = arith.constant dense<0.000000e+00> : vector<4x256xf32>
    %299 = tpu.matmul %296, %298, %cst_132 {dimension_numbers = #tpu.dot_dimension_numbers<[1], [0], [0], [1], [0, 0, 1, 1], [], []>} : vector<4x128xbf16>, vector<128x256xbf16>, vector<4x256xf32> -> vector<4x256xf32>
    %300 = arith.addf %294, %299 : vector<4x256xf32>
    %cst_133 = arith.constant dense<0.000000e+00> : vector<4x128xf32>
    %301 = tpu.matmul %196, %233, %cst_133 {dimension_numbers = #tpu.dot_dimension_numbers<[1], [0], [0], [1], [0, 0, 1, 1], [], []>} : vector<4x32xbf16>, vector<32x128xbf16>, vector<4x128xf32> -> vector<4x128xf32>
    %302 = arith.truncf %301 : vector<4x128xf32> to vector<4x128xbf16>
    %c11 = arith.constant 11 : index
    %c0_134 = arith.constant 0 : index
    %c0_135 = arith.constant 0 : index
    %303 = vector.load %arg10[%c11, %c0_134, %c0_135] : memref<15x128x256xbf16, #tpu.memory_space<vmem>>, vector<1x128x256xbf16>
    %304 = vector.shape_cast %303 : vector<1x128x256xbf16> to vector<128x256xbf16>
    %cst_136 = arith.constant dense<0.000000e+00> : vector<4x256xf32>
    %305 = tpu.matmul %302, %304, %cst_136 {dimension_numbers = #tpu.dot_dimension_numbers<[1], [0], [0], [1], [0, 0, 1, 1], [], []>} : vector<4x128xbf16>, vector<128x256xbf16>, vector<4x256xf32> -> vector<4x256xf32>
    %306 = arith.addf %300, %305 : vector<4x256xf32>
    %cst_137 = arith.constant dense<0.000000e+00> : vector<4x128xf32>
    %307 = tpu.matmul %205, %233, %cst_137 {dimension_numbers = #tpu.dot_dimension_numbers<[1], [0], [0], [1], [0, 0, 1, 1], [], []>} : vector<4x32xbf16>, vector<32x128xbf16>, vector<4x128xf32> -> vector<4x128xf32>
    %308 = arith.truncf %307 : vector<4x128xf32> to vector<4x128xbf16>
    %c12 = arith.constant 12 : index
    %c0_138 = arith.constant 0 : index
    %c0_139 = arith.constant 0 : index
    %309 = vector.load %arg10[%c12, %c0_138, %c0_139] : memref<15x128x256xbf16, #tpu.memory_space<vmem>>, vector<1x128x256xbf16>
    %310 = vector.shape_cast %309 : vector<1x128x256xbf16> to vector<128x256xbf16>
    %cst_140 = arith.constant dense<0.000000e+00> : vector<4x256xf32>
    %311 = tpu.matmul %308, %310, %cst_140 {dimension_numbers = #tpu.dot_dimension_numbers<[1], [0], [0], [1], [0, 0, 1, 1], [], []>} : vector<4x128xbf16>, vector<128x256xbf16>, vector<4x256xf32> -> vector<4x256xf32>
    %312 = arith.addf %306, %311 : vector<4x256xf32>
    %cst_141 = arith.constant dense<0.000000e+00> : vector<4x128xf32>
    %313 = tpu.matmul %214, %233, %cst_141 {dimension_numbers = #tpu.dot_dimension_numbers<[1], [0], [0], [1], [0, 0, 1, 1], [], []>} : vector<4x32xbf16>, vector<32x128xbf16>, vector<4x128xf32> -> vector<4x128xf32>
    %314 = arith.truncf %313 : vector<4x128xf32> to vector<4x128xbf16>
    %c13 = arith.constant 13 : index
    %c0_142 = arith.constant 0 : index
    %c0_143 = arith.constant 0 : index
    %315 = vector.load %arg10[%c13, %c0_142, %c0_143] : memref<15x128x256xbf16, #tpu.memory_space<vmem>>, vector<1x128x256xbf16>
    %316 = vector.shape_cast %315 : vector<1x128x256xbf16> to vector<128x256xbf16>
    %cst_144 = arith.constant dense<0.000000e+00> : vector<4x256xf32>
    %317 = tpu.matmul %314, %316, %cst_144 {dimension_numbers = #tpu.dot_dimension_numbers<[1], [0], [0], [1], [0, 0, 1, 1], [], []>} : vector<4x128xbf16>, vector<128x256xbf16>, vector<4x256xf32> -> vector<4x256xf32>
    %318 = arith.addf %312, %317 : vector<4x256xf32>
    %cst_145 = arith.constant dense<0.000000e+00> : vector<4x128xf32>
    %319 = tpu.matmul %223, %233, %cst_145 {dimension_numbers = #tpu.dot_dimension_numbers<[1], [0], [0], [1], [0, 0, 1, 1], [], []>} : vector<4x32xbf16>, vector<32x128xbf16>, vector<4x128xf32> -> vector<4x128xf32>
    %320 = arith.truncf %319 : vector<4x128xf32> to vector<4x128xbf16>
    %c14 = arith.constant 14 : index
    %c0_146 = arith.constant 0 : index
    %c0_147 = arith.constant 0 : index
    %321 = vector.load %arg10[%c14, %c0_146, %c0_147] : memref<15x128x256xbf16, #tpu.memory_space<vmem>>, vector<1x128x256xbf16>
    %322 = vector.shape_cast %321 : vector<1x128x256xbf16> to vector<128x256xbf16>
    %cst_148 = arith.constant dense<0.000000e+00> : vector<4x256xf32>
    %323 = tpu.matmul %320, %322, %cst_148 {dimension_numbers = #tpu.dot_dimension_numbers<[1], [0], [0], [1], [0, 0, 1, 1], [], []>} : vector<4x128xbf16>, vector<128x256xbf16>, vector<4x256xf32> -> vector<4x256xf32>
    %324 = arith.addf %318, %323 : vector<4x256xf32>
    %c0_149 = arith.constant 0 : index
    %c0_150 = arith.constant 0 : index
    %325 = vector.load %arg11[%c0_149, %c0_150] : memref<1x256xf32, #tpu.memory_space<vmem>>, vector<1x256xf32>
    %326 = vector.broadcast %325 : vector<1x256xf32> to vector<4x256xf32>
    %327 = arith.addf %324, %326 : vector<4x256xf32>
    %cst_151 = arith.constant 0.000000e+00 : f32
    %328 = vector.broadcast %cst_151 : f32 to vector<4x256xf32>
    %329 = arith.maximumf %327, %328 : vector<4x256xf32>
    %cst_152 = arith.constant 0.000000e+00 : f32
    %330 = vector.broadcast %cst_152 : f32 to vector<16x128xf32>
    %cst_153 = arith.constant dense<0.000000e+00> : vector<16x128xf32>
    %331 = tpu.matmul %10, %233, %cst_153 {dimension_numbers = #tpu.dot_dimension_numbers<[1], [0], [0], [1], [0, 0, 1, 1], [], []>} : vector<16x32xbf16>, vector<32x128xbf16>, vector<16x128xf32> -> vector<16x128xf32>
    %332 = arith.truncf %331 : vector<16x128xf32> to vector<16x128xbf16>
    %c0_154 = arith.constant 0 : index
    %c0_155 = arith.constant 0 : index
    %c0_156 = arith.constant 0 : index
    %333 = vector.load %arg4[%c0_154, %c0_155, %c0_156] : memref<3x128x128xbf16, #tpu.memory_space<vmem>>, vector<1x128x128xbf16>
    %334 = vector.shape_cast %333 : vector<1x128x128xbf16> to vector<128x128xbf16>
    %cst_157 = arith.constant dense<0.000000e+00> : vector<16x128xf32>
    %335 = tpu.matmul %332, %334, %cst_157 {dimension_numbers = #tpu.dot_dimension_numbers<[1], [0], [0], [1], [0, 0, 1, 1], [], []>} : vector<16x128xbf16>, vector<128x128xbf16>, vector<16x128xf32> -> vector<16x128xf32>
    %336 = arith.addf %330, %335 : vector<16x128xf32>
    %cst_158 = arith.constant dense<0.000000e+00> : vector<16x128xf32>
    %337 = tpu.matmul %19, %233, %cst_158 {dimension_numbers = #tpu.dot_dimension_numbers<[1], [0], [0], [1], [0, 0, 1, 1], [], []>} : vector<16x32xbf16>, vector<32x128xbf16>, vector<16x128xf32> -> vector<16x128xf32>
    %338 = arith.truncf %337 : vector<16x128xf32> to vector<16x128xbf16>
    %c1_159 = arith.constant 1 : index
    %c0_160 = arith.constant 0 : index
    %c0_161 = arith.constant 0 : index
    %339 = vector.load %arg4[%c1_159, %c0_160, %c0_161] : memref<3x128x128xbf16, #tpu.memory_space<vmem>>, vector<1x128x128xbf16>
    %340 = vector.shape_cast %339 : vector<1x128x128xbf16> to vector<128x128xbf16>
    %cst_162 = arith.constant dense<0.000000e+00> : vector<16x128xf32>
    %341 = tpu.matmul %338, %340, %cst_162 {dimension_numbers = #tpu.dot_dimension_numbers<[1], [0], [0], [1], [0, 0, 1, 1], [], []>} : vector<16x128xbf16>, vector<128x128xbf16>, vector<16x128xf32> -> vector<16x128xf32>
    %342 = arith.addf %336, %341 : vector<16x128xf32>
    %cst_163 = arith.constant dense<0.000000e+00> : vector<16x128xf32>
    %343 = tpu.matmul %28, %233, %cst_163 {dimension_numbers = #tpu.dot_dimension_numbers<[1], [0], [0], [1], [0, 0, 1, 1], [], []>} : vector<16x32xbf16>, vector<32x128xbf16>, vector<16x128xf32> -> vector<16x128xf32>
    %344 = arith.truncf %343 : vector<16x128xf32> to vector<16x128xbf16>
    %c2_164 = arith.constant 2 : index
    %c0_165 = arith.constant 0 : index
    %c0_166 = arith.constant 0 : index
    %345 = vector.load %arg4[%c2_164, %c0_165, %c0_166] : memref<3x128x128xbf16, #tpu.memory_space<vmem>>, vector<1x128x128xbf16>
    %346 = vector.shape_cast %345 : vector<1x128x128xbf16> to vector<128x128xbf16>
    %cst_167 = arith.constant dense<0.000000e+00> : vector<16x128xf32>
    %347 = tpu.matmul %344, %346, %cst_167 {dimension_numbers = #tpu.dot_dimension_numbers<[1], [0], [0], [1], [0, 0, 1, 1], [], []>} : vector<16x128xbf16>, vector<128x128xbf16>, vector<16x128xf32> -> vector<16x128xf32>
    %348 = arith.addf %342, %347 : vector<16x128xf32>
    %c0_168 = arith.constant 0 : index
    %c0_169 = arith.constant 0 : index
    %349 = vector.load %arg5[%c0_168, %c0_169] : memref<1x128xf32, #tpu.memory_space<vmem>>, vector<1x128xf32>
    %350 = vector.broadcast %349 : vector<1x128xf32> to vector<16x128xf32>
    %351 = arith.addf %348, %350 : vector<16x128xf32>
    %cst_170 = arith.constant 0.000000e+00 : f32
    %352 = vector.broadcast %cst_170 : f32 to vector<16x128xf32>
    %353 = arith.maximumf %351, %352 : vector<16x128xf32>
    %354 = arith.truncf %353 : vector<16x128xf32> to vector<16x128xbf16>
    %cst_171 = arith.constant 0.000000e+00 : f32
    %355 = vector.broadcast %cst_171 : f32 to vector<8x128xf32>
    %cst_172 = arith.constant dense<0.000000e+00> : vector<8x128xf32>
    %356 = tpu.matmul %39, %354, %cst_172 {dimension_numbers = #tpu.dot_dimension_numbers<[1], [0], [0], [1], [0, 0, 1, 1], [], []>} : vector<8x16xbf16>, vector<16x128xbf16>, vector<8x128xf32> -> vector<8x128xf32>
    %357 = arith.truncf %356 : vector<8x128xf32> to vector<8x128xbf16>
    %c0_173 = arith.constant 0 : index
    %c0_174 = arith.constant 0 : index
    %c0_175 = arith.constant 0 : index
    %358 = vector.load %arg6[%c0_173, %c0_174, %c0_175] : memref<3x128x128xbf16, #tpu.memory_space<vmem>>, vector<1x128x128xbf16>
    %359 = vector.shape_cast %358 : vector<1x128x128xbf16> to vector<128x128xbf16>
    %cst_176 = arith.constant dense<0.000000e+00> : vector<8x128xf32>
    %360 = tpu.matmul %357, %359, %cst_176 {dimension_numbers = #tpu.dot_dimension_numbers<[1], [0], [0], [1], [0, 0, 1, 1], [], []>} : vector<8x128xbf16>, vector<128x128xbf16>, vector<8x128xf32> -> vector<8x128xf32>
    %361 = arith.addf %355, %360 : vector<8x128xf32>
    %cst_177 = arith.constant dense<0.000000e+00> : vector<8x128xf32>
    %362 = tpu.matmul %48, %354, %cst_177 {dimension_numbers = #tpu.dot_dimension_numbers<[1], [0], [0], [1], [0, 0, 1, 1], [], []>} : vector<8x16xbf16>, vector<16x128xbf16>, vector<8x128xf32> -> vector<8x128xf32>
    %363 = arith.truncf %362 : vector<8x128xf32> to vector<8x128xbf16>
    %c1_178 = arith.constant 1 : index
    %c0_179 = arith.constant 0 : index
    %c0_180 = arith.constant 0 : index
    %364 = vector.load %arg6[%c1_178, %c0_179, %c0_180] : memref<3x128x128xbf16, #tpu.memory_space<vmem>>, vector<1x128x128xbf16>
    %365 = vector.shape_cast %364 : vector<1x128x128xbf16> to vector<128x128xbf16>
    %cst_181 = arith.constant dense<0.000000e+00> : vector<8x128xf32>
    %366 = tpu.matmul %363, %365, %cst_181 {dimension_numbers = #tpu.dot_dimension_numbers<[1], [0], [0], [1], [0, 0, 1, 1], [], []>} : vector<8x128xbf16>, vector<128x128xbf16>, vector<8x128xf32> -> vector<8x128xf32>
    %367 = arith.addf %361, %366 : vector<8x128xf32>
    %cst_182 = arith.constant dense<0.000000e+00> : vector<8x128xf32>
    %368 = tpu.matmul %57, %354, %cst_182 {dimension_numbers = #tpu.dot_dimension_numbers<[1], [0], [0], [1], [0, 0, 1, 1], [], []>} : vector<8x16xbf16>, vector<16x128xbf16>, vector<8x128xf32> -> vector<8x128xf32>
    %369 = arith.truncf %368 : vector<8x128xf32> to vector<8x128xbf16>
    %c2_183 = arith.constant 2 : index
    %c0_184 = arith.constant 0 : index
    %c0_185 = arith.constant 0 : index
    %370 = vector.load %arg6[%c2_183, %c0_184, %c0_185] : memref<3x128x128xbf16, #tpu.memory_space<vmem>>, vector<1x128x128xbf16>
    %371 = vector.shape_cast %370 : vector<1x128x128xbf16> to vector<128x128xbf16>
    %cst_186 = arith.constant dense<0.000000e+00> : vector<8x128xf32>
    %372 = tpu.matmul %369, %371, %cst_186 {dimension_numbers = #tpu.dot_dimension_numbers<[1], [0], [0], [1], [0, 0, 1, 1], [], []>} : vector<8x128xbf16>, vector<128x128xbf16>, vector<8x128xf32> -> vector<8x128xf32>
    %373 = arith.addf %367, %372 : vector<8x128xf32>
    %c0_187 = arith.constant 0 : index
    %c0_188 = arith.constant 0 : index
    %374 = vector.load %arg7[%c0_187, %c0_188] : memref<1x128xf32, #tpu.memory_space<vmem>>, vector<1x128xf32>
    %375 = vector.broadcast %374 : vector<1x128xf32> to vector<8x128xf32>
    %376 = arith.addf %373, %375 : vector<8x128xf32>
    %cst_189 = arith.constant 0.000000e+00 : f32
    %377 = vector.broadcast %cst_189 : f32 to vector<8x128xf32>
    %378 = arith.maximumf %376, %377 : vector<8x128xf32>
    %379 = arith.truncf %378 : vector<8x128xf32> to vector<8x128xbf16>
    %cst_190 = arith.constant 0.000000e+00 : f32
    %380 = vector.broadcast %cst_190 : f32 to vector<4x256xf32>
    %cst_191 = arith.constant dense<0.000000e+00> : vector<4x128xf32>
    %381 = tpu.matmul %68, %379, %cst_191 {dimension_numbers = #tpu.dot_dimension_numbers<[1], [0], [0], [1], [0, 0, 1, 1], [], []>} : vector<4x8xbf16>, vector<8x128xbf16>, vector<4x128xf32> -> vector<4x128xf32>
    %382 = arith.truncf %381 : vector<4x128xf32> to vector<4x128xbf16>
    %c0_192 = arith.constant 0 : index
    %c0_193 = arith.constant 0 : index
    %c0_194 = arith.constant 0 : index
    %383 = vector.load %arg8[%c0_192, %c0_193, %c0_194] : memref<3x128x256xbf16, #tpu.memory_space<vmem>>, vector<1x128x256xbf16>
    %384 = vector.shape_cast %383 : vector<1x128x256xbf16> to vector<128x256xbf16>
    %cst_195 = arith.constant dense<0.000000e+00> : vector<4x256xf32>
    %385 = tpu.matmul %382, %384, %cst_195 {dimension_numbers = #tpu.dot_dimension_numbers<[1], [0], [0], [1], [0, 0, 1, 1], [], []>} : vector<4x128xbf16>, vector<128x256xbf16>, vector<4x256xf32> -> vector<4x256xf32>
    %386 = arith.addf %380, %385 : vector<4x256xf32>
    %cst_196 = arith.constant dense<0.000000e+00> : vector<4x128xf32>
    %387 = tpu.matmul %77, %379, %cst_196 {dimension_numbers = #tpu.dot_dimension_numbers<[1], [0], [0], [1], [0, 0, 1, 1], [], []>} : vector<4x8xbf16>, vector<8x128xbf16>, vector<4x128xf32> -> vector<4x128xf32>
    %388 = arith.truncf %387 : vector<4x128xf32> to vector<4x128xbf16>
    %c1_197 = arith.constant 1 : index
    %c0_198 = arith.constant 0 : index
    %c0_199 = arith.constant 0 : index
    %389 = vector.load %arg8[%c1_197, %c0_198, %c0_199] : memref<3x128x256xbf16, #tpu.memory_space<vmem>>, vector<1x128x256xbf16>
    %390 = vector.shape_cast %389 : vector<1x128x256xbf16> to vector<128x256xbf16>
    %cst_200 = arith.constant dense<0.000000e+00> : vector<4x256xf32>
    %391 = tpu.matmul %388, %390, %cst_200 {dimension_numbers = #tpu.dot_dimension_numbers<[1], [0], [0], [1], [0, 0, 1, 1], [], []>} : vector<4x128xbf16>, vector<128x256xbf16>, vector<4x256xf32> -> vector<4x256xf32>
    %392 = arith.addf %386, %391 : vector<4x256xf32>
    %cst_201 = arith.constant dense<0.000000e+00> : vector<4x128xf32>
    %393 = tpu.matmul %86, %379, %cst_201 {dimension_numbers = #tpu.dot_dimension_numbers<[1], [0], [0], [1], [0, 0, 1, 1], [], []>} : vector<4x8xbf16>, vector<8x128xbf16>, vector<4x128xf32> -> vector<4x128xf32>
    %394 = arith.truncf %393 : vector<4x128xf32> to vector<4x128xbf16>
    %c2_202 = arith.constant 2 : index
    %c0_203 = arith.constant 0 : index
    %c0_204 = arith.constant 0 : index
    %395 = vector.load %arg8[%c2_202, %c0_203, %c0_204] : memref<3x128x256xbf16, #tpu.memory_space<vmem>>, vector<1x128x256xbf16>
    %396 = vector.shape_cast %395 : vector<1x128x256xbf16> to vector<128x256xbf16>
    %cst_205 = arith.constant dense<0.000000e+00> : vector<4x256xf32>
    %397 = tpu.matmul %394, %396, %cst_205 {dimension_numbers = #tpu.dot_dimension_numbers<[1], [0], [0], [1], [0, 0, 1, 1], [], []>} : vector<4x128xbf16>, vector<128x256xbf16>, vector<4x256xf32> -> vector<4x256xf32>
    %398 = arith.addf %392, %397 : vector<4x256xf32>
    %c0_206 = arith.constant 0 : index
    %c0_207 = arith.constant 0 : index
    %399 = vector.load %arg9[%c0_206, %c0_207] : memref<1x256xf32, #tpu.memory_space<vmem>>, vector<1x256xf32>
    %400 = vector.broadcast %399 : vector<1x256xf32> to vector<4x256xf32>
    %401 = arith.addf %398, %400 : vector<4x256xf32>
    %cst_208 = arith.constant 0.000000e+00 : f32
    %402 = vector.broadcast %cst_208 : f32 to vector<4x256xf32>
    %403 = arith.maximumf %401, %402 : vector<4x256xf32>
    %404 = arith.addf %403, %329 : vector<4x256xf32>
    %c0_209 = arith.constant 0 : index
    %c0_210 = arith.constant 0 : index
    %405 = vector.load %arg13[%c0_209, %c0_210] : memref<1x256xf32, #tpu.memory_space<vmem>>, vector<1x256xf32>
    %406 = vector.extract_strided_slice %404 {offsets = [0, 0], sizes = [1, 256], strides = [1, 1]} : vector<4x256xf32> to vector<1x256xf32>
    %407 = arith.truncf %406 : vector<1x256xf32> to vector<1x256xbf16>
    %c0_211 = arith.constant 0 : index
    %c0_212 = arith.constant 0 : index
    %c0_213 = arith.constant 0 : index
    %408 = vector.load %arg12[%c0_211, %c0_212, %c0_213] : memref<4x256x256xbf16, #tpu.memory_space<vmem>>, vector<1x256x256xbf16>
    %409 = vector.shape_cast %408 : vector<1x256x256xbf16> to vector<256x256xbf16>
    %cst_214 = arith.constant dense<0.000000e+00> : vector<1x256xf32>
    %410 = tpu.matmul %407, %409, %cst_214 {dimension_numbers = #tpu.dot_dimension_numbers<[1], [0], [0], [1], [0, 0, 1, 1], [], []>} : vector<1x256xbf16>, vector<256x256xbf16>, vector<1x256xf32> -> vector<1x256xf32>
    %411 = arith.addf %405, %410 : vector<1x256xf32>
    %412 = vector.extract_strided_slice %404 {offsets = [1, 0], sizes = [1, 256], strides = [1, 1]} : vector<4x256xf32> to vector<1x256xf32>
    %413 = arith.truncf %412 : vector<1x256xf32> to vector<1x256xbf16>
    %c1_215 = arith.constant 1 : index
    %c0_216 = arith.constant 0 : index
    %c0_217 = arith.constant 0 : index
    %414 = vector.load %arg12[%c1_215, %c0_216, %c0_217] : memref<4x256x256xbf16, #tpu.memory_space<vmem>>, vector<1x256x256xbf16>
    %415 = vector.shape_cast %414 : vector<1x256x256xbf16> to vector<256x256xbf16>
    %cst_218 = arith.constant dense<0.000000e+00> : vector<1x256xf32>
    %416 = tpu.matmul %413, %415, %cst_218 {dimension_numbers = #tpu.dot_dimension_numbers<[1], [0], [0], [1], [0, 0, 1, 1], [], []>} : vector<1x256xbf16>, vector<256x256xbf16>, vector<1x256xf32> -> vector<1x256xf32>
    %417 = arith.addf %411, %416 : vector<1x256xf32>
    %418 = vector.extract_strided_slice %404 {offsets = [2, 0], sizes = [1, 256], strides = [1, 1]} : vector<4x256xf32> to vector<1x256xf32>
    %419 = arith.truncf %418 : vector<1x256xf32> to vector<1x256xbf16>
    %c2_219 = arith.constant 2 : index
    %c0_220 = arith.constant 0 : index
    %c0_221 = arith.constant 0 : index
    %420 = vector.load %arg12[%c2_219, %c0_220, %c0_221] : memref<4x256x256xbf16, #tpu.memory_space<vmem>>, vector<1x256x256xbf16>
    %421 = vector.shape_cast %420 : vector<1x256x256xbf16> to vector<256x256xbf16>
    %cst_222 = arith.constant dense<0.000000e+00> : vector<1x256xf32>
    %422 = tpu.matmul %419, %421, %cst_222 {dimension_numbers = #tpu.dot_dimension_numbers<[1], [0], [0], [1], [0, 0, 1, 1], [], []>} : vector<1x256xbf16>, vector<256x256xbf16>, vector<1x256xf32> -> vector<1x256xf32>
    %423 = arith.addf %417, %422 : vector<1x256xf32>
    %424 = vector.extract_strided_slice %404 {offsets = [3, 0], sizes = [1, 256], strides = [1, 1]} : vector<4x256xf32> to vector<1x256xf32>
    %425 = arith.truncf %424 : vector<1x256xf32> to vector<1x256xbf16>
    %c3_223 = arith.constant 3 : index
    %c0_224 = arith.constant 0 : index
    %c0_225 = arith.constant 0 : index
    %426 = vector.load %arg12[%c3_223, %c0_224, %c0_225] : memref<4x256x256xbf16, #tpu.memory_space<vmem>>, vector<1x256x256xbf16>
    %427 = vector.shape_cast %426 : vector<1x256x256xbf16> to vector<256x256xbf16>
    %cst_226 = arith.constant dense<0.000000e+00> : vector<1x256xf32>
    %428 = tpu.matmul %425, %427, %cst_226 {dimension_numbers = #tpu.dot_dimension_numbers<[1], [0], [0], [1], [0, 0, 1, 1], [], []>} : vector<1x256xbf16>, vector<256x256xbf16>, vector<1x256xf32> -> vector<1x256xf32>
    %429 = arith.addf %423, %428 : vector<1x256xf32>
    %430 = arith.truncf %429 : vector<1x256xf32> to vector<1x256xbf16>
    %c0_227 = arith.constant 0 : index
    %c0_228 = arith.constant 0 : index
    %431 = vector.load %arg14[%c0_227, %c0_228] : memref<256x128xbf16, #tpu.memory_space<vmem>>, vector<256x128xbf16>
    %cst_229 = arith.constant dense<0.000000e+00> : vector<1x128xf32>
    %432 = tpu.matmul %430, %431, %cst_229 {dimension_numbers = #tpu.dot_dimension_numbers<[1], [0], [0], [1], [0, 0, 1, 1], [], []>} : vector<1x256xbf16>, vector<256x128xbf16>, vector<1x128xf32> -> vector<1x128xf32>
    %c0_230 = arith.constant 0 : index
    %c0_231 = arith.constant 0 : index
    %433 = vector.load %arg15[%c0_230, %c0_231] : memref<1x128xf32, #tpu.memory_space<vmem>>, vector<1x128xf32>
    %434 = arith.addf %432, %433 : vector<1x128xf32>
    %435 = arith.truncf %434 : vector<1x128xf32> to vector<1x128xbf16>
    %c0_232 = arith.constant 0 : index
    %c0_233 = arith.constant 0 : index
    %436 = vector.load %arg16[%c0_232, %c0_233] : memref<128x512xbf16, #tpu.memory_space<vmem>>, vector<128x512xbf16>
    %cst_234 = arith.constant dense<0.000000e+00> : vector<1x512xf32>
    %437 = tpu.matmul %435, %436, %cst_234 {dimension_numbers = #tpu.dot_dimension_numbers<[1], [0], [0], [1], [0, 0, 1, 1], [], []>} : vector<1x128xbf16>, vector<128x512xbf16>, vector<1x512xf32> -> vector<1x512xf32>
    %c0_235 = arith.constant 0 : index
    %c0_236 = arith.constant 0 : index
    %438 = vector.load %arg17[%c0_235, %c0_236] : memref<1x512xf32, #tpu.memory_space<vmem>>, vector<1x512xf32>
    %439 = arith.addf %437, %438 : vector<1x512xf32>
    %c0_237 = arith.constant 0 : index
    %c0_238 = arith.constant 0 : index
    %c0_239 = arith.constant 0 : index
    %440 = vector.load %arg18[%c0_237, %c0_238, %c0_239] : memref<1x1x512xf32, #tpu.memory_space<vmem>>, vector<1x1x512xf32>
    %441 = vector.shape_cast %440 : vector<1x1x512xf32> to vector<1x512xf32>
    %442 = vector.shape_cast %439 : vector<1x512xf32> to vector<1x1x512xf32>
    tpu.vector_store %arg18[%c0_237, %c0_238, %c0_239], %442 {strides = array<i32>} : memref<1x1x512xf32, #tpu.memory_space<vmem>>, vector<1x1x512xf32>,
    return
  }
  func.func @transform_0(%arg0: i32) -> (i32, i32, i32) {
    %c0_i32 = arith.constant 0 : i32
    %c0_i32_0 = arith.constant 0 : i32
    %c0_i32_1 = arith.constant 0 : i32
    return %arg0, %c0_i32, %c0_i32_0 : i32, i32, i32
  }
  func.func @transform_1(%arg0: i32) -> (i32, i32) {
    %c0_i32 = arith.constant 0 : i32
    %c0_i32_0 = arith.constant 0 : i32
    %c0_i32_1 = arith.constant 0 : i32
    return %c0_i32, %c0_i32_0 : i32, i32
  }
  func.func @transform_2(%arg0: i32) -> (i32, i32) {
    %c0_i32 = arith.constant 0 : i32
    %c0_i32_0 = arith.constant 0 : i32
    %c0_i32_1 = arith.constant 0 : i32
    return %c0_i32, %c0_i32_0 : i32, i32
  }
  func.func @transform_3(%arg0: i32) -> (i32, i32, i32) {
    %c0_i32 = arith.constant 0 : i32
    %c0_i32_0 = arith.constant 0 : i32
    %c0_i32_1 = arith.constant 0 : i32
    %c0_i32_2 = arith.constant 0 : i32
    return %c0_i32, %c0_i32_0, %c0_i32_1 : i32, i32, i32
  }
  func.func @transform_4(%arg0: i32) -> (i32, i32) {
    %c0_i32 = arith.constant 0 : i32
    %c0_i32_0 = arith.constant 0 : i32
    %c0_i32_1 = arith.constant 0 : i32
    return %c0_i32, %c0_i32_0 : i32, i32
  }
  func.func @transform_5(%arg0: i32) -> (i32, i32, i32) {
    %c0_i32 = arith.constant 0 : i32
    %c0_i32_0 = arith.constant 0 : i32
    %c0_i32_1 = arith.constant 0 : i32
    %c0_i32_2 = arith.constant 0 : i32
    return %c0_i32, %c0_i32_0, %c0_i32_1 : i32, i32, i32
  }
  func.func @transform_6(%arg0: i32) -> (i32, i32) {
    %c0_i32 = arith.constant 0 : i32
    %c0_i32_0 = arith.constant 0 : i32
    %c0_i32_1 = arith.constant 0 : i32
    return %c0_i32, %c0_i32_0 : i32, i32
  }
  func.func @transform_7(%arg0: i32) -> (i32, i32, i32) {
    %c0_i32 = arith.constant 0 : i32
    %c0_i32_0 = arith.constant 0 : i32
    %c0_i32_1 = arith.constant 0 : i32
    %c0_i32_2 = arith.constant 0 : i32
    return %c0_i32, %c0_i32_0, %c0_i32_1 : i32, i32, i32
  }
  func.func @transform_8(%arg0: i32) -> (i32, i32) {
    %c0_i32 = arith.constant 0 : i32
    %c0_i32_0 = arith.constant 0 : i32
    %c0_i32_1 = arith.constant 0 : i32
    return %c0_i32, %c0_i32_0 : i32, i32
  }
  func.func @transform_9(%arg0: i32) -> (i32, i32, i32) {
    %c0_i32 = arith.constant 0 : i32
    %c0_i32_0 = arith.constant 0 : i32
    %c0_i32_1 = arith.constant 0 : i32
    %c0_i32_2 = arith.constant 0 : i32
    return %c0_i32, %c0_i32_0, %c0_i32_1 : i32, i32, i32
  }
  func.func @transform_10(%arg0: i32) -> (i32, i32) {
    %c0_i32 = arith.constant 0 : i32
    %c0_i32_0 = arith.constant 0 : i32
    %c0_i32_1 = arith.constant 0 : i32
    return %c0_i32, %c0_i32_0 : i32, i32
  }
  func.func @transform_11(%arg0: i32) -> (i32, i32, i32) {
    %c0_i32 = arith.constant 0 : i32
    %c0_i32_0 = arith.constant 0 : i32
    %c0_i32_1 = arith.constant 0 : i32
    %c0_i32_2 = arith.constant 0 : i32
    return %c0_i32, %c0_i32_0, %c0_i32_1 : i32, i32, i32
  }
  func.func @transform_12(%arg0: i32) -> (i32, i32) {
    %c0_i32 = arith.constant 0 : i32
    %c0_i32_0 = arith.constant 0 : i32
    %c0_i32_1 = arith.constant 0 : i32
    return %c0_i32, %c0_i32_0 : i32, i32
  }
  func.func @transform_13(%arg0: i32) -> (i32, i32) {
    %c0_i32 = arith.constant 0 : i32
    %c0_i32_0 = arith.constant 0 : i32
    %c0_i32_1 = arith.constant 0 : i32
    return %c0_i32, %c0_i32_0 : i32, i32
  }
  func.func @transform_14(%arg0: i32) -> (i32, i32) {
    %c0_i32 = arith.constant 0 : i32
    %c0_i32_0 = arith.constant 0 : i32
    %c0_i32_1 = arith.constant 0 : i32
    return %c0_i32, %c0_i32_0 : i32, i32
  }
  func.func @transform_15(%arg0: i32) -> (i32, i32) {
    %c0_i32 = arith.constant 0 : i32
    %c0_i32_0 = arith.constant 0 : i32
    %c0_i32_1 = arith.constant 0 : i32
    return %c0_i32, %c0_i32_0 : i32, i32
  }
  func.func @transform_16(%arg0: i32) -> (i32, i32) {
    %c0_i32 = arith.constant 0 : i32
    %c0_i32_0 = arith.constant 0 : i32
    %c0_i32_1 = arith.constant 0 : i32
    return %c0_i32, %c0_i32_0 : i32, i32
  }
  func.func @transform_17(%arg0: i32) -> (i32, i32, i32) {
    %c0_i32 = arith.constant 0 : i32
    %c0_i32_0 = arith.constant 0 : i32
    %c0_i32_1 = arith.constant 0 : i32
    return %arg0, %c0_i32, %c0_i32_0 : i32, i32, i32
  }
}

</mosaic_0001>

<bundles_post_ra>
// kernel: _lambda_.1
= control target key start
LH: loop header
LB: loop body
LE: loop exit
PB: predicated region body
PF: predicated region fallthrough
CT: control target
= control target key end

     0   :  { %s8948_s24 = smov 0   ;;  %s10995_s0 = inlined_call_operand.vmem [shape: bf16[4,32,128], index: 0, kind: input, shape index: {}]   ;;  %s10996_s1 = inlined_call_operand.vmem [shape: bf16[128,128], index: 1, kind: input, shape index: {}]   ;;  %s10997_s2 = inlined_call_operand.vmem [shape: f32[1,128], index: 2, kind: input, shape index: {}]   ;;  %s10998_s3 = inlined_call_operand.vmem [shape: bf16[3,128,128], index: 3, kind: input, shape index: {}]   ;;  %s10999_s4 = inlined_call_operand.vmem [shape: f32[1,128], index: 4, kind: input, shape index: {}]   ;;  %s11000_s5 = inlined_call_operand.vmem [shape: bf16[3,128,128], index: 5, kind: input, shape index: {}]   ;;  %s11001_s6 = inlined_call_operand.vmem [shape: f32[1,128], index: 6, kind: input, shape index: {}]   ;;  %s11002_s7 = inlined_call_operand.vmem [shape: bf16[3,128,256], index: 7, kind: input, shape index: {}]   ;;  %s11003_s8 = inlined_call_operand.vmem [shape: f32[1,256], index: 8, kind: input, shape index: {}]   ;;  %s11004_s9 = inlined_call_operand.vmem [shape: bf16[15,128,256], index: 9, kind: input, shape index: {}]   ;;  %s11005_s10 = inlined_call_operand.vmem [shape: f32[1,256], index: 10, kind: input, shape index: {}]   ;;  %s11006_s11 = inlined_call_operand.vmem [shape: bf16[4,256,256], index: 11, kind: input, shape index: {}]   ;;  %s11007_s12 = inlined_call_operand.vmem [shape: f32[1,256], index: 12, kind: input, shape index: {}]   ;;  %s11008_s13 = inlined_call_operand.vmem [shape: bf16[256,128], index: 13, kind: input, shape index: {}]   ;;  %s11009_s14 = inlined_call_operand.vmem [shape: f32[1,128], index: 14, kind: input, shape index: {}]   ;;  %s11010_s15 = inlined_call_operand.vmem [shape: bf16[128,512], index: 15, kind: input, shape index: {}]   ;;  %s11011_s16 = inlined_call_operand.vmem [shape: f32[1,512], index: 16, kind: input, shape index: {}]   ;;  %s11012_s17 = inlined_call_operand.vmem [shape: f32[4,1,512], index: 17, kind: output, shape index: {}]  }
   0x1   :  { %11014 = sst [smem:[#allocation2_spill]] %s10995_s0 }
   0x2   :  { %11015 = sst [smem:[#allocation3_spill]] %s10996_s1 }
   0x3 LB: > { %s6640_s25 = sadd.s32 4294967295, %s8852_s24   ;;  %p6644_p0 = scmp.ge.s32.totalorder %s8852_s24, 1  ;;  %s8852_s24 = sphi %s8948_s24, %s27_s24  }
   0x4   : > { %p487_p1 = scmp.lt.s32.totalorder %s8852_s24, 5 }
   0x6   : > { %p488_p2 = pnand %p6644_p0, %p487_p1 }
   0x7   : > { %s11016_s28 = sld [smem:[#allocation3_spill]] (!%p488_p2)  ;;  %p538_p3 = scmp.lt.s32.totalorder (!%p488_p2), %s6640_s25, 3  ;;  %v8854_v10 = vmov (!%p488_p2), 0.0   ;;  %vm8855_vm0 = vmmov (!%p488_p2), 0   ;;  %v8110_v11 = vld [vmem:[%s11004_s9] ss:$8 sps:$4 sm:$0xff] (!%p488_p2)   ;;  %v548_v27 = vlaneseq (!%p488_p2) }
   0x8   : > { %491 = sbr.rel (%p488_p2) target bundleno = 4572 (0x11dc), region = 88  ;;  %s11017_s21 = sld [smem:[#allocation2_spill]] (!%p488_p2)  ;;  %7788 = vmatprep.subr.bf16.mxu1 (!%p488_p2), %v8854_v10  ;;  %7792 = vmatprep.mubr.msk.bf16.mxu1 (!%p488_p2), %vm8855_vm0, %v8854_v10  ;;  %v8112_v12 = vld [vmem:[%s11004_s9 + $0x4] ss:$8 sps:$4 sm:$0xff] (!%p488_p2)   ;;  %v8115_v13 = vld [vmem:[%s11004_s9 + $0x14] ss:$8 sps:$4 sm:$0xff] (!%p488_p2)  }
   0x9   : > { %v8113_v14 = vld [vmem:[%s11004_s9 + $0x10] ss:$8 sps:$4 sm:$0xff] (!%p488_p2)   ;;  %v8121_v15 = vld [vmem:[%s11004_s9 + $0x24] ss:$8 sps:$4 sm:$0xff] (!%p488_p2)   ;;  %v8119_v16 = vld [vmem:[%s11004_s9 + $0x20] ss:$8 sps:$4 sm:$0xff] (!%p488_p2)  }
   0xa   : > { %v8127_v17 = vld [vmem:[%s11004_s9 + $0x34] ss:$8 sps:$4 sm:$0xff] (!%p488_p2)   ;;  %v8125_v18 = vld [vmem:[%s11004_s9 + $0x30] ss:$8 sps:$4 sm:$0xff] (!%p488_p2)   ;;  %v8133_v19 = vld [vmem:[%s11004_s9 + $0x44] ss:$8 sps:$4 sm:$0xff] (!%p488_p2)  }
   0xb   : > { %v8131_v20 = vld [vmem:[%s11004_s9 + $0x40] ss:$8 sps:$4 sm:$0xff] (!%p488_p2)   ;;  %v8139_v21 = vld [vmem:[%s11004_s9 + $0x54] ss:$8 sps:$4 sm:$0xff] (!%p488_p2)   ;;  %v8137_v22 = vld [vmem:[%s11004_s9 + $0x50] ss:$8 sps:$4 sm:$0xff] (!%p488_p2)  }
   0xc   : > { %v8145_v23 = vld [vmem:[%s11004_s9 + $0x64] ss:$8 sps:$4 sm:$0xff] (!%p488_p2)   ;;  %v8143_v24 = vld [vmem:[%s11004_s9 + $0x60] ss:$8 sps:$4 sm:$0xff] (!%p488_p2)   ;;  %v8151_v25 = vld [vmem:[%s11004_s9 + $0x74] ss:$8 sps:$4 sm:$0xff] (!%p488_p2)  }
   0xd   : > { %v8100_v0 = vld [vmem:[%s11016_s28] sm:$0xff] (!%p488_p2)   ;;  %v8101_v1 = vld [vmem:[%s11016_s28 + $0x8] sm:$0xff] (!%p488_p2)   ;;  %v8102_v2 = vld [vmem:[%s11016_s28 + $0x10] sm:$0xff] (!%p488_p2)   ;;  %v9039_v28 = vshrl.u32 (!%p488_p2), %v548_v27, 7  ;;  %v9048_v38 = vand.u32 (!%p488_p2), 127, %v548_v27  ;;  %vm779_vm2 = vcmask (!%p488_p2), 261120  }
   0xe   : > { %7768 = vmatprep.subr.bf16.mxu0 (!%p488_p2), %v8100_v0  ;;  %v8103_v3 = vld [vmem:[%s11016_s28 + $0x18] sm:$0xff] (!%p488_p2)   ;;  %v8104_v5 = vld [vmem:[%s11016_s28 + $0x20] sm:$0xff] (!%p488_p2)   ;;  %v8105_v6 = vld [vmem:[%s11016_s28 + $0x28] sm:$0xff] (!%p488_p2)  }
   0xf   : > { %s11019_s25 = smov (!%p538_p3, %s6640_s25), 3  ;;  %7769 = vmatpush3.bf16.msra.mxu0 %v8100_v0  ;;  %v8106_v7 = vld [vmem:[%s11016_s28 + $0x30] sm:$0xff]   ;;  %v8107_v8 = vld [vmem:[%s11016_s28 + $0x38] sm:$0xff]   ;;  %v6648_v29 = vld [vmem:[%s10997_s2] ss:$0 sm:$0xff]  ;;  %v9045_v30 = vmul.u32 8, %v9039_v28 }
  0x10   : > { %7770 = vmatprep.subr.bf16.mxu0 %v8101_v1  ;;  %s7615_s19 = sshll.u32 %s11019_s25, 4  ;;  %v8149_v26 = vld [vmem:[%s11004_s9 + $0x70] ss:$8 sps:$4 sm:$0xff]   ;;  %v8118_v51 = vld [vmem:[%s11004_s9 + $0x84] ss:$8 sps:$4 sm:$0xff]   ;;  %s6647_s18 = sshll.u32 %s11019_s25, 2 }
  0x11   : > { %s542_s22 = scalar_lea.vmem %s11017_s21, %s7615_s19  ;;  %v578_v39 = vadd.s32 4294967289, %v9045_v30  ;;  %v582_v48 = vadd.s32 4294967290, %v9045_v30  ;;  %v8116_v53 = vld [vmem:[%s11004_s9 + $0x80] ss:$8 sps:$4 sm:$0xff]   ;;  %v8124_v54 = vld [vmem:[%s11004_s9 + $0x94] ss:$8 sps:$4 sm:$0xff]   ;;  %vm606_vm8 = vcmp.eq.s32.totalorder %v9048_v38, %v9045_v30  ;;  %s546_s20 = scalar_lea.vmem %s11012_s17, %s6647_s18 }
  0x12   : > { %v8108_v4 = vld [vmem:[%s542_s22] sm:$0xff]   ;;  %v8109_v9 = vld [vmem:[%s542_s22 + $0x8] sm:$0xff]   ;;  %v8122_v55 = vld [vmem:[%s11004_s9 + $0x90] ss:$8 sps:$4 sm:$0xff]  }
  0x13   : > { %7771 = vmatpush3.bf16.msra.mxu0 %v8101_v1  ;;  %7784 = vmatprep.mubr.bf16.mxu0 %v8108_v4  ;;  %vm579_vm1 = vcmp.eq.s32.totalorder %v9048_v38, %v578_v39  ;;  %vm583_vm3 = vcmp.eq.s32.totalorder %v9048_v38, %v582_v48  ;;  %v8130_v56 = vld [vmem:[%s11004_s9 + $0xa4] ss:$8 sps:$4 sm:$0xff]   ;;  %v8128_v57 = vld [vmem:[%s11004_s9 + $0xa0] ss:$8 sps:$4 sm:$0xff]   ;;  %v8136_v58 = vld [vmem:[%s11004_s9 + $0xb4] ss:$8 sps:$4 sm:$0xff]  }
  0x14   : > { %7772 = vmatprep.subr.bf16.mxu0 %v8102_v2  ;;  %v580_v47 = vsel %vm579_vm1, 1.0, %v8854_v10  ;;  %v584_v50 = vsel %vm583_vm3, 1.0, %v8854_v10  ;;  %v8134_v59 = vld [vmem:[%s11004_s9 + $0xb0] ss:$8 sps:$4 sm:$0xff]   ;;  %v8142_v60 = vld [vmem:[%s11004_s9 + $0xc4] ss:$8 sps:$4 sm:$0xff]  }
  0x15   : > { %v581_v49 = vpack.c.bf16 %v580_v47, %v580_v47  ;;  %v585_v52 = vpack.c.bf16 %v584_v50, %v584_v50  ;;  %v8140_v61 = vld [vmem:[%s11004_s9 + $0xc0] ss:$8 sps:$4 sm:$0xff]   ;;  %v8148_v62 = vld [vmem:[%s11004_s9 + $0xd4] ss:$8 sps:$4 sm:$0xff]   ;;  %v8146_v63 = vld [vmem:[%s11004_s9 + $0xd0] ss:$8 sps:$4 sm:$0xff]  }
  0x16   : > { %v8154_v0 = vld [vmem:[%s11004_s9 + $0xe4] ss:$8 sps:$4 sm:$0xff]   ;;  %v8152_v1 = vld [vmem:[%s11004_s9 + $0xe0] ss:$8 sps:$4 sm:$0xff]   ;;  %v8157_v4 = vld [vmem:[%s11004_s9 + $0xf4] ss:$8 sps:$4 sm:$0xff]  }
  0x17   : > { %7773 = vmatpush3.bf16.msra.mxu0 %v8102_v2  ;;  %v8856_v2 = vmov 0   ;;  %v8181_v39 = vld [vmem:[%s11004_s9 + $0x1c4] ss:$8 sps:$4 sm:$0xff]   ;;  %v8185_v47 = vld [vmem:[%s11004_s9 + $0x1d0] ss:$8 sps:$4 sm:$0xff]  }
  0x18   : > { %7774 = vmatprep.subr.bf16.mxu0 %v8103_v3  ;;  %v8190_v48 = vld [vmem:[%s11004_s9 + $0x144] ss:$8 sps:$4 sm:$0xff]   ;;  %v8188_v50 = vld [vmem:[%s11004_s9 + $0x140] ss:$8 sps:$4 sm:$0xff]  }
  0x1b   : > { %7775 = vmatpush3.bf16.msra.mxu0 %v8103_v3  ;;  %v8155_v3 = vld [vmem:[%s11004_s9 + $0xf0] ss:$8 sps:$4 sm:$0xff]  }
  0x1c   : > { %7776 = vmatprep.subr.bf16.mxu0 %v8104_v5 }
  0x1f   : > { %7777 = vmatpush3.bf16.msra.mxu0 %v8104_v5  ;;  %v590_v5 = vadd.s32 4294967292, %v9045_v30 }
  0x20   : > { %7778 = vmatprep.subr.bf16.mxu0 %v8105_v6 }
  0x21   : > { %vm591_vm4 = vcmp.eq.s32.totalorder %v9048_v38, %v590_v5 }
  0x23   : > { %7779 = vmatpush3.bf16.msra.mxu0 %v8105_v6 }
  0x24   : > { %7780 = vmatprep.subr.bf16.mxu0 %v8106_v7 }
  0x27   : > { %7781 = vmatpush3.bf16.msra.mxu0 %v8106_v7 }
  0x28   : > { %7782 = vmatprep.subr.bf16.mxu0 %v8107_v8 }
  0x2b   : > { %7783 = vmatpush3.bf16.msra.mxu0 %v8107_v8 }
  0x2c   : > { %1102 = vmatprep.subr.bf16.mxu0 %v8112_v12  ;;  %v592_v12 = vsel %vm591_vm4, 1.0, %v8854_v10 }
  0x2e   : > { %7785 = vmatmul.mubr.bf16.vlgmr.msra.gmra.mrb[0].mxu0 %v8109_v9 }
  0x2f   : > { %1103 = vmatpush1.bf16.msra.mxu0 %v8110_v11  ;;  %1134 = vmatprep.mubr.bf16.mxu0 %v8856_v2 }
  0x30   : > { %1104 = vmatprep.subr.bf16.mxu0 %v8115_v13  ;;  %v586_v13 = vadd.s32 4294967291, %v9045_v30 }
  0x32   : > { %vm587_vm5 = vcmp.eq.s32.totalorder %v9048_v38, %v586_v13 }
  0x33   : > { %1105 = vmatpush1.bf16.msra.mxu0 %v8113_v14  ;;  %v8160_v14 = vld [vmem:[%s11004_s9 + $0x184] ss:$8 sps:$4 sm:$0xff]  }
  0x34   : > { %1106 = vmatprep.subr.bf16.mxu0 %v8121_v15  ;;  %v593_v15 = vpack.c.bf16 %v592_v12, %v592_v12 }
  0x37   : > { %1107 = vmatpush1.bf16.msra.mxu0 %v8119_v16 }
  0x38   : > { %1108 = vmatprep.subr.bf16.mxu0 %v8127_v17 }
  0x3b   : > { %1109 = vmatpush1.bf16.msra.mxu0 %v8125_v18  ;;  %v8158_v18 = vld [vmem:[%s11004_s9 + $0x180] ss:$8 sps:$4 sm:$0xff]  }
  0x3c   : > { %1110 = vmatprep.subr.bf16.mxu0 %v8133_v19 }
  0x3f   : > { %1111 = vmatpush1.bf16.msra.mxu0 %v8131_v20  ;;  %v8163_v20 = vld [vmem:[%s11004_s9 + $0x194] ss:$8 sps:$4 sm:$0xff]  }
  0x40   : > { %1112 = vmatprep.subr.bf16.mxu0 %v8139_v21 }
  0x43   : > { %1113 = vmatpush1.bf16.msra.mxu0 %v8137_v22 }
  0x44   : > { %1114 = vmatprep.subr.bf16.mxu0 %v8145_v23  ;;  %v588_v23 = vsel %vm587_vm5, 1.0, %v8854_v10 }
  0x47   : > { %1115 = vmatpush1.bf16.msra.mxu0 %v8143_v24  ;;  %v8161_v24 = vld [vmem:[%s11004_s9 + $0x190] ss:$8 sps:$4 sm:$0xff]  }
  0x48   : > { %1116 = vmatprep.subr.bf16.mxu0 %v8151_v25  ;;  %v8166_v25 = vld [vmem:[%s11004_s9 + $0x104] ss:$8 sps:$4 sm:$0xff]  }
  0x4b   : > { %1117 = vmatpush1.bf16.msra.mxu0 %v8149_v26  ;;  %v8169_v26 = vld [vmem:[%s11004_s9 + $0x1a4] ss:$8 sps:$4 sm:$0xff]  }
  0x4c   : > { %7812 = vmatprep.subr.bf16.mxu0 %v8854_v10 }
 0x101   : > { %v7786_v31 = vpop.f32.mrb[0].mxu0 }
 0x102   : > { %v767_v32 = vadd.f32 %v7786_v31, %v6648_v29  ;;  %v758_v33 = vpop.f32.mrb[1].mxu0  ;;  %v8164_v31 = vld [vmem:[%s11004_s9 + $0x100] ss:$8 sps:$4 sm:$0xff]  }
 0x103   : > { %v759_v34 = vadd.f32 %v6648_v29, %v758_v33  ;;  %v7787_v35 = vpop.f32.mrb[2].mxu0  ;;  %v8172_v33 = vld [vmem:[%s11004_s9 + $0x114] ss:$8 sps:$4 sm:$0xff]  }
 0x104   : > { %v770_v36 = vadd.f32 %v7787_v35, %v6648_v29  ;;  %v761_v37 = vpop.f32.mrb[3].mxu0  ;;  %v775_v41 = vmax.f32 %v767_v32, 0.0  ;;  %v8167_v32 = vld [vmem:[%s11004_s9 + $0x1a0] ss:$8 sps:$4 sm:$0xff]   ;;  %v8170_v35 = vld [vmem:[%s11004_s9 + $0x110] ss:$8 sps:$4 sm:$0xff]  }
 0x105   : > { %v762_v40 = vadd.f32 %v6648_v29, %v761_v37  ;;  %v773_v43 = vmax.f32 %v759_v34, 0.0  ;;  %v589_v29 = vpack.c.bf16 %v588_v23, %v588_v23  ;;  %v8175_v34 = vld [vmem:[%s11004_s9 + $0x1b4] ss:$8 sps:$4 sm:$0xff]   ;;  %v8178_v37 = vld [vmem:[%s11004_s9 + $0x124] ss:$8 sps:$4 sm:$0xff]  }
 0x106   : > { %v776_v42 = vmax.f32 %v770_v36, 0.0  ;;  %v8173_v36 = vld [vmem:[%s11004_s9 + $0x1b0] ss:$8 sps:$4 sm:$0xff]  }
 0x107   : > { %v774_v44 = vmax.f32 %v762_v40, 0.0  ;;  %v8176_v40 = vld [vmem:[%s11004_s9 + $0x120] ss:$8 sps:$4 sm:$0xff]  }
 0x108   : > { %v9051_v45 = vpack.c.bf16 %v776_v42, %v775_v41  ;;  %v8179_v41 = vld [vmem:[%s11004_s9 + $0x1c0] ss:$8 sps:$4 sm:$0xff]   ;;  %v8184_v42 = vld [vmem:[%s11004_s9 + $0x134] ss:$8 sps:$4 sm:$0xff]  }
 0x109   : > { %v9054_v46 = vpack.c.bf16 %v774_v44, %v773_v43  ;;  %v8187_v43 = vld [vmem:[%s11004_s9 + $0x1d4] ss:$8 sps:$4 sm:$0xff]   ;;  %v8182_v44 = vld [vmem:[%s11004_s9 + $0x130] ss:$8 sps:$4 sm:$0xff]  }
 0x10b   : > { %7789 = vmatpush3.bf16.msra.mxu1 %v9054_v46 }
 0x10c   : > { %7790 = vmatprep.subr.bf16.mxu1 %v8854_v10 }
 0x10f   : > { %7791 = vmatpush3.bf16.msra.mxu1 %v9051_v45 }
 0x110   : > { %7796 = vmatprep.subr.bf16.mxu1 %v8854_v10 }
 0x112   : > { %7793 = vmatmul.mubr.msk.bf16.vlgmr.msra.gmra.mrb[0].mxu1 %vm779_vm2, %v581_v49  ;;  %v8193_v49 = vld [vmem:[%s11004_s9 + $0x1e4] ss:$8 sps:$4 sm:$0xff]  }
 0x113   : > { %7797 = vmatpush3.bf16.msra.mxu1 %v9054_v46  ;;  %7800 = vmatprep.mubr.msk.bf16.mxu1 %vm8855_vm0, %v8854_v10 }
 0x114   : > { %7798 = vmatprep.subr.bf16.mxu1 %v8854_v10 }
 0x117   : > { %7799 = vmatpush3.bf16.msra.mxu1 %v9051_v45 }
 0x118   : > { %981 = vmatprep.subr.bf16.mxu1 %v8118_v51  ;;  %v8191_v51 = vld [vmem:[%s11004_s9 + $0x1e0] ss:$8 sps:$4 sm:$0xff]  }
 0x11a   : > { %7801 = vmatmul.mubr.msk.bf16.vlgmr.msra.gmra.mrb[4].mxu1 %vm779_vm2, %v585_v52  ;;  %v8196_v52 = vld [vmem:[%s11004_s9 + $0x154] ss:$8 sps:$4 sm:$0xff]  }
 0x11b   : > { %982 = vmatpush1.bf16.msra.mxu1 %v8116_v53  ;;  %1013 = vmatprep.mubr.bf16.mxu1 %v8856_v2  ;;  %v8194_v53 = vld [vmem:[%s11004_s9 + $0x150] ss:$8 sps:$4 sm:$0xff]  }
 0x11c   : > { %983 = vmatprep.subr.bf16.mxu1 %v8124_v54  ;;  %v8197_v54 = vld [vmem:[%s11004_s9 + $0x1f0] ss:$8 sps:$4 sm:$0xff]  }
 0x11f   : > { %984 = vmatpush1.bf16.msra.mxu1 %v8122_v55  ;;  %v8199_v55 = vld [vmem:[%s11004_s9 + $0x1f4] ss:$8 sps:$4 sm:$0xff]  }
 0x120   : > { %985 = vmatprep.subr.bf16.mxu1 %v8130_v56  ;;  %v8202_v56 = vld [vmem:[%s11004_s9 + $0x164] ss:$8 sps:$4 sm:$0xff]  }
 0x123   : > { %986 = vmatpush1.bf16.msra.mxu1 %v8128_v57  ;;  %v8200_v57 = vld [vmem:[%s11004_s9 + $0x160] ss:$8 sps:$4 sm:$0xff]  }
 0x124   : > { %987 = vmatprep.subr.bf16.mxu1 %v8136_v58  ;;  %v8203_v58 = vld [vmem:[%s11004_s9 + $0x170] ss:$8 sps:$4 sm:$0xff]  }
 0x127   : > { %988 = vmatpush1.bf16.msra.mxu1 %v8134_v59  ;;  %v8205_v59 = vld [vmem:[%s11004_s9 + $0x174] ss:$8 sps:$4 sm:$0xff]  }
 0x128   : > { %989 = vmatprep.subr.bf16.mxu1 %v8142_v60 }
 0x12b   : > { %990 = vmatpush1.bf16.msra.mxu1 %v8140_v61 }
 0x12c   : > { %991 = vmatprep.subr.bf16.mxu1 %v8148_v62 }
 0x12f   : > { %992 = vmatpush1.bf16.msra.mxu1 %v8146_v63 }
 0x130   : > { %993 = vmatprep.subr.bf16.mxu1 %v8154_v0  ;;  %v598_v0 = vadd.s32 4294967294, %v9045_v30 }
 0x132   : > { %vm599_vm6 = vcmp.eq.s32.totalorder %v9048_v38, %v598_v0 }
 0x133   : > { %994 = vmatpush1.bf16.msra.mxu1 %v8152_v1 }
 0x134   : > { %995 = vmatprep.subr.bf16.mxu1 %v8157_v4 }
 0x137   : > { %996 = vmatpush1.bf16.msra.mxu1 %v8155_v3 }
 0x138   : > { %7804 = vmatprep.subr.bf16.mxu1 %v8854_v10 }
 0x1e5   : > { %v817_v6 = vpop.f32.mrb[0].mxu1 }
 0x1e6   : > { %v823_v7 = vpack.c.bf16 %v817_v6, %v817_v6  ;;  %v7794_v8 = vpop.f32.mrb[1].mxu1 }
 0x1e7   : > { %v820_v9 = vpop.f32.mrb[2].mxu1 }
 0x1e8   : > { %v7795_v11 = vpop.f32.mrb[3].mxu1  ;;  %1135 = vmatmul.mubr.bf16.vlgmr.msra.gmra.mrb[4].mxu0 %v823_v7 }
 0x1e9   : > { %7813 = vmatpush3.bf16.msra.mxu0 %v9054_v46  ;;  %7816 = vmatprep.mubr.msk.bf16.mxu0 %vm8855_vm0, %v8854_v10 }
 0x1ea   : > { %7814 = vmatprep.subr.bf16.mxu0 %v8854_v10 }
 0x1ed   : > { %7815 = vmatpush3.bf16.msra.mxu0 %v9051_v45  ;;  %v877_v16 = vpop.f32.mrb[4].mxu1 }
 0x1ee   : > { %v883_v17 = vpack.c.bf16 %v877_v16, %v877_v16  ;;  %1468 = vmatprep.subr.bf16.mxu0 %v8160_v14  ;;  %v7802_v19 = vpop.f32.mrb[5].mxu1  ;;  %v600_v14 = vsel %vm599_vm6, 1.0, %v8854_v10  ;;  %v8208_v16 = vld [vmem:[%s11004_s9 + $0x284] ss:$8 sps:$4 sm:$0xff]  }
 0x1ef   : > { %v880_v21 = vpop.f32.mrb[6].mxu1 }
 0x1f0   : > { %1014 = vmatmul.mubr.bf16.vlgmr.msra.gmra.mrb[8].mxu1 %v883_v17  ;;  %7817 = vmatmul.mubr.msk.bf16.vlgmr.msra.gmra.mrb[8].mxu0 %vm779_vm2, %v593_v15  ;;  %v7803_v22 = vpop.f32.mrb[7].mxu1  ;;  %v594_v15 = vadd.s32 4294967293, %v9045_v30  ;;  %v601_v17 = vpack.c.bf16 %v600_v14, %v600_v14 }
 0x1f1   : > { %7805 = vmatpush3.bf16.msra.mxu1 %v9054_v46  ;;  %7808 = vmatprep.mubr.msk.bf16.mxu1 %vm8855_vm0, %v8854_v10  ;;  %v8211_v22 = vld [vmem:[%s11004_s9 + $0x294] ss:$8 sps:$4 sm:$0xff]  }
 0x1f2   : > { %7806 = vmatprep.subr.bf16.mxu1 %v8854_v10  ;;  %1469 = vmatpush1.bf16.msra.mxu0 %v8158_v18  ;;  %vm595_vm7 = vcmp.eq.s32.totalorder %v9048_v38, %v594_v15 }
 0x1f3   : > { %1470 = vmatprep.subr.bf16.mxu0 %v8163_v20  ;;  %1500 = vmatprep.mubr.bf16.mxu0 %v8856_v2  ;;  %v8206_v20 = vld [vmem:[%s11004_s9 + $0x280] ss:$8 sps:$4 sm:$0xff]  }
 0x1f5   : > { %7807 = vmatpush3.bf16.msra.mxu1 %v9051_v45 }
 0x1f6   : > { %1471 = vmatpush1.bf16.msra.mxu0 %v8161_v24  ;;  %1284 = vmatprep.subr.bf16.mxu1 %v8166_v25  ;;  %v596_v25 = vsel %vm595_vm7, 1.0, %v8854_v10 }
 0x1f7   : > { %1472 = vmatprep.subr.bf16.mxu0 %v8169_v26  ;;  %v8209_v26 = vld [vmem:[%s11004_s9 + $0x290] ss:$8 sps:$4 sm:$0xff]  }
 0x1f8   : > { %7809 = vmatmul.mubr.msk.bf16.vlgmr.msra.gmra.mrb[12].mxu1 %vm779_vm2, %v589_v29  ;;  %v8214_v29 = vld [vmem:[%s11004_s9 + $0x204] ss:$8 sps:$4 sm:$0xff]  }
 0x1f9   : > { %1285 = vmatpush1.bf16.msra.mxu1 %v8164_v31  ;;  %1316 = vmatprep.mubr.bf16.mxu1 %v8856_v2  ;;  %v8217_v31 = vld [vmem:[%s11004_s9 + $0x2a4] ss:$8 sps:$4 sm:$0xff]  }
 0x1fa   : > { %1473 = vmatpush1.bf16.msra.mxu0 %v8167_v32  ;;  %1286 = vmatprep.subr.bf16.mxu1 %v8172_v33  ;;  %v597_v32 = vpack.c.bf16 %v596_v25, %v596_v25  ;;  %v8212_v33 = vld [vmem:[%s11004_s9 + $0x200] ss:$8 sps:$4 sm:$0xff]   ;;  %v8259_v25 = vld [vmem:[%s11004_s9 + $0x394] ss:$8 sps:$4 sm:$0xff]  }
 0x1fb   : > { %1474 = vmatprep.subr.bf16.mxu0 %v8175_v34  ;;  %v8215_v34 = vld [vmem:[%s11004_s9 + $0x2a0] ss:$8 sps:$4 sm:$0xff]  }
 0x1fd   : > { %1287 = vmatpush1.bf16.msra.mxu1 %v8170_v35  ;;  %v8220_v35 = vld [vmem:[%s11004_s9 + $0x214] ss:$8 sps:$4 sm:$0xff]  }
 0x1fe   : > { %1475 = vmatpush1.bf16.msra.mxu0 %v8173_v36  ;;  %1288 = vmatprep.subr.bf16.mxu1 %v8178_v37  ;;  %v8223_v36 = vld [vmem:[%s11004_s9 + $0x2b4] ss:$8 sps:$4 sm:$0xff]   ;;  %v8218_v37 = vld [vmem:[%s11004_s9 + $0x210] ss:$8 sps:$4 sm:$0xff]  }
 0x1ff   : > { %1476 = vmatprep.subr.bf16.mxu0 %v8181_v39  ;;  %v8221_v39 = vld [vmem:[%s11004_s9 + $0x2b0] ss:$8 sps:$4 sm:$0xff]  }
 0x201   : > { %1289 = vmatpush1.bf16.msra.mxu1 %v8176_v40  ;;  %v8226_v40 = vld [vmem:[%s11004_s9 + $0x224] ss:$8 sps:$4 sm:$0xff]  }
 0x202   : > { %1477 = vmatpush1.bf16.msra.mxu0 %v8179_v41  ;;  %1290 = vmatprep.subr.bf16.mxu1 %v8184_v42  ;;  %v8229_v41 = vld [vmem:[%s11004_s9 + $0x2c4] ss:$8 sps:$4 sm:$0xff]   ;;  %v8224_v42 = vld [vmem:[%s11004_s9 + $0x220] ss:$8 sps:$4 sm:$0xff]  }
 0x203   : > { %1478 = vmatprep.subr.bf16.mxu0 %v8187_v43  ;;  %v8227_v43 = vld [vmem:[%s11004_s9 + $0x2c0] ss:$8 sps:$4 sm:$0xff]  }
 0x205   : > { %1291 = vmatpush1.bf16.msra.mxu1 %v8182_v44  ;;  %v8232_v44 = vld [vmem:[%s11004_s9 + $0x234] ss:$8 sps:$4 sm:$0xff]  }
 0x206   : > { %1479 = vmatpush1.bf16.msra.mxu0 %v8185_v47  ;;  %1292 = vmatprep.subr.bf16.mxu1 %v8190_v48  ;;  %v8235_v47 = vld [vmem:[%s11004_s9 + $0x2d4] ss:$8 sps:$4 sm:$0xff]   ;;  %v8230_v48 = vld [vmem:[%s11004_s9 + $0x230] ss:$8 sps:$4 sm:$0xff]  }
 0x207   : > { %1480 = vmatprep.subr.bf16.mxu0 %v8193_v49  ;;  %v8233_v49 = vld [vmem:[%s11004_s9 + $0x2d0] ss:$8 sps:$4 sm:$0xff]  }
 0x209   : > { %1293 = vmatpush1.bf16.msra.mxu1 %v8188_v50  ;;  %v8238_v50 = vld [vmem:[%s11004_s9 + $0x244] ss:$8 sps:$4 sm:$0xff]  }
 0x20a   : > { %1481 = vmatpush1.bf16.msra.mxu0 %v8191_v51  ;;  %1294 = vmatprep.subr.bf16.mxu1 %v8196_v52  ;;  %v8241_v51 = vld [vmem:[%s11004_s9 + $0x2e4] ss:$8 sps:$4 sm:$0xff]   ;;  %v8236_v52 = vld [vmem:[%s11004_s9 + $0x240] ss:$8 sps:$4 sm:$0xff]  }
 0x20b   : > { %1482 = vmatprep.subr.bf16.mxu0 %v8199_v55  ;;  %v8242_v55 = vld [vmem:[%s11004_s9 + $0x250] ss:$8 sps:$4 sm:$0xff]  }
 0x20d   : > { %1295 = vmatpush1.bf16.msra.mxu1 %v8194_v53  ;;  %v8239_v53 = vld [vmem:[%s11004_s9 + $0x2e0] ss:$8 sps:$4 sm:$0xff]  }
 0x20e   : > { %1483 = vmatpush1.bf16.msra.mxu0 %v8197_v54  ;;  %1296 = vmatprep.subr.bf16.mxu1 %v8202_v56  ;;  %v8244_v54 = vld [vmem:[%s11004_s9 + $0x254] ss:$8 sps:$4 sm:$0xff]   ;;  %v8245_v56 = vld [vmem:[%s11004_s9 + $0x2f0] ss:$8 sps:$4 sm:$0xff]  }
 0x20f   : > { %7828 = vmatprep.subr.bf16.mxu0 %v8854_v10 }
 0x211   : > { %1297 = vmatpush1.bf16.msra.mxu1 %v8200_v57  ;;  %v8247_v57 = vld [vmem:[%s11004_s9 + $0x2f4] ss:$8 sps:$4 sm:$0xff]  }
 0x212   : > { %1298 = vmatprep.subr.bf16.mxu1 %v8205_v59  ;;  %v8248_v59 = vld [vmem:[%s11004_s9 + $0x260] ss:$8 sps:$4 sm:$0xff]  }
 0x215   : > { %1299 = vmatpush1.bf16.msra.mxu1 %v8203_v58  ;;  %v8250_v58 = vld [vmem:[%s11004_s9 + $0x264] ss:$8 sps:$4 sm:$0xff]  }
 0x216   : > { %7820 = vmatprep.subr.bf16.mxu1 %v8854_v10 }
 0x2bb   : > { %v1136_v60 = vpop.f32.mrb[4].mxu0 }
 0x2bc   : > { %v1138_v61 = vpop.f32.mrb[5].mxu0 }
 0x2bd   : > { %v1140_v62 = vpop.f32.mrb[6].mxu0 }
 0x2be   : > { %v1141_v63 = vpop.f32.mrb[7].mxu0 }
 0x2c3   : > { %v1015_v1 = vpop.f32.mrb[8].mxu1  ;;  %v1364_v3 = vpop.f32.mrb[8].mxu0 }
 0x2c4   : > { %v9241_v4 = vadd.f32 %v1136_v60, %v1015_v1  ;;  %v1370_v5 = vpack.c.bf16 %v1364_v3, %v1364_v3  ;;  %v1017_v6 = vpop.f32.mrb[9].mxu1  ;;  %v7818_v7 = vpop.f32.mrb[9].mxu0  ;;  %v8251_v60 = vld [vmem:[%s11004_s9 + $0x270] ss:$8 sps:$4 sm:$0xff]  }
 0x2c5   : > { %v9244_v8 = vadd.f32 %v1138_v61, %v1017_v6  ;;  %v1367_v9 = vpop.f32.mrb[10].mxu0  ;;  %v1019_v11 = vpop.f32.mrb[10].mxu1  ;;  %v8253_v61 = vld [vmem:[%s11004_s9 + $0x274] ss:$8 sps:$4 sm:$0xff]  }
 0x2c6   : > { %v7819_v12 = vpop.f32.mrb[11].mxu0  ;;  %1501 = vmatmul.mubr.bf16.vlgmr.msra.gmra.mrb[12].mxu0 %v1370_v5  ;;  %v1020_v13 = vpop.f32.mrb[11].mxu1 }
 0x2c7   : > { %7829 = vmatpush3.bf16.msra.mxu0 %v9054_v46  ;;  %7832 = vmatprep.mubr.msk.bf16.mxu0 %vm8855_vm0, %v8854_v10 }
 0x2c8   : > { %7830 = vmatprep.subr.bf16.mxu0 %v8854_v10 }
 0x2cb   : > { %7831 = vmatpush3.bf16.msra.mxu0 %v9051_v45  ;;  %v1180_v18 = vpop.f32.mrb[12].mxu1 }
 0x2cc   : > { %v1186_v19 = vpack.c.bf16 %v1180_v18, %v1180_v18  ;;  %1836 = vmatprep.subr.bf16.mxu0 %v8208_v16  ;;  %v7810_v21 = vpop.f32.mrb[13].mxu1 }
 0x2cd   : > { %v1183_v23 = vpop.f32.mrb[14].mxu1 }
 0x2ce   : > { %1317 = vmatmul.mubr.bf16.vlgmr.msra.gmra.mrb[16].mxu1 %v1186_v19  ;;  %7833 = vmatmul.mubr.msk.bf16.vlgmr.msra.gmra.mrb[16].mxu0 %vm779_vm2, %v601_v17  ;;  %v7811_v24 = vpop.f32.mrb[15].mxu1  ;;  %v8256_v19 = vld [vmem:[%s11004_s9 + $0x384] ss:$8 sps:$4 sm:$0xff]   ;;  %v8254_v23 = vld [vmem:[%s11004_s9 + $0x380] ss:$8 sps:$4 sm:$0xff]  }
 0x2cf   : > { %7821 = vmatpush3.bf16.msra.mxu1 %v9054_v46  ;;  %7824 = vmatprep.mubr.msk.bf16.mxu1 %vm8855_vm0, %v8854_v10 }
 0x2d0   : > { %7822 = vmatprep.subr.bf16.mxu1 %v8854_v10  ;;  %1837 = vmatpush1.bf16.msra.mxu0 %v8206_v20 }
 0x2d1   : > { %1838 = vmatprep.subr.bf16.mxu0 %v8211_v22  ;;  %1868 = vmatprep.mubr.bf16.mxu0 %v8856_v2 }
 0x2d3   : > { %7823 = vmatpush3.bf16.msra.mxu1 %v9051_v45 }
 0x2d4   : > { %1839 = vmatpush1.bf16.msra.mxu0 %v8209_v26  ;;  %1652 = vmatprep.subr.bf16.mxu1 %v8214_v29 }
 0x2d5   : > { %1840 = vmatprep.subr.bf16.mxu0 %v8217_v31 }
 0x2d6   : > { %7825 = vmatmul.mubr.msk.bf16.vlgmr.msra.gmra.mrb[20].mxu1 %vm779_vm2, %v597_v32  ;;  %v8257_v32 = vld [vmem:[%s11004_s9 + $0x390] ss:$8 sps:$4 sm:$0xff]  }
 0x2d7   : > { %1653 = vmatpush1.bf16.msra.mxu1 %v8212_v33  ;;  %1684 = vmatprep.mubr.bf16.mxu1 %v8856_v2  ;;  %v8262_v33 = vld [vmem:[%s11004_s9 + $0x304] ss:$8 sps:$4 sm:$0xff]  }
 0x2d8   : > { %1841 = vmatpush1.bf16.msra.mxu0 %v8215_v34  ;;  %1654 = vmatprep.subr.bf16.mxu1 %v8220_v35  ;;  %v8265_v34 = vld [vmem:[%s11004_s9 + $0x3a4] ss:$8 sps:$4 sm:$0xff]  }
 0x2d9   : > { %1842 = vmatprep.subr.bf16.mxu0 %v8223_v36  ;;  %v8260_v36 = vld [vmem:[%s11004_s9 + $0x300] ss:$8 sps:$4 sm:$0xff]  }
 0x2db   : > { %1655 = vmatpush1.bf16.msra.mxu1 %v8218_v37  ;;  %v8263_v37 = vld [vmem:[%s11004_s9 + $0x3a0] ss:$8 sps:$4 sm:$0xff]  }
 0x2dc   : > { %1843 = vmatpush1.bf16.msra.mxu0 %v8221_v39  ;;  %1656 = vmatprep.subr.bf16.mxu1 %v8226_v40  ;;  %v8268_v39 = vld [vmem:[%s11004_s9 + $0x314] ss:$8 sps:$4 sm:$0xff]  }
 0x2dd   : > { %1844 = vmatprep.subr.bf16.mxu0 %v8229_v41  ;;  %v8271_v40 = vld [vmem:[%s11004_s9 + $0x3b4] ss:$8 sps:$4 sm:$0xff]   ;;  %v8266_v41 = vld [vmem:[%s11004_s9 + $0x310] ss:$8 sps:$4 sm:$0xff]  }
 0x2df   : > { %1657 = vmatpush1.bf16.msra.mxu1 %v8224_v42  ;;  %v8269_v42 = vld [vmem:[%s11004_s9 + $0x3b0] ss:$8 sps:$4 sm:$0xff]  }
 0x2e0   : > { %1845 = vmatpush1.bf16.msra.mxu0 %v8227_v43  ;;  %1658 = vmatprep.subr.bf16.mxu1 %v8232_v44  ;;  %v8274_v43 = vld [vmem:[%s11004_s9 + $0x324] ss:$8 sps:$4 sm:$0xff]  }
 0x2e1   : > { %1846 = vmatprep.subr.bf16.mxu0 %v8235_v47  ;;  %v8277_v44 = vld [vmem:[%s11004_s9 + $0x3c4] ss:$8 sps:$4 sm:$0xff]   ;;  %v8272_v47 = vld [vmem:[%s11004_s9 + $0x320] ss:$8 sps:$4 sm:$0xff]  }
 0x2e3   : > { %1659 = vmatpush1.bf16.msra.mxu1 %v8230_v48  ;;  %v8275_v48 = vld [vmem:[%s11004_s9 + $0x3c0] ss:$8 sps:$4 sm:$0xff]  }
 0x2e4   : > { %1847 = vmatpush1.bf16.msra.mxu0 %v8233_v49  ;;  %1660 = vmatprep.subr.bf16.mxu1 %v8238_v50  ;;  %v8280_v49 = vld [vmem:[%s11004_s9 + $0x334] ss:$8 sps:$4 sm:$0xff]  }
 0x2e5   : > { %1848 = vmatprep.subr.bf16.mxu0 %v8241_v51  ;;  %v8283_v50 = vld [vmem:[%s11004_s9 + $0x3d4] ss:$8 sps:$4 sm:$0xff]   ;;  %v8278_v51 = vld [vmem:[%s11004_s9 + $0x330] ss:$8 sps:$4 sm:$0xff]  }
 0x2e7   : > { %1661 = vmatpush1.bf16.msra.mxu1 %v8236_v52  ;;  %v8281_v52 = vld [vmem:[%s11004_s9 + $0x3d0] ss:$8 sps:$4 sm:$0xff]  }
 0x2e8   : > { %1849 = vmatpush1.bf16.msra.mxu0 %v8239_v53  ;;  %1662 = vmatprep.subr.bf16.mxu1 %v8244_v54  ;;  %v8286_v53 = vld [vmem:[%s11004_s9 + $0x344] ss:$8 sps:$4 sm:$0xff]  }
 0x2e9   : > { %1850 = vmatprep.subr.bf16.mxu0 %v8247_v57  ;;  %v8289_v54 = vld [vmem:[%s11004_s9 + $0x3e4] ss:$8 sps:$4 sm:$0xff]   ;;  %v8292_v57 = vld [vmem:[%s11004_s9 + $0x354] ss:$8 sps:$4 sm:$0xff]  }
 0x2eb   : > { %1663 = vmatpush1.bf16.msra.mxu1 %v8242_v55  ;;  %v8284_v55 = vld [vmem:[%s11004_s9 + $0x340] ss:$8 sps:$4 sm:$0xff]  }
 0x2ec   : > { %1851 = vmatpush1.bf16.msra.mxu0 %v8245_v56  ;;  %1664 = vmatprep.subr.bf16.mxu1 %v8250_v58  ;;  %v8287_v56 = vld [vmem:[%s11004_s9 + $0x3e0] ss:$8 sps:$4 sm:$0xff]   ;;  %v8290_v58 = vld [vmem:[%s11004_s9 + $0x350] ss:$8 sps:$4 sm:$0xff]  }
 0x2ed   : > { %7844 = vmatprep.subr.bf16.mxu0 %v8854_v10 }
 0x2ef   : > { %1665 = vmatpush1.bf16.msra.mxu1 %v8248_v59  ;;  %v8293_v59 = vld [vmem:[%s11004_s9 + $0x3f0] ss:$8 sps:$4 sm:$0xff]  }
 0x2f0   : > { %1666 = vmatprep.subr.bf16.mxu1 %v8253_v61  ;;  %v8298_v61 = vld [vmem:[%s11004_s9 + $0x364] ss:$8 sps:$4 sm:$0xff]  }
 0x2f3   : > { %1667 = vmatpush1.bf16.msra.mxu1 %v8251_v60  ;;  %v8295_v60 = vld [vmem:[%s11004_s9 + $0x3f4] ss:$8 sps:$4 sm:$0xff]  }
 0x2f4   : > { %7836 = vmatprep.subr.bf16.mxu1 %v8854_v10 }
 0x399   : > { %v1502_v62 = vpop.f32.mrb[12].mxu0 }
 0x39a   : > { %v1504_v63 = vpop.f32.mrb[13].mxu0 }
 0x39b   : > { %v1506_v0 = vpop.f32.mrb[14].mxu0 }
 0x39c   : > { %v1507_v1 = vpop.f32.mrb[15].mxu0  ;;  %v8301_v0 = vld [vmem:[%s11004_s9 + $0x374] ss:$8 sps:$4 sm:$0xff]  }
 0x3a1   : > { %v1318_v3 = vpop.f32.mrb[16].mxu1  ;;  %v1732_v5 = vpop.f32.mrb[16].mxu0 }
 0x3a2   : > { %v1325_v6 = vadd.f32 %v1318_v3, %v9241_v4  ;;  %v1738_v7 = vpack.c.bf16 %v1732_v5, %v1732_v5  ;;  %v1320_v9 = vpop.f32.mrb[17].mxu1  ;;  %v7834_v11 = vpop.f32.mrb[17].mxu0  ;;  %v607_v4 = vsel %vm606_vm8, 1.0, %v8854_v10 }
 0x3a3   : > { %v1326_v12 = vadd.f32 %v1320_v9, %v9244_v8  ;;  %v1735_v13 = vpop.f32.mrb[18].mxu0  ;;  %v1322_v14 = vpop.f32.mrb[18].mxu1  ;;  %v602_v8 = vadd.s32 4294967295, %v9045_v30  ;;  %v608_v20 = vpack.c.bf16 %v607_v4, %v607_v4 }
 0x3a4   : > { %v7835_v15 = vpop.f32.mrb[19].mxu0  ;;  %1869 = vmatmul.mubr.bf16.vlgmr.msra.gmra.mrb[20].mxu0 %v1738_v7  ;;  %v1323_v16 = vpop.f32.mrb[19].mxu1  ;;  %v9366_v17 = vadd.f32 %v1502_v62, %v1325_v6  ;;  %v8296_v62 = vld [vmem:[%s11004_s9 + $0x360] ss:$8 sps:$4 sm:$0xff]   ;;  %v613_v7 = vadd.s32 2, %v9045_v30 }
 0x3a5   : > { %7845 = vmatpush3.bf16.msra.mxu0 %v9054_v46  ;;  %7848 = vmatprep.mubr.msk.bf16.mxu0 %vm8855_vm0, %v8854_v10  ;;  %v9372_v18 = vadd.f32 %v1504_v63, %v1326_v12  ;;  %vm603_vm9 = vcmp.eq.s32.totalorder %v9048_v38, %v602_v8  ;;  %v8299_v63 = vld [vmem:[%s11004_s9 + $0x370] ss:$8 sps:$4 sm:$0xff]  }
 0x3a6   : > { %7846 = vmatprep.subr.bf16.mxu0 %v8854_v10  ;;  %v604_v31 = vsel %vm603_vm9, 1.0, %v8854_v10  ;;  %vm614_vm10 = vcmp.eq.s32.totalorder %v9048_v38, %v613_v7  ;;  %vm4478_vm9 = vcmask 1043456  }
 0x3a7   : > { %v605_v35 = vpack.c.bf16 %v604_v31, %v604_v31 }
 0x3a9   : > { %7847 = vmatpush3.bf16.msra.mxu0 %v9051_v45  ;;  %v1548_v21 = vpop.f32.mrb[20].mxu1 }
 0x3aa   : > { %v1554_v22 = vpack.c.bf16 %v1548_v21, %v1548_v21  ;;  %2204 = vmatprep.subr.bf16.mxu0 %v8256_v19  ;;  %v7826_v24 = vpop.f32.mrb[21].mxu1 }
 0x3ab   : > { %v1551_v26 = vpop.f32.mrb[22].mxu1 }
 0x3ac   : > { %1685 = vmatmul.mubr.bf16.vlgmr.msra.gmra.mrb[24].mxu1 %v1554_v22  ;;  %7849 = vmatmul.mubr.msk.bf16.vlgmr.msra.gmra.mrb[24].mxu0 %vm779_vm2, %v608_v20  ;;  %v7827_v29 = vpop.f32.mrb[23].mxu1 }
 0x3ad   : > { %7837 = vmatpush3.bf16.msra.mxu1 %v9054_v46  ;;  %7840 = vmatprep.mubr.msk.bf16.mxu1 %vm8855_vm0, %v8854_v10  ;;  %v8302_v29 = vld [vmem:[%s11004_s9 + $0x480] ss:$8 sps:$4 sm:$0xff]  }
 0x3ae   : > { %7838 = vmatprep.subr.bf16.mxu1 %v8854_v10  ;;  %2205 = vmatpush1.bf16.msra.mxu0 %v8254_v23  ;;  %v8304_v23 = vld [vmem:[%s11004_s9 + $0x484] ss:$8 sps:$4 sm:$0xff]  }
 0x3af   : > { %2206 = vmatprep.subr.bf16.mxu0 %v8259_v25  ;;  %2236 = vmatprep.mubr.bf16.mxu0 %v8856_v2 }
 0x3b1   : > { %7839 = vmatpush3.bf16.msra.mxu1 %v9051_v45 }
 0x3b2   : > { %2207 = vmatpush1.bf16.msra.mxu0 %v8257_v32  ;;  %2020 = vmatprep.subr.bf16.mxu1 %v8262_v33  ;;  %v8307_v32 = vld [vmem:[%s11004_s9 + $0x494] ss:$8 sps:$4 sm:$0xff]  }
 0x3b3   : > { %2208 = vmatprep.subr.bf16.mxu0 %v8265_v34 }
 0x3b4   : > { %7841 = vmatmul.mubr.msk.bf16.vlgmr.msra.gmra.mrb[28].mxu1 %vm779_vm2, %v605_v35 }
 0x3b5   : > { %2021 = vmatpush1.bf16.msra.mxu1 %v8260_v36  ;;  %2052 = vmatprep.mubr.bf16.mxu1 %v8856_v2  ;;  %v8305_v36 = vld [vmem:[%s11004_s9 + $0x490] ss:$8 sps:$4 sm:$0xff]  }
 0x3b6   : > { %2209 = vmatpush1.bf16.msra.mxu0 %v8263_v37  ;;  %2022 = vmatprep.subr.bf16.mxu1 %v8268_v39  ;;  %v8310_v37 = vld [vmem:[%s11004_s9 + $0x404] ss:$8 sps:$4 sm:$0xff]  }
 0x3b7   : > { %2210 = vmatprep.subr.bf16.mxu0 %v8271_v40  ;;  %v8313_v39 = vld [vmem:[%s11004_s9 + $0x4a4] ss:$8 sps:$4 sm:$0xff]  }
 0x3b9   : > { %2023 = vmatpush1.bf16.msra.mxu1 %v8266_v41  ;;  %v8308_v41 = vld [vmem:[%s11004_s9 + $0x400] ss:$8 sps:$4 sm:$0xff]  }
 0x3ba   : > { %2211 = vmatpush1.bf16.msra.mxu0 %v8269_v42  ;;  %2024 = vmatprep.subr.bf16.mxu1 %v8274_v43  ;;  %v8311_v42 = vld [vmem:[%s11004_s9 + $0x4a0] ss:$8 sps:$4 sm:$0xff]   ;;  %v8316_v43 = vld [vmem:[%s11004_s9 + $0x414] ss:$8 sps:$4 sm:$0xff]  }
 0x3bb   : > { %2212 = vmatprep.subr.bf16.mxu0 %v8277_v44  ;;  %v8319_v44 = vld [vmem:[%s11004_s9 + $0x4b4] ss:$8 sps:$4 sm:$0xff]  }
 0x3bd   : > { %2025 = vmatpush1.bf16.msra.mxu1 %v8272_v47  ;;  %v8314_v47 = vld [vmem:[%s11004_s9 + $0x410] ss:$8 sps:$4 sm:$0xff]  }
 0x3be   : > { %2213 = vmatpush1.bf16.msra.mxu0 %v8275_v48  ;;  %2026 = vmatprep.subr.bf16.mxu1 %v8280_v49  ;;  %v8317_v48 = vld [vmem:[%s11004_s9 + $0x4b0] ss:$8 sps:$4 sm:$0xff]   ;;  %v8322_v49 = vld [vmem:[%s11004_s9 + $0x424] ss:$8 sps:$4 sm:$0xff]  }
 0x3bf   : > { %2214 = vmatprep.subr.bf16.mxu0 %v8283_v50  ;;  %v8325_v50 = vld [vmem:[%s11004_s9 + $0x4c4] ss:$8 sps:$4 sm:$0xff]  }
 0x3c1   : > { %2027 = vmatpush1.bf16.msra.mxu1 %v8278_v51  ;;  %v8320_v51 = vld [vmem:[%s11004_s9 + $0x420] ss:$8 sps:$4 sm:$0xff]  }
 0x3c2   : > { %2215 = vmatpush1.bf16.msra.mxu0 %v8281_v52  ;;  %2028 = vmatprep.subr.bf16.mxu1 %v8286_v53  ;;  %v8323_v52 = vld [vmem:[%s11004_s9 + $0x4c0] ss:$8 sps:$4 sm:$0xff]   ;;  %v8328_v53 = vld [vmem:[%s11004_s9 + $0x434] ss:$8 sps:$4 sm:$0xff]  }
 0x3c3   : > { %2216 = vmatprep.subr.bf16.mxu0 %v8289_v54  ;;  %v8331_v54 = vld [vmem:[%s11004_s9 + $0x4d4] ss:$8 sps:$4 sm:$0xff]  }
 0x3c5   : > { %2029 = vmatpush1.bf16.msra.mxu1 %v8284_v55  ;;  %v8326_v55 = vld [vmem:[%s11004_s9 + $0x430] ss:$8 sps:$4 sm:$0xff]  }
 0x3c6   : > { %2217 = vmatpush1.bf16.msra.mxu0 %v8287_v56  ;;  %2030 = vmatprep.subr.bf16.mxu1 %v8292_v57  ;;  %v8329_v56 = vld [vmem:[%s11004_s9 + $0x4d0] ss:$8 sps:$4 sm:$0xff]   ;;  %v8334_v57 = vld [vmem:[%s11004_s9 + $0x444] ss:$8 sps:$4 sm:$0xff]  }
 0x3c7   : > { %2218 = vmatprep.subr.bf16.mxu0 %v8295_v60  ;;  %v8335_v60 = vld [vmem:[%s11004_s9 + $0x4e0] ss:$8 sps:$4 sm:$0xff]  }
 0x3c9   : > { %2031 = vmatpush1.bf16.msra.mxu1 %v8290_v58  ;;  %v8337_v58 = vld [vmem:[%s11004_s9 + $0x4e4] ss:$8 sps:$4 sm:$0xff]  }
 0x3ca   : > { %2219 = vmatpush1.bf16.msra.mxu0 %v8293_v59  ;;  %2032 = vmatprep.subr.bf16.mxu1 %v8298_v61  ;;  %v8332_v59 = vld [vmem:[%s11004_s9 + $0x440] ss:$8 sps:$4 sm:$0xff]   ;;  %v8340_v61 = vld [vmem:[%s11004_s9 + $0x454] ss:$8 sps:$4 sm:$0xff]  }
 0x3cb   : > { %7860 = vmatprep.subr.bf16.mxu0 %v8854_v10 }
 0x3cd   : > { %2033 = vmatpush1.bf16.msra.mxu1 %v8296_v62  ;;  %v8338_v62 = vld [vmem:[%s11004_s9 + $0x450] ss:$8 sps:$4 sm:$0xff]  }
 0x3ce   : > { %2034 = vmatprep.subr.bf16.mxu1 %v8301_v0  ;;  %v8343_v0 = vld [vmem:[%s11004_s9 + $0x4f4] ss:$8 sps:$4 sm:$0xff]  }
 0x3d1   : > { %2035 = vmatpush1.bf16.msra.mxu1 %v8299_v63  ;;  %v8341_v63 = vld [vmem:[%s11004_s9 + $0x4f0] ss:$8 sps:$4 sm:$0xff]  }
 0x3d2   : > { %7852 = vmatprep.subr.bf16.mxu1 %v8854_v10 }
 0x477   : > { %v1870_v1 = vpop.f32.mrb[20].mxu0 }
 0x478   : > { %v1872_v3 = vpop.f32.mrb[21].mxu0 }
 0x479   : > { %v1874_v5 = vpop.f32.mrb[22].mxu0 }
 0x47a   : > { %v1875_v6 = vpop.f32.mrb[23].mxu0  ;;  %v8347_v5 = vld [vmem:[%s11004_s9 + $0x470] ss:$8 sps:$4 sm:$0xff]  }
 0x47b   : > { %v8349_v6 = vld [vmem:[%s11004_s9 + $0x474] ss:$8 sps:$4 sm:$0xff]  }
 0x47f   : > { %v1686_v9 = vpop.f32.mrb[24].mxu1  ;;  %v2100_v11 = vpop.f32.mrb[24].mxu0 }
 0x480   : > { %v1693_v12 = vadd.f32 %v1686_v9, %v9366_v17  ;;  %v2106_v13 = vpack.c.bf16 %v2100_v11, %v2100_v11  ;;  %v1688_v14 = vpop.f32.mrb[25].mxu1  ;;  %v7850_v15 = vpop.f32.mrb[25].mxu0  ;;  %v615_v17 = vsel %vm614_vm10, 1.0, %v8854_v10  ;;  %vm4475_vm10 = vcmask 64512  }
 0x481   : > { %v1694_v16 = vadd.f32 %v1688_v14, %v9372_v18  ;;  %v2103_v4 = vpop.f32.mrb[26].mxu0  ;;  %v1690_v8 = vpop.f32.mrb[26].mxu1  ;;  %v609_v18 = vadd.s32 1, %v9045_v30  ;;  %v616_v24 = vpack.c.bf16 %v615_v17, %v615_v17 }
 0x482   : > { %v7851_v19 = vpop.f32.mrb[27].mxu0  ;;  %2237 = vmatmul.mubr.bf16.vlgmr.msra.gmra.mrb[28].mxu0 %v2106_v13  ;;  %v1691_v20 = vpop.f32.mrb[27].mxu1  ;;  %v9490_v21 = vadd.f32 %v1870_v1, %v1693_v12  ;;  %v8346_v1 = vld [vmem:[%s11004_s9 + $0x464] ss:$8 sps:$4 sm:$0xff]   ;;  %v621_v13 = vadd.s32 4, %v9045_v30 }
 0x483   : > { %7861 = vmatpush3.bf16.msra.mxu0 %v9054_v46  ;;  %7864 = vmatprep.mubr.msk.bf16.mxu0 %vm8855_vm0, %v8854_v10  ;;  %v9496_v22 = vadd.f32 %v1872_v3, %v1694_v16  ;;  %vm610_vm11 = vcmp.eq.s32.totalorder %v9048_v38, %v609_v18  ;;  %v8344_v3 = vld [vmem:[%s11004_s9 + $0x460] ss:$8 sps:$4 sm:$0xff]  }
 0x484   : > { %7862 = vmatprep.subr.bf16.mxu0 %v8854_v10  ;;  %v611_v35 = vsel %vm610_vm11, 1.0, %v8854_v10  ;;  %vm622_vm12 = vcmp.eq.s32.totalorder %v9048_v38, %v621_v13 }
 0x485   : > { %v612_v40 = vpack.c.bf16 %v611_v35, %v611_v35 }
 0x487   : > { %7863 = vmatpush3.bf16.msra.mxu0 %v9051_v45  ;;  %v1916_v25 = vpop.f32.mrb[28].mxu1 }
 0x488   : > { %v1922_v26 = vpack.c.bf16 %v1916_v25, %v1916_v25  ;;  %2572 = vmatprep.subr.bf16.mxu0 %v8304_v23  ;;  %v7842_v31 = vpop.f32.mrb[29].mxu1 }
 0x489   : > { %v1919_v33 = vpop.f32.mrb[30].mxu1 }
 0x48a   : > { %2053 = vmatmul.mubr.bf16.vlgmr.msra.gmra.mrb[32].mxu1 %v1922_v26  ;;  %7865 = vmatmul.mubr.msk.bf16.vlgmr.msra.gmra.mrb[32].mxu0 %vm779_vm2, %v616_v24  ;;  %v7843_v34 = vpop.f32.mrb[31].mxu1 }
 0x48b   : > { %7853 = vmatpush3.bf16.msra.mxu1 %v9054_v46  ;;  %7856 = vmatprep.mubr.msk.bf16.mxu1 %vm8855_vm0, %v8854_v10  ;;  %v8350_v34 = vld [vmem:[%s11004_s9 + $0x580] ss:$8 sps:$4 sm:$0xff]  }
 0x48c   : > { %7854 = vmatprep.subr.bf16.mxu1 %v8854_v10  ;;  %2573 = vmatpush1.bf16.msra.mxu0 %v8302_v29  ;;  %v8352_v29 = vld [vmem:[%s11004_s9 + $0x584] ss:$8 sps:$4 sm:$0xff]  }
 0x48d   : > { %2574 = vmatprep.subr.bf16.mxu0 %v8307_v32  ;;  %2604 = vmatprep.mubr.bf16.mxu0 %v8856_v2 }
 0x48f   : > { %7855 = vmatpush3.bf16.msra.mxu1 %v9051_v45 }
 0x490   : > { %2575 = vmatpush1.bf16.msra.mxu0 %v8305_v36  ;;  %2388 = vmatprep.subr.bf16.mxu1 %v8310_v37  ;;  %v8355_v36 = vld [vmem:[%s11004_s9 + $0x594] ss:$8 sps:$4 sm:$0xff]  }
 0x491   : > { %2576 = vmatprep.subr.bf16.mxu0 %v8313_v39 }
 0x492   : > { %7857 = vmatmul.mubr.msk.bf16.vlgmr.msra.gmra.mrb[36].mxu1 %vm779_vm2, %v612_v40 }
 0x493   : > { %2389 = vmatpush1.bf16.msra.mxu1 %v8308_v41  ;;  %2420 = vmatprep.mubr.bf16.mxu1 %v8856_v2  ;;  %v8353_v41 = vld [vmem:[%s11004_s9 + $0x590] ss:$8 sps:$4 sm:$0xff]  }
 0x494   : > { %2577 = vmatpush1.bf16.msra.mxu0 %v8311_v42  ;;  %2390 = vmatprep.subr.bf16.mxu1 %v8316_v43  ;;  %v8358_v42 = vld [vmem:[%s11004_s9 + $0x504] ss:$8 sps:$4 sm:$0xff]  }
 0x495   : > { %2578 = vmatprep.subr.bf16.mxu0 %v8319_v44  ;;  %v8361_v43 = vld [vmem:[%s11004_s9 + $0x5a4] ss:$8 sps:$4 sm:$0xff]  }
 0x497   : > { %2391 = vmatpush1.bf16.msra.mxu1 %v8314_v47  ;;  %v8356_v47 = vld [vmem:[%s11004_s9 + $0x500] ss:$8 sps:$4 sm:$0xff]  }
 0x498   : > { %2579 = vmatpush1.bf16.msra.mxu0 %v8317_v48  ;;  %2392 = vmatprep.subr.bf16.mxu1 %v8322_v49  ;;  %v8359_v48 = vld [vmem:[%s11004_s9 + $0x5a0] ss:$8 sps:$4 sm:$0xff]   ;;  %v8364_v49 = vld [vmem:[%s11004_s9 + $0x514] ss:$8 sps:$4 sm:$0xff]  }
 0x499   : > { %2580 = vmatprep.subr.bf16.mxu0 %v8325_v50  ;;  %v8367_v50 = vld [vmem:[%s11004_s9 + $0x5b4] ss:$8 sps:$4 sm:$0xff]  }
 0x49b   : > { %2393 = vmatpush1.bf16.msra.mxu1 %v8320_v51  ;;  %v8362_v51 = vld [vmem:[%s11004_s9 + $0x510] ss:$8 sps:$4 sm:$0xff]  }
 0x49c   : > { %2581 = vmatpush1.bf16.msra.mxu0 %v8323_v52  ;;  %2394 = vmatprep.subr.bf16.mxu1 %v8328_v53  ;;  %v8365_v52 = vld [vmem:[%s11004_s9 + $0x5b0] ss:$8 sps:$4 sm:$0xff]   ;;  %v8370_v53 = vld [vmem:[%s11004_s9 + $0x524] ss:$8 sps:$4 sm:$0xff]  }
 0x49d   : > { %2582 = vmatprep.subr.bf16.mxu0 %v8331_v54  ;;  %v8373_v54 = vld [vmem:[%s11004_s9 + $0x5c4] ss:$8 sps:$4 sm:$0xff]  }
 0x49f   : > { %2395 = vmatpush1.bf16.msra.mxu1 %v8326_v55  ;;  %v8368_v55 = vld [vmem:[%s11004_s9 + $0x520] ss:$8 sps:$4 sm:$0xff]  }
 0x4a0   : > { %2583 = vmatpush1.bf16.msra.mxu0 %v8329_v56  ;;  %2396 = vmatprep.subr.bf16.mxu1 %v8334_v57  ;;  %v8371_v56 = vld [vmem:[%s11004_s9 + $0x5c0] ss:$8 sps:$4 sm:$0xff]   ;;  %v8376_v57 = vld [vmem:[%s11004_s9 + $0x534] ss:$8 sps:$4 sm:$0xff]  }
 0x4a1   : > { %2584 = vmatprep.subr.bf16.mxu0 %v8337_v58  ;;  %v8379_v58 = vld [vmem:[%s11004_s9 + $0x5d4] ss:$8 sps:$4 sm:$0xff]  }
 0x4a3   : > { %2397 = vmatpush1.bf16.msra.mxu1 %v8332_v59  ;;  %v8374_v59 = vld [vmem:[%s11004_s9 + $0x530] ss:$8 sps:$4 sm:$0xff]  }
 0x4a4   : > { %2585 = vmatpush1.bf16.msra.mxu0 %v8335_v60  ;;  %2398 = vmatprep.subr.bf16.mxu1 %v8340_v61  ;;  %v8377_v60 = vld [vmem:[%s11004_s9 + $0x5d0] ss:$8 sps:$4 sm:$0xff]   ;;  %v8382_v61 = vld [vmem:[%s11004_s9 + $0x544] ss:$8 sps:$4 sm:$0xff]  }
 0x4a5   : > { %2586 = vmatprep.subr.bf16.mxu0 %v8343_v0  ;;  %v8383_v0 = vld [vmem:[%s11004_s9 + $0x5e0] ss:$8 sps:$4 sm:$0xff]  }
 0x4a7   : > { %2399 = vmatpush1.bf16.msra.mxu1 %v8338_v62  ;;  %v8385_v62 = vld [vmem:[%s11004_s9 + $0x5e4] ss:$8 sps:$4 sm:$0xff]  }
 0x4a8   : > { %2587 = vmatpush1.bf16.msra.mxu0 %v8341_v63  ;;  %2400 = vmatprep.subr.bf16.mxu1 %v8346_v1  ;;  %v8380_v63 = vld [vmem:[%s11004_s9 + $0x540] ss:$8 sps:$4 sm:$0xff]   ;;  %v8388_v1 = vld [vmem:[%s11004_s9 + $0x554] ss:$8 sps:$4 sm:$0xff]  }
 0x4a9   : > { %7876 = vmatprep.subr.bf16.mxu0 %v8854_v10 }
 0x4ab   : > { %2401 = vmatpush1.bf16.msra.mxu1 %v8344_v3  ;;  %v8386_v3 = vld [vmem:[%s11004_s9 + $0x550] ss:$8 sps:$4 sm:$0xff]  }
 0x4ac   : > { %2402 = vmatprep.subr.bf16.mxu1 %v8349_v6  ;;  %v8391_v6 = vld [vmem:[%s11004_s9 + $0x5f4] ss:$8 sps:$4 sm:$0xff]  }
 0x4af   : > { %2403 = vmatpush1.bf16.msra.mxu1 %v8347_v5  ;;  %v8389_v5 = vld [vmem:[%s11004_s9 + $0x5f0] ss:$8 sps:$4 sm:$0xff]  }
 0x4b0   : > { %7868 = vmatprep.subr.bf16.mxu1 %v8854_v10 }
 0x555   : > { %v2238_v7 = vpop.f32.mrb[28].mxu0 }
 0x556   : > { %v2240_v9 = vpop.f32.mrb[29].mxu0 }
 0x557   : > { %v2242_v11 = vpop.f32.mrb[30].mxu0 }
 0x558   : > { %v2243_v12 = vpop.f32.mrb[31].mxu0  ;;  %v8395_v11 = vld [vmem:[%s11004_s9 + $0x570] ss:$8 sps:$4 sm:$0xff]  }
 0x559   : > { %v8397_v12 = vld [vmem:[%s11004_s9 + $0x574] ss:$8 sps:$4 sm:$0xff]  }
 0x55d   : > { %v2054_v14 = vpop.f32.mrb[32].mxu1  ;;  %v2468_v15 = vpop.f32.mrb[32].mxu0 }
 0x55e   : > { %v2061_v16 = vadd.f32 %v2054_v14, %v9490_v21  ;;  %v2474_v4 = vpack.c.bf16 %v2468_v15, %v2468_v15  ;;  %v2056_v8 = vpop.f32.mrb[33].mxu1  ;;  %v7866_v19 = vpop.f32.mrb[33].mxu0  ;;  %v623_v21 = vsel %vm622_vm12, 1.0, %v8854_v10 }
 0x55f   : > { %v2062_v20 = vadd.f32 %v2056_v8, %v9496_v22  ;;  %v2471_v17 = vpop.f32.mrb[34].mxu0  ;;  %v2058_v18 = vpop.f32.mrb[34].mxu1  ;;  %v617_v22 = vadd.s32 3, %v9045_v30  ;;  %v624_v31 = vpack.c.bf16 %v623_v21, %v623_v21 }
 0x560   : > { %v7867_v23 = vpop.f32.mrb[35].mxu0  ;;  %2605 = vmatmul.mubr.bf16.vlgmr.msra.gmra.mrb[36].mxu0 %v2474_v4  ;;  %v2059_v24 = vpop.f32.mrb[35].mxu1  ;;  %v9614_v25 = vadd.f32 %v2238_v7, %v2061_v16  ;;  %v8394_v7 = vld [vmem:[%s11004_s9 + $0x564] ss:$8 sps:$4 sm:$0xff]   ;;  %v629_v4 = vadd.s32 6, %v9045_v30 }
 0x561   : > { %7877 = vmatpush3.bf16.msra.mxu0 %v9054_v46  ;;  %7880 = vmatprep.mubr.msk.bf16.mxu0 %vm8855_vm0, %v8854_v10  ;;  %v9620_v26 = vadd.f32 %v2240_v9, %v2062_v20  ;;  %vm618_vm13 = vcmp.eq.s32.totalorder %v9048_v38, %v617_v22  ;;  %v8392_v9 = vld [vmem:[%s11004_s9 + $0x560] ss:$8 sps:$4 sm:$0xff]  }
 0x562   : > { %7878 = vmatprep.subr.bf16.mxu0 %v8854_v10  ;;  %v619_v40 = vsel %vm618_vm13, 1.0, %v8854_v10  ;;  %vm630_vm14 = vcmp.eq.s32.totalorder %v9048_v38, %v629_v4  ;;  %v550_v4 = vadd.s32 8, %v9039_v28 }
 0x563   : > { %v620_v44 = vpack.c.bf16 %v619_v40, %v619_v40 }
 0x565   : > { %7879 = vmatpush3.bf16.msra.mxu0 %v9051_v45  ;;  %v2284_v32 = vpop.f32.mrb[36].mxu1 }
 0x566   : > { %v2290_v33 = vpack.c.bf16 %v2284_v32, %v2284_v32  ;;  %2940 = vmatprep.subr.bf16.mxu0 %v8352_v29  ;;  %v7858_v35 = vpop.f32.mrb[37].mxu1 }
 0x567   : > { %v2287_v37 = vpop.f32.mrb[38].mxu1 }
 0x568   : > { %2421 = vmatmul.mubr.bf16.vlgmr.msra.gmra.mrb[40].mxu1 %v2290_v33  ;;  %7881 = vmatmul.mubr.msk.bf16.vlgmr.msra.gmra.mrb[40].mxu0 %vm779_vm2, %v624_v31  ;;  %v7859_v39 = vpop.f32.mrb[39].mxu1 }
 0x569   : > { %7869 = vmatpush3.bf16.msra.mxu1 %v9054_v46  ;;  %7872 = vmatprep.mubr.msk.bf16.mxu1 %vm8855_vm0, %v8854_v10  ;;  %v8398_v39 = vld [vmem:[%s11004_s9 + $0x680] ss:$8 sps:$4 sm:$0xff]  }
 0x56a   : > { %7870 = vmatprep.subr.bf16.mxu1 %v8854_v10  ;;  %2941 = vmatpush1.bf16.msra.mxu0 %v8350_v34  ;;  %v8400_v34 = vld [vmem:[%s11004_s9 + $0x684] ss:$8 sps:$4 sm:$0xff]  }
 0x56b   : > { %2942 = vmatprep.subr.bf16.mxu0 %v8355_v36  ;;  %2972 = vmatprep.mubr.bf16.mxu0 %v8856_v2 }
 0x56d   : > { %7871 = vmatpush3.bf16.msra.mxu1 %v9051_v45 }
 0x56e   : > { %2943 = vmatpush1.bf16.msra.mxu0 %v8353_v41  ;;  %2756 = vmatprep.subr.bf16.mxu1 %v8358_v42  ;;  %v8403_v41 = vld [vmem:[%s11004_s9 + $0x694] ss:$8 sps:$4 sm:$0xff]  }
 0x56f   : > { %2944 = vmatprep.subr.bf16.mxu0 %v8361_v43 }
 0x570   : > { %7873 = vmatmul.mubr.msk.bf16.vlgmr.msra.gmra.mrb[44].mxu1 %vm779_vm2, %v620_v44 }
 0x571   : > { %2757 = vmatpush1.bf16.msra.mxu1 %v8356_v47  ;;  %2788 = vmatprep.mubr.bf16.mxu1 %v8856_v2  ;;  %v8401_v47 = vld [vmem:[%s11004_s9 + $0x690] ss:$8 sps:$4 sm:$0xff]  }
 0x572   : > { %2945 = vmatpush1.bf16.msra.mxu0 %v8359_v48  ;;  %2758 = vmatprep.subr.bf16.mxu1 %v8364_v49  ;;  %v8406_v48 = vld [vmem:[%s11004_s9 + $0x604] ss:$8 sps:$4 sm:$0xff]  }
 0x573   : > { %2946 = vmatprep.subr.bf16.mxu0 %v8367_v50  ;;  %v8409_v49 = vld [vmem:[%s11004_s9 + $0x6a4] ss:$8 sps:$4 sm:$0xff]  }
 0x575   : > { %2759 = vmatpush1.bf16.msra.mxu1 %v8362_v51  ;;  %v8404_v51 = vld [vmem:[%s11004_s9 + $0x600] ss:$8 sps:$4 sm:$0xff]  }
 0x576   : > { %2947 = vmatpush1.bf16.msra.mxu0 %v8365_v52  ;;  %2760 = vmatprep.subr.bf16.mxu1 %v8370_v53  ;;  %v8407_v52 = vld [vmem:[%s11004_s9 + $0x6a0] ss:$8 sps:$4 sm:$0xff]   ;;  %v8412_v53 = vld [vmem:[%s11004_s9 + $0x614] ss:$8 sps:$4 sm:$0xff]  }
 0x577   : > { %2948 = vmatprep.subr.bf16.mxu0 %v8373_v54  ;;  %v8415_v54 = vld [vmem:[%s11004_s9 + $0x6b4] ss:$8 sps:$4 sm:$0xff]  }
 0x579   : > { %2761 = vmatpush1.bf16.msra.mxu1 %v8368_v55  ;;  %v8410_v55 = vld [vmem:[%s11004_s9 + $0x610] ss:$8 sps:$4 sm:$0xff]  }
 0x57a   : > { %2949 = vmatpush1.bf16.msra.mxu0 %v8371_v56  ;;  %2762 = vmatprep.subr.bf16.mxu1 %v8376_v57  ;;  %v8413_v56 = vld [vmem:[%s11004_s9 + $0x6b0] ss:$8 sps:$4 sm:$0xff]   ;;  %v8418_v57 = vld [vmem:[%s11004_s9 + $0x624] ss:$8 sps:$4 sm:$0xff]  }
 0x57b   : > { %2950 = vmatprep.subr.bf16.mxu0 %v8379_v58  ;;  %v8421_v58 = vld [vmem:[%s11004_s9 + $0x6c4] ss:$8 sps:$4 sm:$0xff]  }
 0x57d   : > { %2763 = vmatpush1.bf16.msra.mxu1 %v8374_v59  ;;  %v8416_v59 = vld [vmem:[%s11004_s9 + $0x620] ss:$8 sps:$4 sm:$0xff]  }
 0x57e   : > { %2951 = vmatpush1.bf16.msra.mxu0 %v8377_v60  ;;  %2764 = vmatprep.subr.bf16.mxu1 %v8382_v61  ;;  %v8419_v60 = vld [vmem:[%s11004_s9 + $0x6c0] ss:$8 sps:$4 sm:$0xff]   ;;  %v8424_v61 = vld [vmem:[%s11004_s9 + $0x634] ss:$8 sps:$4 sm:$0xff]  }
 0x57f   : > { %2952 = vmatprep.subr.bf16.mxu0 %v8385_v62  ;;  %v8427_v62 = vld [vmem:[%s11004_s9 + $0x6d4] ss:$8 sps:$4 sm:$0xff]  }
 0x581   : > { %2765 = vmatpush1.bf16.msra.mxu1 %v8380_v63  ;;  %v8422_v63 = vld [vmem:[%s11004_s9 + $0x630] ss:$8 sps:$4 sm:$0xff]  }
 0x582   : > { %2953 = vmatpush1.bf16.msra.mxu0 %v8383_v0  ;;  %2766 = vmatprep.subr.bf16.mxu1 %v8388_v1  ;;  %v8425_v0 = vld [vmem:[%s11004_s9 + $0x6d0] ss:$8 sps:$4 sm:$0xff]   ;;  %v8430_v1 = vld [vmem:[%s11004_s9 + $0x644] ss:$8 sps:$4 sm:$0xff]  }
 0x583   : > { %2954 = vmatprep.subr.bf16.mxu0 %v8391_v6  ;;  %v8431_v6 = vld [vmem:[%s11004_s9 + $0x6e0] ss:$8 sps:$4 sm:$0xff]  }
 0x585   : > { %2767 = vmatpush1.bf16.msra.mxu1 %v8386_v3  ;;  %v8433_v3 = vld [vmem:[%s11004_s9 + $0x6e4] ss:$8 sps:$4 sm:$0xff]  }
 0x586   : > { %2955 = vmatpush1.bf16.msra.mxu0 %v8389_v5  ;;  %2768 = vmatprep.subr.bf16.mxu1 %v8394_v7  ;;  %v8428_v5 = vld [vmem:[%s11004_s9 + $0x640] ss:$8 sps:$4 sm:$0xff]   ;;  %v8436_v7 = vld [vmem:[%s11004_s9 + $0x654] ss:$8 sps:$4 sm:$0xff]  }
 0x587   : > { %7892 = vmatprep.subr.bf16.mxu0 %v8854_v10 }
 0x589   : > { %2769 = vmatpush1.bf16.msra.mxu1 %v8392_v9  ;;  %v8434_v9 = vld [vmem:[%s11004_s9 + $0x650] ss:$8 sps:$4 sm:$0xff]  }
 0x58a   : > { %2770 = vmatprep.subr.bf16.mxu1 %v8397_v12  ;;  %v8439_v12 = vld [vmem:[%s11004_s9 + $0x6f4] ss:$8 sps:$4 sm:$0xff]  }
 0x58d   : > { %2771 = vmatpush1.bf16.msra.mxu1 %v8395_v11  ;;  %v8437_v11 = vld [vmem:[%s11004_s9 + $0x6f0] ss:$8 sps:$4 sm:$0xff]  }
 0x58e   : > { %7884 = vmatprep.subr.bf16.mxu1 %v8854_v10 }
 0x633   : > { %v2606_v13 = vpop.f32.mrb[36].mxu0 }
 0x634   : > { %v2608_v14 = vpop.f32.mrb[37].mxu0 }
 0x635   : > { %v2610_v15 = vpop.f32.mrb[38].mxu0 }
 0x636   : > { %v2611_v16 = vpop.f32.mrb[39].mxu0  ;;  %v8443_v15 = vld [vmem:[%s11004_s9 + $0x670] ss:$8 sps:$4 sm:$0xff]  }
 0x637   : > { %v8445_v16 = vld [vmem:[%s11004_s9 + $0x674] ss:$8 sps:$4 sm:$0xff]  }
 0x63b   : > { %v2422_v8 = vpop.f32.mrb[40].mxu1  ;;  %v2836_v19 = vpop.f32.mrb[40].mxu0 }
 0x63c   : > { %v2429_v20 = vadd.f32 %v2422_v8, %v9614_v25  ;;  %v2842_v17 = vpack.c.bf16 %v2836_v19, %v2836_v19  ;;  %v2424_v18 = vpop.f32.mrb[41].mxu1  ;;  %v7882_v23 = vpop.f32.mrb[41].mxu0  ;;  %v631_v25 = vsel %vm630_vm14, 1.0, %v8854_v10 }
 0x63d   : > { %v2430_v24 = vadd.f32 %v2424_v18, %v9620_v26  ;;  %v2839_v21 = vpop.f32.mrb[42].mxu0  ;;  %v2426_v22 = vpop.f32.mrb[42].mxu1  ;;  %v625_v26 = vadd.s32 5, %v9045_v30  ;;  %v632_v35 = vpack.c.bf16 %v631_v25, %v631_v25 }
 0x63e   : > { %v7883_v29 = vpop.f32.mrb[43].mxu0  ;;  %2973 = vmatmul.mubr.bf16.vlgmr.msra.gmra.mrb[44].mxu0 %v2842_v17  ;;  %v2427_v31 = vpop.f32.mrb[43].mxu1  ;;  %v9738_v32 = vadd.f32 %v2606_v13, %v2429_v20  ;;  %v8442_v13 = vld [vmem:[%s11004_s9 + $0x664] ss:$8 sps:$4 sm:$0xff]   ;;  %v9860_v20 = vmul.u32 2, %v9039_v28  ;;  %v9862_v17 = vmul.u32 2, %v550_v4 }
 0x63f   : > { %7893 = vmatpush3.bf16.msra.mxu0 %v9054_v46  ;;  %7896 = vmatprep.mubr.msk.bf16.mxu0 %vm8855_vm0, %v8854_v10  ;;  %v9744_v33 = vadd.f32 %v2608_v14, %v2430_v24  ;;  %vm626_vm15 = vcmp.eq.s32.totalorder %v9048_v38, %v625_v26  ;;  %v8440_v14 = vld [vmem:[%s11004_s9 + $0x660] ss:$8 sps:$4 sm:$0xff]   ;;  %v8476_v4 = vld [vmem:[%s11004_s9 + $0x774] ss:$8 sps:$4 sm:$0xff]  }
 0x640   : > { %7894 = vmatprep.subr.bf16.mxu0 %v8854_v10  ;;  %v627_v44 = vsel %vm626_vm15, 1.0, %v8854_v10  ;;  %v555_v24 = vadd.s32 4294967295, %v9860_v20  ;;  %v556_v21 = vadd.s32 4294967295, %v9862_v17  ;;  %vm562_vm5 = vcmp.eq.s32.totalorder %v9048_v38, %v9860_v20 }
 0x641   : > { %v628_v50 = vpack.c.bf16 %v627_v44, %v627_v44  ;;  %vm563_vm6 = vcmp.eq.s32.totalorder %v9048_v38, %v9862_v17 }
 0x642   : > { %vm557_vm1 = vcmp.eq.s32.totalorder %v9048_v38, %v555_v24  ;;  %vm558_vm3 = vcmp.eq.s32.totalorder %v9048_v38, %v556_v21 }
 0x643   : > { %7895 = vmatpush3.bf16.msra.mxu0 %v9051_v45  ;;  %v2652_v36 = vpop.f32.mrb[44].mxu1 }
 0x644   : > { %v2658_v37 = vpack.c.bf16 %v2652_v36, %v2652_v36  ;;  %3308 = vmatprep.subr.bf16.mxu0 %v8400_v34  ;;  %v7874_v40 = vpop.f32.mrb[45].mxu1 }
 0x645   : > { %v2655_v42 = vpop.f32.mrb[46].mxu1 }
 0x646   : > { %2789 = vmatmul.mubr.bf16.vlgmr.msra.gmra.mrb[48].mxu1 %v2658_v37  ;;  %7897 = vmatmul.mubr.msk.bf16.vlgmr.msra.gmra.mrb[48].mxu0 %vm779_vm2, %v632_v35  ;;  %v7875_v43 = vpop.f32.mrb[47].mxu1  ;;  %v560_v42 = vsel %vm558_vm3, 1.0, %v8854_v10 }
 0x647   : > { %7885 = vmatpush3.bf16.msra.mxu1 %v9054_v46  ;;  %7888 = vmatprep.mubr.msk.bf16.mxu1 %vm8855_vm0, %v8854_v10 }
 0x648   : > { %7886 = vmatprep.subr.bf16.mxu1 %v8854_v10  ;;  %3309 = vmatpush1.bf16.msra.mxu0 %v8398_v39 }
 0x649   : > { %3310 = vmatprep.subr.bf16.mxu0 %v8403_v41  ;;  %3340 = vmatprep.mubr.bf16.mxu0 %v8856_v2 }
 0x64b   : > { %7887 = vmatpush3.bf16.msra.mxu1 %v9051_v45 }
 0x64c   : > { %3311 = vmatpush1.bf16.msra.mxu0 %v8401_v47  ;;  %3124 = vmatprep.subr.bf16.mxu1 %v8406_v48 }
 0x64d   : > { %3312 = vmatprep.subr.bf16.mxu0 %v8409_v49 }
 0x64e   : > { %7889 = vmatmul.mubr.msk.bf16.vlgmr.msra.gmra.mrb[52].mxu1 %vm779_vm2, %v628_v50 }
 0x64f   : > { %3125 = vmatpush1.bf16.msra.mxu1 %v8404_v51  ;;  %3156 = vmatprep.mubr.bf16.mxu1 %v8856_v2 }
 0x650   : > { %3313 = vmatpush1.bf16.msra.mxu0 %v8407_v52  ;;  %3126 = vmatprep.subr.bf16.mxu1 %v8412_v53  ;;  %v9896_v52 = vsel %vm562_vm5, 1.0, %v8854_v10  ;;  %v565_v53 = vsel %vm563_vm6, 1.0, %v8854_v10 }
 0x651   : > { %3314 = vmatprep.subr.bf16.mxu0 %v8415_v54  ;;  %v8448_v54 = vld [vmem:[%s11004_s9 + $0x704] ss:$8 sps:$4 sm:$0xff]  }
 0x653   : > { %3127 = vmatpush1.bf16.msra.mxu1 %v8410_v55 }
 0x654   : > { %3315 = vmatpush1.bf16.msra.mxu0 %v8413_v56  ;;  %3128 = vmatprep.subr.bf16.mxu1 %v8418_v57  ;;  %v566_v56 = vpack.c.bf16 %v565_v53, %v9896_v52  ;;  %v8446_v57 = vld [vmem:[%s11004_s9 + $0x700] ss:$8 sps:$4 sm:$0xff]  }
 0x655   : > { %3316 = vmatprep.subr.bf16.mxu0 %v8421_v58  ;;  %v8449_v58 = vld [vmem:[%s10998_s3 + $0x40] sm:$0xff]  }
 0x657   : > { %3129 = vmatpush1.bf16.msra.mxu1 %v8416_v59  ;;  %v8452_v59 = vld [vmem:[%s11004_s9 + $0x714] ss:$8 sps:$4 sm:$0xff]  }
 0x658   : > { %3317 = vmatpush1.bf16.msra.mxu0 %v8419_v60  ;;  %3130 = vmatprep.subr.bf16.mxu1 %v8424_v61  ;;  %v8450_v60 = vld [vmem:[%s11004_s9 + $0x710] ss:$8 sps:$4 sm:$0xff]   ;;  %v8453_v61 = vld [vmem:[%s10998_s3 + $0x48] sm:$0xff]  }
 0x659   : > { %3318 = vmatprep.subr.bf16.mxu0 %v8427_v62  ;;  %v8456_v62 = vld [vmem:[%s11004_s9 + $0x724] ss:$8 sps:$4 sm:$0xff]  }
 0x65b   : > { %3131 = vmatpush1.bf16.msra.mxu1 %v8422_v63  ;;  %v8454_v63 = vld [vmem:[%s11004_s9 + $0x720] ss:$8 sps:$4 sm:$0xff]  }
 0x65c   : > { %3319 = vmatpush1.bf16.msra.mxu0 %v8425_v0  ;;  %3132 = vmatprep.subr.bf16.mxu1 %v8430_v1  ;;  %v8457_v0 = vld [vmem:[%s10998_s3 + $0x50] sm:$0xff]  }
 0x65d   : > { %3320 = vmatprep.subr.bf16.mxu0 %v8433_v3  ;;  %v8460_v1 = vld [vmem:[%s11004_s9 + $0x734] ss:$8 sps:$4 sm:$0xff]   ;;  %v8458_v3 = vld [vmem:[%s11004_s9 + $0x730] ss:$8 sps:$4 sm:$0xff]  }
 0x65f   : > { %3133 = vmatpush1.bf16.msra.mxu1 %v8428_v5  ;;  %v8461_v5 = vld [vmem:[%s10998_s3 + $0x58] sm:$0xff]  }
 0x660   : > { %3321 = vmatpush1.bf16.msra.mxu0 %v8431_v6  ;;  %3134 = vmatprep.subr.bf16.mxu1 %v8436_v7  ;;  %v8464_v6 = vld [vmem:[%s11004_s9 + $0x744] ss:$8 sps:$4 sm:$0xff]   ;;  %v8462_v7 = vld [vmem:[%s11004_s9 + $0x740] ss:$8 sps:$4 sm:$0xff]  }
 0x661   : > { %3322 = vmatprep.subr.bf16.mxu0 %v8439_v12  ;;  %v8466_v12 = vld [vmem:[%s11004_s9 + $0x750] ss:$8 sps:$4 sm:$0xff]  }
 0x663   : > { %3135 = vmatpush1.bf16.msra.mxu1 %v8434_v9  ;;  %v8465_v9 = vld [vmem:[%s10998_s3 + $0x60] sm:$0xff]  }
 0x664   : > { %3323 = vmatpush1.bf16.msra.mxu0 %v8437_v11  ;;  %3136 = vmatprep.subr.bf16.mxu1 %v8442_v13  ;;  %v8468_v11 = vld [vmem:[%s11004_s9 + $0x754] ss:$8 sps:$4 sm:$0xff]   ;;  %v8469_v13 = vld [vmem:[%s10998_s3 + $0x68] sm:$0xff]  }
 0x665   : > { %7908 = vmatprep.subr.bf16.mxu0 %v8854_v10 }
 0x667   : > { %3137 = vmatpush1.bf16.msra.mxu1 %v8440_v14  ;;  %v8472_v14 = vld [vmem:[%s11004_s9 + $0x764] ss:$8 sps:$4 sm:$0xff]  }
 0x668   : > { %3138 = vmatprep.subr.bf16.mxu1 %v8445_v16  ;;  %v8473_v16 = vld [vmem:[%s10998_s3 + $0x70] sm:$0xff]  }
 0x66b   : > { %3139 = vmatpush1.bf16.msra.mxu1 %v8443_v15  ;;  %v8470_v15 = vld [vmem:[%s11004_s9 + $0x760] ss:$8 sps:$4 sm:$0xff]  }
 0x66c   : > { %7900 = vmatprep.subr.bf16.mxu1 %v8854_v10 }
 0x711   : > { %v2974_v8 = vpop.f32.mrb[44].mxu0 }
 0x712   : > { %v2976_v19 = vpop.f32.mrb[45].mxu0 }
 0x713   : > { %v2978_v18 = vpop.f32.mrb[46].mxu0 }
 0x714   : > { %v2979_v23 = vpop.f32.mrb[47].mxu0 }
 0x719   : > { %v2790_v22 = vpop.f32.mrb[48].mxu1  ;;  %v3204_v29 = vpop.f32.mrb[48].mxu0 }
 0x71a   : > { %v2797_v31 = vadd.f32 %v2790_v22, %v9738_v32  ;;  %v3210_v25 = vpack.c.bf16 %v3204_v29, %v3204_v29  ;;  %v2792_v26 = vpop.f32.mrb[49].mxu1  ;;  %v7898_v34 = vpop.f32.mrb[49].mxu0  ;;  %v9876_v32 = vsel %vm557_vm1, 1.0, %v8854_v10 }
 0x71b   : > { %v2798_v35 = vadd.f32 %v2792_v26, %v9744_v33  ;;  %v3207_v36 = vpop.f32.mrb[50].mxu0  ;;  %v2794_v37 = vpop.f32.mrb[50].mxu1  ;;  %v633_v33 = vadd.s32 7, %v9045_v30  ;;  %v561_v44 = vpack.c.bf16 %v560_v42, %v9876_v32 }
 0x71c   : > { %v7899_v39 = vpop.f32.mrb[51].mxu0  ;;  %3341 = vmatmul.mubr.bf16.vlgmr.msra.gmra.mrb[52].mxu0 %v3210_v25  ;;  %v2795_v40 = vpop.f32.mrb[51].mxu1  ;;  %v9870_v41 = vadd.f32 %v2974_v8, %v2797_v31  ;;  %v8474_v8 = vld [vmem:[%s11004_s9 + $0x770] ss:$8 sps:$4 sm:$0xff]  }
 0x71d   : > { %7909 = vmatpush3.bf16.msra.mxu0 %v9054_v46  ;;  %7912 = vmatprep.mubr.msk.bf16.mxu0 %vm8855_vm0, %v8854_v10  ;;  %v9879_v43 = vadd.f32 %v2976_v19, %v2798_v35  ;;  %vm634_vm4 = vcmp.eq.s32.totalorder %v9048_v38, %v633_v33  ;;  %v8477_v19 = vld [vmem:[%s10998_s3 + $0x78] sm:$0xff]  }
 0x71e   : > { %7910 = vmatprep.subr.bf16.mxu0 %v8854_v10  ;;  %v635_v51 = vsel %vm634_vm4, 1.0, %v8854_v10 }
 0x71f   : > { %v636_v55 = vpack.c.bf16 %v635_v51, %v635_v51 }
 0x721   : > { %7911 = vmatpush3.bf16.msra.mxu0 %v9051_v45  ;;  %v3020_v47 = vpop.f32.mrb[52].mxu1 }
 0x722   : > { %v3026_v48 = vpack.c.bf16 %v3020_v47, %v3020_v47  ;;  %7916 = vmatprep.subr.bf16.mxu0 %v8854_v10  ;;  %v7890_v49 = vpop.f32.mrb[53].mxu1 }
 0x723   : > { %v3023_v50 = vpop.f32.mrb[54].mxu1 }
 0x724   : > { %3157 = vmatmul.mubr.bf16.vlgmr.msra.gmra.mrb[56].mxu1 %v3026_v48  ;;  %7913 = vmatmul.mubr.msk.bf16.vlgmr.msra.gmra.mrb[56].mxu0 %vm779_vm2, %v561_v44  ;;  %v7891_v30 = vpop.f32.mrb[55].mxu1  ;;  %v567_v44 = vadd.s32 1, %v9860_v20 }
 0x725   : > { %7901 = vmatpush3.bf16.msra.mxu1 %v9054_v46  ;;  %7917 = vmatpush3.bf16.msra.mxu0 %v9054_v46 }
 0x726   : > { %7902 = vmatprep.subr.bf16.mxu1 %v8854_v10  ;;  %7918 = vmatprep.subr.bf16.mxu0 %v8854_v10  ;;  %vm569_vm7 = vcmp.eq.s32.totalorder %v9048_v38, %v567_v44  ;;  %v8505_v44 = vld [vmem:[%s11000_s5 + $0x30] sm:$0xff]  }
 0x727   : > { %7904 = vmatprep.mubr.msk.bf16.mxu1 %vm8855_vm0, %v8854_v10  ;;  %7920 = vmatprep.mubr.msk.bf16.mxu0 %vm8855_vm0, %v8854_v10 }
 0x729   : > { %7903 = vmatpush3.bf16.msra.mxu1 %v9051_v45  ;;  %7919 = vmatpush3.bf16.msra.mxu0 %v9051_v45 }
 0x72a   : > { %3492 = vmatprep.subr.bf16.mxu1 %v8448_v54  ;;  %7924 = vmatprep.subr.bf16.mxu0 %v8854_v10 }
 0x72c   : > { %7905 = vmatmul.mubr.msk.bf16.vlgmr.msra.gmra.mrb[60].mxu1 %vm779_vm2, %v636_v55  ;;  %7921 = vmatmul.mubr.msk.bf16.vlgmr.msra.gmra.mrb[60].mxu0 %vm779_vm2, %v566_v56  ;;  %v10024_v56 = vsel %vm569_vm7, 1.0, %v8854_v10 }
 0x72d   : > { %3493 = vmatpush1.bf16.msra.mxu1 %v8446_v57  ;;  %7925 = vmatpush3.bf16.msra.mxu0 %v8449_v58  ;;  %v8480_v57 = vld [vmem:[%s10998_s3 + $0x10] sm:$0xff]  }
 0x72e   : > { %3494 = vmatprep.subr.bf16.mxu1 %v8452_v59  ;;  %7926 = vmatprep.subr.bf16.mxu0 %v8854_v10  ;;  %v8481_v59 = vld [vmem:[%s10998_s3 + $0x18] sm:$0xff]  }
 0x72f   : > { %3524 = vmatprep.mubr.bf16.mxu1 %v8856_v2  ;;  %7940 = vmatprep.mubr.msk.bf16.mxu0 %vm8855_vm0, %v8854_v10 }
 0x731   : > { %3495 = vmatpush1.bf16.msra.mxu1 %v8450_v60  ;;  %7927 = vmatpush3.bf16.msra.mxu0 %v8453_v61  ;;  %v8482_v60 = vld [vmem:[%s10998_s3 + $0x20] sm:$0xff]   ;;  %v8488_v61 = vld [vmem:[%s10998_s3 + $0x90] sm:$0xff]  }
 0x732   : > { %3496 = vmatprep.subr.bf16.mxu1 %v8456_v62  ;;  %7928 = vmatprep.subr.bf16.mxu0 %v8854_v10  ;;  %v8483_v62 = vld [vmem:[%s10998_s3 + $0x28] sm:$0xff]  }
 0x735   : > { %3497 = vmatpush1.bf16.msra.mxu1 %v8454_v63  ;;  %7929 = vmatpush3.bf16.msra.mxu0 %v8457_v0  ;;  %v8489_v63 = vld [vmem:[%s10998_s3 + $0x98] sm:$0xff]   ;;  %v8484_v0 = vld [vmem:[%s10998_s3 + $0x30] sm:$0xff]  }
 0x736   : > { %3498 = vmatprep.subr.bf16.mxu1 %v8460_v1  ;;  %7930 = vmatprep.subr.bf16.mxu0 %v8854_v10  ;;  %v8485_v1 = vld [vmem:[%s10998_s3 + $0x38] sm:$0xff]  }
 0x739   : > { %3499 = vmatpush1.bf16.msra.mxu1 %v8458_v3  ;;  %7931 = vmatpush3.bf16.msra.mxu0 %v8461_v5  ;;  %v8490_v3 = vld [vmem:[%s10998_s3 + $0xa0] sm:$0xff]   ;;  %v8491_v5 = vld [vmem:[%s10998_s3 + $0xa8] sm:$0xff]  }
 0x73a   : > { %3500 = vmatprep.subr.bf16.mxu1 %v8464_v6  ;;  %7932 = vmatprep.subr.bf16.mxu0 %v8854_v10  ;;  %v8492_v6 = vld [vmem:[%s10998_s3 + $0xb0] sm:$0xff]  }
 0x73d   : > { %3501 = vmatpush1.bf16.msra.mxu1 %v8462_v7  ;;  %7933 = vmatpush3.bf16.msra.mxu0 %v8465_v9  ;;  %v8493_v7 = vld [vmem:[%s10998_s3 + $0xb8] sm:$0xff]  }
 0x73e   : > { %3502 = vmatprep.subr.bf16.mxu1 %v8468_v11  ;;  %7934 = vmatprep.subr.bf16.mxu0 %v8854_v10 }
 0x741   : > { %3503 = vmatpush1.bf16.msra.mxu1 %v8466_v12  ;;  %7935 = vmatpush3.bf16.msra.mxu0 %v8469_v13 }
 0x742   : > { %3504 = vmatprep.subr.bf16.mxu1 %v8472_v14  ;;  %7936 = vmatprep.subr.bf16.mxu0 %v8854_v10 }
 0x745   : > { %3505 = vmatpush1.bf16.msra.mxu1 %v8470_v15  ;;  %7937 = vmatpush3.bf16.msra.mxu0 %v8473_v16 }
 0x746   : > { %3506 = vmatprep.subr.bf16.mxu1 %v8476_v4  ;;  %7938 = vmatprep.subr.bf16.mxu0 %v8854_v10 }
 0x749   : > { %3507 = vmatpush1.bf16.msra.mxu1 %v8474_v8  ;;  %7939 = vmatpush3.bf16.msra.mxu0 %v8477_v19 }
 0x74a   : > { %7944 = vmatprep.subr.bf16.mxu1 %v8854_v10  ;;  %7964 = vmatprep.subr.bf16.mxu0 %v8854_v10 }
 0x7ef   : > { %v3342_v18 = vpop.f32.mrb[52].mxu0 }
 0x7f0   : > { %v3344_v23 = vpop.f32.mrb[53].mxu0 }
 0x7f1   : > { %v3346_v24 = vpop.f32.mrb[54].mxu0 }
 0x7f2   : > { %v3347_v21 = vpop.f32.mrb[55].mxu0 }
 0x7f7   : > { %v3158_v22 = vpop.f32.mrb[56].mxu1  ;;  %v9995_v29 = vpop.f32.mrb[56].mxu0 }
 0x7f8   : > { %v3165_v31 = vadd.f32 %v3158_v22, %v9870_v41  ;;  %v3160_v25 = vpop.f32.mrb[57].mxu1  ;;  %v7914_v26 = vpop.f32.mrb[57].mxu0  ;;  %v568_v41 = vadd.s32 1, %v9862_v17  ;;  %v8479_v17 = vld [vmem:[%s10998_s3 + $0x8] sm:$0xff]  }
 0x7f9   : > { %v3166_v34 = vadd.f32 %v3160_v25, %v9879_v43  ;;  %v9999_v35 = vpop.f32.mrb[58].mxu0  ;;  %v3162_v36 = vpop.f32.mrb[58].mxu1  ;;  %v8478_v43 = vld [vmem:[%s10998_s3] sm:$0xff]  }
 0x7fa   : > { %v3595_v37 = vpack.c.bf16 %v9999_v35, %v9995_v29  ;;  %v7915_v39 = vpop.f32.mrb[59].mxu0  ;;  %v3163_v40 = vpop.f32.mrb[59].mxu1  ;;  %v10003_v42 = vadd.f32 %v3342_v18, %v3165_v31  ;;  %vm570_vm8 = vcmp.eq.s32.totalorder %v9048_v38, %v568_v41  ;;  %v8494_v36 = vld [vmem:[%s11000_s5] sm:$0xff]  }
 0x7fb   : > { %v10005_v33 = vadd.f32 %v3344_v23, %v3166_v34  ;;  %v572_v38 = vsel %vm570_vm8, 1.0, %v8854_v10  ;;  %v8497_v39 = vld [vmem:[%s11000_s5 + $0x10] sm:$0xff]   ;;  %v8499_v40 = vld [vmem:[%s11000_s5 + $0x18] sm:$0xff]  }
 0x7fc   : > { %v573_v58 = vpack.c.bf16 %v572_v38, %v10024_v56  ;;  %v10147_v38 = vpack.c.bf16 %v9896_v52, %v9896_v52  ;;  %v8500_v52 = vld [vmem:[%s11000_s5 + $0x50] sm:$0xff]  }
 0x7ff   : > { %v3388_v47 = vpop.f32.mrb[60].mxu1  ;;  %v3649_v48 = vpop.f32.mrb[60].mxu0 }
 0x800   : > { %v3394_v49 = vpack.c.bf16 %v3388_v47, %v3388_v47  ;;  %v7922_v50 = vpop.f32.mrb[61].mxu0  ;;  %v7906_v30 = vpop.f32.mrb[61].mxu1  ;;  %v7197_v47 = vld [vmem:[%s10999_s4] ss:$0 sm:$0xff] }
 0x801   : > { %v3652_v51 = vpop.f32.mrb[62].mxu0  ;;  %v3391_v53 = vpop.f32.mrb[62].mxu1 }
 0x802   : > { %v3656_v54 = vpack.c.bf16 %v3652_v51, %v3649_v48  ;;  %3525 = vmatmul.mubr.bf16.vlgmr.msra.gmra.mrb[64].mxu1 %v3394_v49  ;;  %v7923_v55 = vpop.f32.mrb[63].mxu0  ;;  %v7907_v20 = vpop.f32.mrb[63].mxu1 }
 0x803   : > { %7945 = vmatpush3.bf16.msra.mxu1 %v8478_v43  ;;  %7960 = vmatprep.mubr.msk.bf16.mxu1 %vm8855_vm0, %v8854_v10 }
 0x804   : > { %7941 = vmatmul.mubr.bf16.vlgmr.msra.gmra.mrb[64].mxu0 %v3656_v54  ;;  %7946 = vmatprep.subr.bf16.mxu1 %v8854_v10 }
 0x805   : > { %7965 = vmatpush3.bf16.msra.mxu0 %v9054_v46  ;;  %7968 = vmatprep.mubr.msk.bf16.mxu0 %vm8855_vm0, %v8854_v10  ;;  %v8486_v46 = vld [vmem:[%s10998_s3 + $0x80] sm:$0xff]  }
 0x806   : > { %7966 = vmatprep.subr.bf16.mxu0 %v8854_v10 }
 0x807   : > { %7947 = vmatpush3.bf16.msra.mxu1 %v8479_v17  ;;  %v10137_v17 = vpack.c.bf16 %v9876_v32, %v9876_v32  ;;  %v8496_v32 = vld [vmem:[%s11000_s5 + $0x40] sm:$0xff]  }
 0x808   : > { %7948 = vmatprep.subr.bf16.mxu1 %v8854_v10 }
 0x809   : > { %7967 = vmatpush3.bf16.msra.mxu0 %v9051_v45  ;;  %v8487_v45 = vld [vmem:[%s10998_s3 + $0x88] sm:$0xff]  }
 0x80a   : > { %7972 = vmatprep.subr.bf16.mxu0 %v8854_v10 }
 0x80b   : > { %7949 = vmatpush3.bf16.msra.mxu1 %v8480_v57  ;;  %v8498_v57 = vld [vmem:[%s11000_s5 + $0x48] sm:$0xff]  }
 0x80c   : > { %7969 = vmatmul.mubr.msk.bf16.vlgmr.msra.gmra.mrb[68].mxu0 %vm779_vm2, %v573_v58  ;;  %7950 = vmatprep.subr.bf16.mxu1 %v8854_v10  ;;  %vm4017_vm2 = vcmask 130048   ;;  %v8502_v58 = vld [vmem:[%s11000_s5 + $0x58] sm:$0xff]  }
 0x80d   : > { %7973 = vmatpush3.bf16.msra.mxu0 %v8486_v46  ;;  %7988 = vmatprep.mubr.msk.bf16.mxu0 %vm8855_vm0, %v8854_v10  ;;  %v8504_v46 = vld [vmem:[%s11000_s5 + $0x60] sm:$0xff]  }
 0x80e   : > { %7974 = vmatprep.subr.bf16.mxu0 %v8854_v10 }
 0x80f   : > { %7951 = vmatpush3.bf16.msra.mxu1 %v8481_v59  ;;  %v8506_v59 = vld [vmem:[%s11000_s5 + $0x68] sm:$0xff]  }
 0x810   : > { %7952 = vmatprep.subr.bf16.mxu1 %v8854_v10 }
 0x811   : > { %7975 = vmatpush3.bf16.msra.mxu0 %v8487_v45  ;;  %v8507_v45 = vld [vmem:[%s11000_s5 + $0x38] sm:$0xff]  }
 0x812   : > { %7976 = vmatprep.subr.bf16.mxu0 %v8854_v10 }
 0x813   : > { %7953 = vmatpush3.bf16.msra.mxu1 %v8482_v60  ;;  %v8508_v60 = vld [vmem:[%s11000_s5 + $0x70] sm:$0xff]  }
 0x814   : > { %7954 = vmatprep.subr.bf16.mxu1 %v8854_v10 }
 0x815   : > { %7977 = vmatpush3.bf16.msra.mxu0 %v8488_v61  ;;  %v8509_v61 = vld [vmem:[%s11000_s5 + $0x78] sm:$0xff]  }
 0x816   : > { %7978 = vmatprep.subr.bf16.mxu0 %v8854_v10 }
 0x817   : > { %7955 = vmatpush3.bf16.msra.mxu1 %v8483_v62 }
 0x818   : > { %7956 = vmatprep.subr.bf16.mxu1 %v8854_v10 }
 0x819   : > { %7979 = vmatpush3.bf16.msra.mxu0 %v8489_v63 }
 0x81a   : > { %7980 = vmatprep.subr.bf16.mxu0 %v8854_v10 }
 0x81b   : > { %7957 = vmatpush3.bf16.msra.mxu1 %v8484_v0 }
 0x81c   : > { %7958 = vmatprep.subr.bf16.mxu1 %v8854_v10 }
 0x81d   : > { %7981 = vmatpush3.bf16.msra.mxu0 %v8490_v3 }
 0x81e   : > { %7982 = vmatprep.subr.bf16.mxu0 %v8854_v10 }
 0x81f   : > { %7959 = vmatpush3.bf16.msra.mxu1 %v8485_v1 }
 0x820   : > { %7992 = vmatprep.subr.bf16.mxu1 %v8854_v10 }
 0x821   : > { %7983 = vmatpush3.bf16.msra.mxu0 %v8491_v5 }
 0x822   : > { %7961 = vmatmul.mubr.bf16.vlgmr.msra.gmra.mrb[68].mxu1 %v3595_v37  ;;  %7984 = vmatprep.subr.bf16.mxu0 %v8854_v10  ;;  %v8495_v37 = vld [vmem:[%s11000_s5 + $0x8] sm:$0xff]  }
 0x823   : > { %7994 = vmatprep.mubr.msk.bf16.mxu1 %vm8855_vm0, %v8854_v10 }
 0x825   : > { %7985 = vmatpush3.bf16.msra.mxu0 %v8492_v6 }
 0x826   : > { %7986 = vmatprep.subr.bf16.mxu0 %v8854_v10 }
 0x829   : > { %7987 = vmatpush3.bf16.msra.mxu0 %v8493_v7 }
 0x82a   : > { %8024 = vmatprep.subr.bf16.mxu0 %v8854_v10 }
 0x8d5   : > { %v3526_v9 = vpop.f32.mrb[64].mxu1 }
 0x8d6   : > { %v10097_v11 = vadd.f32 %v3526_v9, %v10003_v42  ;;  %v3528_v12 = vpop.f32.mrb[65].mxu1  ;;  %v8501_v42 = vld [vmem:[%s11000_s5 + $0x20] sm:$0xff]  }
 0x8d7   : > { %v10100_v13 = vadd.f32 %v3528_v12, %v10005_v33  ;;  %v3756_v14 = vpop.f32.mrb[64].mxu0  ;;  %v3530_v15 = vpop.f32.mrb[66].mxu1  ;;  %v8503_v33 = vld [vmem:[%s11000_s5 + $0x28] sm:$0xff]  }
 0x8d8   : > { %v7942_v16 = vpop.f32.mrb[65].mxu0  ;;  %v3531_v4 = vpop.f32.mrb[67].mxu1  ;;  %v8510_v15 = vld [vmem:[%s11000_s5 + $0x80] sm:$0xff]  }
 0x8d9   : > { %v3759_v8 = vpop.f32.mrb[66].mxu0  ;;  %v8511_v16 = vld [vmem:[%s11000_s5 + $0x88] sm:$0xff]   ;;  %v8513_v4 = vld [vmem:[%s11000_s5 + $0x98] sm:$0xff]  }
 0x8da   : > { %v7943_v19 = vpop.f32.mrb[67].mxu0 }
 0x8db   : > { %v8515_v19 = vld [vmem:[%s11000_s5 + $0xa8] sm:$0xff]  }
 0x8df   : > { %v3889_v18 = vpop.f32.mrb[68].mxu0 }
 0x8e0   : > { %v7970_v23 = vpop.f32.mrb[69].mxu0 }
 0x8e1   : > { %v3892_v24 = vpop.f32.mrb[70].mxu0  ;;  %v8517_v23 = vld [vmem:[%s11000_s5 + $0xb8] sm:$0xff]  }
 0x8e2   : > { %v3896_v21 = vpack.c.bf16 %v3892_v24, %v3889_v18  ;;  %v7971_v22 = vpop.f32.mrb[71].mxu0  ;;  %v8516_v18 = vld [vmem:[%s11000_s5 + $0xb0] sm:$0xff]  }
 0x8e4   : > { %7989 = vmatmul.mubr.bf16.vlgmr.msra.gmra.mrb[72].mxu0 %v3896_v21 }
 0x8e5   : > { %8040 = vmatprep.mubr.msk.bf16.mxu0 %vm8855_vm0, %v8854_v10  ;;  %8025 = vmatpush3.bf16.msra.mxu0 %v8494_v36 }
 0x8e6   : > { %8026 = vmatprep.subr.bf16.mxu0 %v8854_v10 }
 0x8e9   : > { %8027 = vmatpush3.bf16.msra.mxu0 %v8495_v37 }
 0x8ea   : > { %8028 = vmatprep.subr.bf16.mxu0 %v8854_v10 }
 0x8ed   : > { %8029 = vmatpush3.bf16.msra.mxu0 %v8497_v39 }
 0x8ee   : > { %8030 = vmatprep.subr.bf16.mxu0 %v8854_v10 }
 0x8f1   : > { %8031 = vmatpush3.bf16.msra.mxu0 %v8499_v40 }
 0x8f2   : > { %8032 = vmatprep.subr.bf16.mxu0 %v8854_v10 }
 0x8f5   : > { %v3845_v29 = vpop.f32.mrb[68].mxu1  ;;  %8033 = vmatpush3.bf16.msra.mxu0 %v8501_v42 }
 0x8f6   : > { %v3846_v31 = vadd.f32 %v3845_v29, %v3756_v14  ;;  %v7962_v25 = vpop.f32.mrb[69].mxu1  ;;  %8034 = vmatprep.subr.bf16.mxu0 %v8854_v10  ;;  %v10196_v14 = vpack.c.bf16 %v10024_v56, %v10024_v56  ;;  %v8512_v56 = vld [vmem:[%s11000_s5 + $0x90] sm:$0xff]  }
 0x8f7   : > { %v3848_v26 = vpop.f32.mrb[70].mxu1 }
 0x8f8   : > { %v3849_v34 = vadd.f32 %v3848_v26, %v3759_v8  ;;  %v7963_v35 = vpop.f32.mrb[71].mxu1  ;;  %v8514_v8 = vld [vmem:[%s11000_s5 + $0xa0] sm:$0xff]  }
 0x8f9   : > { %8035 = vmatpush3.bf16.msra.mxu0 %v8503_v33  ;;  %v8518_v33 = vld [vmem:[%s11002_s7] ss:$8 sps:$4 sm:$0xff]  }
 0x8fa   : > { %8036 = vmatprep.subr.bf16.mxu0 %v8854_v10 }
 0x8fd   : > { %8037 = vmatpush3.bf16.msra.mxu0 %v8505_v44  ;;  %v8520_v44 = vld [vmem:[%s11002_s7 + $0x4] ss:$8 sps:$4 sm:$0xff]  }
 0x8fe   : > { %8038 = vmatprep.subr.bf16.mxu0 %v8854_v10 }
 0x901   : > { %8039 = vmatpush3.bf16.msra.mxu0 %v8507_v45 }
 0x902   : > { %8070 = vmatprep.subr.bf16.mxu0 %v8854_v10 }
 0x9b7   : > { %v3996_v41 = vpop.f32.mrb[72].mxu0 }
 0x9b8   : > { %v4003_v48 = vadd.f32 %v3996_v41, %v3846_v31  ;;  %v7990_v43 = vpop.f32.mrb[73].mxu0  ;;  %v8523_v41 = vld [vmem:[%s11002_s7 + $0x14] ss:$8 sps:$4 sm:$0xff]  }
 0x9b9   : > { %v3999_v49 = vpop.f32.mrb[74].mxu0  ;;  %v8527_v43 = vld [vmem:[%s11002_s7 + $0x20] ss:$8 sps:$4 sm:$0xff]  }
 0x9ba   : > { %v4012_v50 = vadd.f32 %v7197_v47, %v4003_v48  ;;  %v4004_v30 = vadd.f32 %v3999_v49, %v3849_v34  ;;  %v7991_v51 = vpop.f32.mrb[75].mxu0  ;;  %v8529_v48 = vld [vmem:[%s11002_s7 + $0x24] ss:$8 sps:$4 sm:$0xff]   ;;  %v8535_v49 = vld [vmem:[%s11002_s7 + $0x34] ss:$8 sps:$4 sm:$0xff]  }
 0x9bb   : > { %v8539_v51 = vld [vmem:[%s11002_s7 + $0x40] ss:$8 sps:$4 sm:$0xff]  }
 0x9bc   : > { %v4013_v53 = vadd.f32 %v7197_v47, %v4004_v30  ;;  %v4014_v54 = vmax.f32 %v4012_v50, 0.0  ;;  %v8521_v47 = vld [vmem:[%s11002_s7 + $0x10] ss:$8 sps:$4 sm:$0xff]   ;;  %v8541_v30 = vld [vmem:[%s11002_s7 + $0x44] ss:$8 sps:$4 sm:$0xff]  }
 0x9bd   : > { %v8533_v50 = vld [vmem:[%s11002_s7 + $0x30] ss:$8 sps:$4 sm:$0xff]  }
 0x9be   : > { %v4015_v55 = vmax.f32 %v4013_v53, 0.0  ;;  %v8547_v53 = vld [vmem:[%s11002_s7 + $0x54] ss:$8 sps:$4 sm:$0xff]  }
 0x9c0   : > { %v4016_v20 = vpack.c.bf16 %v4015_v55, %v4014_v54  ;;  %v8545_v54 = vld [vmem:[%s11002_s7 + $0x50] ss:$8 sps:$4 sm:$0xff]   ;;  %v8553_v55 = vld [vmem:[%s11002_s7 + $0x64] ss:$8 sps:$4 sm:$0xff]  }
 0x9c2   : > { %7993 = vmatpush3.bf16.msra.mxu1 %v4016_v20 }
 0x9c3   : > { %7998 = vmatprep.subr.bf16.mxu1 %v8854_v10 }
 0x9c5   : > { %7995 = vmatmul.mubr.msk.bf16.vlgmr.msra.gmra.mrb[72].mxu1 %vm4017_vm2, %v10137_v17 }
 0x9c6   : > { %7999 = vmatpush3.bf16.msra.mxu1 %v4016_v20  ;;  %8000 = vmatprep.mubr.msk.bf16.mxu1 %vm8855_vm0, %v8854_v10 }
 0x9c7   : > { %8004 = vmatprep.subr.bf16.mxu1 %v8854_v10 }
 0x9cd   : > { %8001 = vmatmul.mubr.msk.bf16.vlgmr.msra.gmra.mrb[76].mxu1 %vm4017_vm2, %v10147_v38 }
 0x9ce   : > { %8005 = vmatpush3.bf16.msra.mxu1 %v8496_v32  ;;  %8020 = vmatprep.mubr.msk.bf16.mxu1 %vm8855_vm0, %v8854_v10  ;;  %v8559_v32 = vld [vmem:[%s11002_s7 + $0x74] ss:$8 sps:$4 sm:$0xff]  }
 0x9cf   : > { %8006 = vmatprep.subr.bf16.mxu1 %v8854_v10 }
 0x9d2   : > { %8007 = vmatpush3.bf16.msra.mxu1 %v8498_v57  ;;  %v8557_v57 = vld [vmem:[%s11002_s7 + $0x70] ss:$8 sps:$4 sm:$0xff]  }
 0x9d3   : > { %8008 = vmatprep.subr.bf16.mxu1 %v8854_v10 }
 0x9d6   : > { %8009 = vmatpush3.bf16.msra.mxu1 %v8500_v52 }
 0x9d7   : > { %8010 = vmatprep.subr.bf16.mxu1 %v8854_v10 }
 0x9da   : > { %8011 = vmatpush3.bf16.msra.mxu1 %v8502_v58  ;;  %v7257_v58 = vld [vmem:[%s11001_s6] ss:$0 sm:$0xff] }
 0x9db   : > { %8012 = vmatprep.subr.bf16.mxu1 %v8854_v10 }
 0x9de   : > { %8013 = vmatpush3.bf16.msra.mxu1 %v8504_v46 }
 0x9df   : > { %8014 = vmatprep.subr.bf16.mxu1 %v8854_v10 }
 0x9e2   : > { %8015 = vmatpush3.bf16.msra.mxu1 %v8506_v59 }
 0x9e3   : > { %8016 = vmatprep.subr.bf16.mxu1 %v8854_v10 }
 0x9e6   : > { %8017 = vmatpush3.bf16.msra.mxu1 %v8508_v60 }
 0x9e7   : > { %8018 = vmatprep.subr.bf16.mxu1 %v8854_v10 }
 0x9ea   : > { %8019 = vmatpush3.bf16.msra.mxu1 %v8509_v61 }
 0x9eb   : > { %8044 = vmatprep.subr.bf16.mxu1 %v8854_v10 }
 0xa98   : > { %v4055_v62 = vpop.f32.mrb[72].mxu1 }
 0xa99   : > { %v4061_v63 = vpack.c.bf16 %v4055_v62, %v4055_v62  ;;  %v7996_v0 = vpop.f32.mrb[73].mxu1 }
 0xa9a   : > { %v4058_v1 = vpop.f32.mrb[74].mxu1 }
 0xa9b   : > { %v7997_v3 = vpop.f32.mrb[75].mxu1  ;;  %8041 = vmatmul.mubr.bf16.vlgmr.msra.gmra.mrb[76].mxu0 %v4061_v63  ;;  %v8526_v1 = vld [vmem:[%s11002_s7 + $0x84] ss:$8 sps:$4 sm:$0xff]  }
 0xa9c   : > { %8072 = vmatprep.mubr.msk.bf16.mxu0 %vm8855_vm0, %v8854_v10  ;;  %v8524_v3 = vld [vmem:[%s11002_s7 + $0x80] ss:$8 sps:$4 sm:$0xff]  }
 0xaa0   : > { %v4115_v5 = vpop.f32.mrb[76].mxu1 }
 0xaa1   : > { %v4121_v6 = vpack.c.bf16 %v4115_v5, %v4115_v5  ;;  %v8002_v7 = vpop.f32.mrb[77].mxu1  ;;  %v8532_v5 = vld [vmem:[%s11002_s7 + $0x94] ss:$8 sps:$4 sm:$0xff]  }
 0xaa2   : > { %v4118_v9 = vpop.f32.mrb[78].mxu1  ;;  %v8536_v7 = vld [vmem:[%s11002_s7 + $0xa0] ss:$8 sps:$4 sm:$0xff]  }
 0xaa3   : > { %v8003_v12 = vpop.f32.mrb[79].mxu1  ;;  %8021 = vmatmul.mubr.bf16.vlgmr.msra.gmra.mrb[80].mxu1 %v4121_v6  ;;  %v8538_v6 = vld [vmem:[%s11002_s7 + $0xa4] ss:$8 sps:$4 sm:$0xff]   ;;  %v8542_v9 = vld [vmem:[%s11002_s7 + $0xb0] ss:$8 sps:$4 sm:$0xff]  }
 0xaa4   : > { %8045 = vmatpush3.bf16.msra.mxu1 %v4016_v20  ;;  %8046 = vmatprep.mubr.msk.bf16.mxu1 %vm8855_vm0, %v8854_v10  ;;  %v8551_v20 = vld [vmem:[%s11002_s7 + $0x60] ss:$8 sps:$4 sm:$0xff]   ;;  %v8550_v12 = vld [vmem:[%s11002_s7 + $0xc4] ss:$8 sps:$4 sm:$0xff]  }
 0xaa5   : > { %8050 = vmatprep.subr.bf16.mxu1 %v8854_v10 }
 0xaab   : > { %8047 = vmatmul.mubr.msk.bf16.vlgmr.msra.gmra.mrb[84].mxu1 %vm4017_vm2, %v10196_v14 }
 0xaac   : > { %8051 = vmatpush3.bf16.msra.mxu1 %v8510_v15  ;;  %8066 = vmatprep.mubr.msk.bf16.mxu1 %vm8855_vm0, %v8854_v10  ;;  %v8548_v15 = vld [vmem:[%s11002_s7 + $0xc0] ss:$8 sps:$4 sm:$0xff]  }
 0xaad   : > { %8052 = vmatprep.subr.bf16.mxu1 %v8854_v10 }
 0xab0   : > { %8053 = vmatpush3.bf16.msra.mxu1 %v8511_v16  ;;  %v8556_v16 = vld [vmem:[%s11002_s7 + $0xd4] ss:$8 sps:$4 sm:$0xff]  }
 0xab1   : > { %8054 = vmatprep.subr.bf16.mxu1 %v8854_v10 }
 0xab4   : > { %8055 = vmatpush3.bf16.msra.mxu1 %v8512_v56  ;;  %v8554_v56 = vld [vmem:[%s11002_s7 + $0xd0] ss:$8 sps:$4 sm:$0xff]  }
 0xab5   : > { %8056 = vmatprep.subr.bf16.mxu1 %v8854_v10 }
 0xab8   : > { %8057 = vmatpush3.bf16.msra.mxu1 %v8513_v4  ;;  %v8560_v4 = vld [vmem:[%s11002_s7 + $0xe0] ss:$8 sps:$4 sm:$0xff]  }
 0xab9   : > { %8058 = vmatprep.subr.bf16.mxu1 %v8854_v10 }
 0xabc   : > { %8059 = vmatpush3.bf16.msra.mxu1 %v8514_v8  ;;  %v8562_v8 = vld [vmem:[%s11002_s7 + $0xe4] ss:$8 sps:$4 sm:$0xff]  }
 0xabd   : > { %8060 = vmatprep.subr.bf16.mxu1 %v8854_v10 }
 0xac0   : > { %8061 = vmatpush3.bf16.msra.mxu1 %v8515_v19  ;;  %v8565_v19 = vld [vmem:[%s11002_s7 + $0xf4] ss:$8 sps:$4 sm:$0xff]  }
 0xac1   : > { %8062 = vmatprep.subr.bf16.mxu1 %v8854_v10 }
 0xac4   : > { %8063 = vmatpush3.bf16.msra.mxu1 %v8516_v18  ;;  %v8563_v18 = vld [vmem:[%s11002_s7 + $0xf0] ss:$8 sps:$4 sm:$0xff]  }
 0xac5   : > { %8064 = vmatprep.subr.bf16.mxu1 %v8854_v10 }
 0xac8   : > { %8065 = vmatpush3.bf16.msra.mxu1 %v8517_v23 }
 0xac9   : > { %4800 = vmatprep.subr.bf16.mxu1 %v8520_v44  ;;  %v8578_v44 = vld [vmem:[%s11002_s7 + $0x140] ss:$8 sps:$4 sm:$0xff]  }
 0xb6e   : > { %v4309_v24 = vpop.f32.mrb[76].mxu0 }
 0xb6f   : > { %v8042_v21 = vpop.f32.mrb[77].mxu0 }
 0xb70   : > { %v4312_v22 = vpop.f32.mrb[78].mxu0 }
 0xb71   : > { %v8043_v29 = vpop.f32.mrb[79].mxu0 }
 0xb76   : > { %v4221_v31 = vpop.f32.mrb[80].mxu1 }
 0xb77   : > { %v4310_v25 = vadd.f32 %v4309_v24, %v4221_v31  ;;  %v8022_v26 = vpop.f32.mrb[81].mxu1 }
 0xb78   : > { %v4224_v34 = vpop.f32.mrb[82].mxu1 }
 0xb79   : > { %v8023_v35 = vpop.f32.mrb[83].mxu1  ;;  %v8568_v34 = vld [vmem:[%s11002_s7 + $0x104] ss:$8 sps:$4 sm:$0xff]  }
 0xb7e   : > { %v4352_v36 = vpop.f32.mrb[84].mxu1 }
 0xb7f   : > { %v4358_v37 = vpack.c.bf16 %v4352_v36, %v4352_v36  ;;  %v8048_v39 = vpop.f32.mrb[85].mxu1 }
 0xb80   : > { %v4355_v40 = vpop.f32.mrb[86].mxu1  ;;  %v8571_v39 = vld [vmem:[%s11002_s7 + $0x114] ss:$8 sps:$4 sm:$0xff]  }
 0xb81   : > { %v8049_v42 = vpop.f32.mrb[87].mxu1  ;;  %8067 = vmatmul.mubr.bf16.vlgmr.msra.gmra.mrb[88].mxu1 %v4358_v37  ;;  %v8566_v37 = vld [vmem:[%s11002_s7 + $0x100] ss:$8 sps:$4 sm:$0xff]   ;;  %v8569_v40 = vld [vmem:[%s11002_s7 + $0x110] ss:$8 sps:$4 sm:$0xff]  }
 0xb82   : > { %4832 = vmatprep.mubr.bf16.mxu1 %v8856_v2  ;;  %4801 = vmatpush1.bf16.msra.mxu1 %v8518_v33  ;;  %v8572_v42 = vld [vmem:[%s11002_s7 + $0x120] ss:$8 sps:$4 sm:$0xff]   ;;  %v8575_v33 = vld [vmem:[%s11002_s7 + $0x130] ss:$8 sps:$4 sm:$0xff]  }
 0xb83   : > { %4802 = vmatprep.subr.bf16.mxu1 %v8523_v41  ;;  %v8580_v41 = vld [vmem:[%s11002_s7 + $0x144] ss:$8 sps:$4 sm:$0xff]  }
 0xb86   : > { %4803 = vmatpush1.bf16.msra.mxu1 %v8521_v47  ;;  %v8583_v47 = vld [vmem:[%s11002_s7 + $0x154] ss:$8 sps:$4 sm:$0xff]  }
 0xb87   : > { %4804 = vmatprep.subr.bf16.mxu1 %v8529_v48  ;;  %v8581_v48 = vld [vmem:[%s11002_s7 + $0x150] ss:$8 sps:$4 sm:$0xff]  }
 0xb8a   : > { %4805 = vmatpush1.bf16.msra.mxu1 %v8527_v43  ;;  %v8584_v43 = vld [vmem:[%s11002_s7 + $0x160] ss:$8 sps:$4 sm:$0xff]  }
 0xb8b   : > { %4806 = vmatprep.subr.bf16.mxu1 %v8535_v49  ;;  %v8586_v49 = vld [vmem:[%s11002_s7 + $0x164] ss:$8 sps:$4 sm:$0xff]  }
 0xb8e   : > { %4807 = vmatpush1.bf16.msra.mxu1 %v8533_v50  ;;  %v8589_v50 = vld [vmem:[%s11002_s7 + $0x174] ss:$8 sps:$4 sm:$0xff]  }
 0xb8f   : > { %4808 = vmatprep.subr.bf16.mxu1 %v8541_v30  ;;  %v8587_v30 = vld [vmem:[%s11002_s7 + $0x170] ss:$8 sps:$4 sm:$0xff]  }
 0xb92   : > { %4809 = vmatpush1.bf16.msra.mxu1 %v8539_v51  ;;  %v8590_v51 = vld [vmem:[%s11006_s11] ss:$8 sps:$4 sm:$0xff]  }
 0xb93   : > { %4810 = vmatprep.subr.bf16.mxu1 %v8547_v53  ;;  %v8592_v53 = vld [vmem:[%s11006_s11 + $0x4] ss:$8 sps:$4 sm:$0xff]  }
 0xb96   : > { %4811 = vmatpush1.bf16.msra.mxu1 %v8545_v54  ;;  %v8595_v54 = vld [vmem:[%s11006_s11 + $0x104] ss:$8 sps:$4 sm:$0xff]  }
 0xb97   : > { %4812 = vmatprep.subr.bf16.mxu1 %v8553_v55  ;;  %v8598_v55 = vld [vmem:[%s11006_s11 + $0x14] ss:$8 sps:$4 sm:$0xff]  }
 0xb9a   : > { %4813 = vmatpush1.bf16.msra.mxu1 %v8551_v20  ;;  %v8596_v20 = vld [vmem:[%s11006_s11 + $0x10] ss:$8 sps:$4 sm:$0xff]  }
 0xb9b   : > { %4814 = vmatprep.subr.bf16.mxu1 %v8559_v32  ;;  %v8604_v32 = vld [vmem:[%s11006_s11 + $0x24] ss:$8 sps:$4 sm:$0xff]  }
 0xb9e   : > { %4815 = vmatpush1.bf16.msra.mxu1 %v8557_v57  ;;  %v8602_v57 = vld [vmem:[%s11006_s11 + $0x20] ss:$8 sps:$4 sm:$0xff]  }
 0xb9f   : > { %5237 = vmatprep.subr.bf16.mxu1 %v8592_v53  ;;  %v8647_v53 = vld [vmem:[%s11006_s11 + $0x190] ss:$8 sps:$4 sm:$0xff]  }
 0xc54   : > { %v4458_v52 = vpop.f32.mrb[88].mxu1 }
 0xc55   : > { %v4464_v46 = vadd.f32 %v4458_v52, %v4310_v25  ;;  %v8068_v59 = vpop.f32.mrb[89].mxu1  ;;  %v8610_v52 = vld [vmem:[%s11006_s11 + $0x34] ss:$8 sps:$4 sm:$0xff]  }
 0xc56   : > { %v4461_v45 = vpop.f32.mrb[90].mxu1  ;;  %v8614_v59 = vld [vmem:[%s11006_s11 + $0x40] ss:$8 sps:$4 sm:$0xff]  }
 0xc57   : > { %v4472_v60 = vadd.f32 %v7257_v58, %v4464_v46  ;;  %v8069_v61 = vpop.f32.mrb[91].mxu1  ;;  %v8608_v58 = vld [vmem:[%s11006_s11 + $0x30] ss:$8 sps:$4 sm:$0xff]   ;;  %v8616_v46 = vld [vmem:[%s11006_s11 + $0x44] ss:$8 sps:$4 sm:$0xff]  }
 0xc58   : > { %v8622_v45 = vld [vmem:[%s11006_s11 + $0x54] ss:$8 sps:$4 sm:$0xff]   ;;  %v8628_v61 = vld [vmem:[%s11006_s11 + $0x64] ss:$8 sps:$4 sm:$0xff]  }
 0xc59   : > { %v4473_v62 = vmax.f32 %v4472_v60, 0.0  ;;  %v8620_v60 = vld [vmem:[%s11006_s11 + $0x50] ss:$8 sps:$4 sm:$0xff]  }
 0xc5b   : > { %v4474_v63 = vpack.c.bf16 %v4473_v62, %v4473_v62  ;;  %v8626_v62 = vld [vmem:[%s11006_s11 + $0x60] ss:$8 sps:$4 sm:$0xff]  }
 0xc5d   : > { %v4480_v0 = vsel %vm4478_vm9, %v4474_v63, 0  ;;  %v8634_v63 = vld [vmem:[%s11006_s11 + $0x74] ss:$8 sps:$4 sm:$0xff]  }
 0xc5e   : > { %8071 = vmatpush3.bf16.msra.mxu0 %v4480_v0 }
 0xc5f   : > { %8076 = vmatprep.subr.bf16.mxu0 %v8854_v10 }
 0xc61   : > { %8073 = vmatmul.mubr.msk.bf16.vlgmr.msra.gmra.mrb[80].mxu0 %vm4475_vm10, %v10137_v17  ;;  %v8530_v17 = vld [vmem:[%s11002_s7 + $0x90] ss:$8 sps:$4 sm:$0xff]  }
 0xc62   : > { %8077 = vmatpush3.bf16.msra.mxu0 %v4480_v0  ;;  %8078 = vmatprep.mubr.msk.bf16.mxu0 %vm8855_vm0, %v8854_v10 }
 0xc63   : > { %4679 = vmatprep.subr.bf16.mxu0 %v8526_v1  ;;  %v8640_v1 = vld [vmem:[%s11006_s11 + $0x84] ss:$8 sps:$4 sm:$0xff]  }
 0xc69   : > { %8079 = vmatmul.mubr.msk.bf16.vlgmr.msra.gmra.mrb[84].mxu0 %vm4475_vm10, %v10147_v38  ;;  %v8544_v38 = vld [vmem:[%s11002_s7 + $0xb4] ss:$8 sps:$4 sm:$0xff]  }
 0xc6a   : > { %4680 = vmatpush1.bf16.msra.mxu0 %v8524_v3  ;;  %4711 = vmatprep.mubr.bf16.mxu0 %v8856_v2  ;;  %v8638_v3 = vld [vmem:[%s11006_s11 + $0x80] ss:$8 sps:$4 sm:$0xff]  }
 0xc6b   : > { %4681 = vmatprep.subr.bf16.mxu0 %v8532_v5  ;;  %v8646_v5 = vld [vmem:[%s11006_s11 + $0x94] ss:$8 sps:$4 sm:$0xff]  }
 0xc6e   : > { %4682 = vmatpush1.bf16.msra.mxu0 %v8530_v17  ;;  %v8644_v17 = vld [vmem:[%s11006_s11 + $0x90] ss:$8 sps:$4 sm:$0xff]  }
 0xc6f   : > { %4683 = vmatprep.subr.bf16.mxu0 %v8538_v6  ;;  %v8652_v6 = vld [vmem:[%s11006_s11 + $0xa4] ss:$8 sps:$4 sm:$0xff]  }
 0xc72   : > { %4684 = vmatpush1.bf16.msra.mxu0 %v8536_v7  ;;  %v8650_v7 = vld [vmem:[%s11006_s11 + $0xa0] ss:$8 sps:$4 sm:$0xff]  }
 0xc73   : > { %4685 = vmatprep.subr.bf16.mxu0 %v8544_v38  ;;  %v8658_v38 = vld [vmem:[%s11006_s11 + $0xb4] ss:$8 sps:$4 sm:$0xff]  }
 0xc76   : > { %4686 = vmatpush1.bf16.msra.mxu0 %v8542_v9  ;;  %v8656_v9 = vld [vmem:[%s11006_s11 + $0xb0] ss:$8 sps:$4 sm:$0xff]  }
 0xc77   : > { %4687 = vmatprep.subr.bf16.mxu0 %v8550_v12  ;;  %v8664_v12 = vld [vmem:[%s11006_s11 + $0xc4] ss:$8 sps:$4 sm:$0xff]  }
 0xc7a   : > { %4688 = vmatpush1.bf16.msra.mxu0 %v8548_v15  ;;  %v8662_v15 = vld [vmem:[%s11006_s11 + $0xc0] ss:$8 sps:$4 sm:$0xff]  }
 0xc7b   : > { %4689 = vmatprep.subr.bf16.mxu0 %v8556_v16 }
 0xc7e   : > { %4690 = vmatpush1.bf16.msra.mxu0 %v8554_v56 }
 0xc7f   : > { %4691 = vmatprep.subr.bf16.mxu0 %v8562_v8 }
 0xc82   : > { %4692 = vmatpush1.bf16.msra.mxu0 %v8560_v4 }
 0xc83   : > { %4693 = vmatprep.subr.bf16.mxu0 %v8565_v19 }
 0xc86   : > { %4694 = vmatpush1.bf16.msra.mxu0 %v8563_v18 }
 0xc87   : > { %8082 = vmatprep.subr.bf16.mxu0 %v8854_v10 }
 0xd34   : > { %v4516_v23 = vpop.f32.mrb[80].mxu0 }
 0xd35   : > { %v4522_v24 = vpack.c.bf16 %v4516_v23, %v4516_v23  ;;  %v8074_v21 = vpop.f32.mrb[81].mxu0 }
 0xd36   : > { %v4519_v22 = vpop.f32.mrb[82].mxu0 }
 0xd37   : > { %v8075_v29 = vpop.f32.mrb[83].mxu0  ;;  %4833 = vmatmul.mubr.bf16.vlgmr.msra.gmra.mrb[92].mxu1 %v4522_v24 }
 0xd38   : > { %5238 = vmatpush1.bf16.msra.mxu1 %v8590_v51  ;;  %v8649_v51 = vld [vmem:[%s11006_s11 + $0x194] ss:$8 sps:$4 sm:$0xff]  }
 0xd39   : > { %5239 = vmatprep.subr.bf16.mxu1 %v8598_v55  ;;  %v8653_v55 = vld [vmem:[%s11006_s11 + $0x1a0] ss:$8 sps:$4 sm:$0xff]  }
 0xd3c   : > { %v4575_v31 = vpop.f32.mrb[84].mxu0  ;;  %5240 = vmatpush1.bf16.msra.mxu1 %v8596_v20  ;;  %v8661_v20 = vld [vmem:[%s11006_s11 + $0x1b4] ss:$8 sps:$4 sm:$0xff]  }
 0xd3d   : > { %v4581_v25 = vpack.c.bf16 %v4575_v31, %v4575_v31  ;;  %v8080_v26 = vpop.f32.mrb[85].mxu0  ;;  %5241 = vmatprep.subr.bf16.mxu1 %v8604_v32  ;;  %v8593_v31 = vld [vmem:[%s11006_s11 + $0x100] ss:$8 sps:$4 sm:$0xff]   ;;  %v8659_v32 = vld [vmem:[%s11006_s11 + $0x1b0] ss:$8 sps:$4 sm:$0xff]  }
 0xd3e   : > { %v4578_v35 = vpop.f32.mrb[86].mxu0 }
 0xd3f   : > { %4712 = vmatmul.mubr.bf16.vlgmr.msra.gmra.mrb[88].mxu0 %v4581_v25  ;;  %v8081_v36 = vpop.f32.mrb[87].mxu0 }
 0xd40   : > { %8083 = vmatpush3.bf16.msra.mxu0 %v4480_v0  ;;  %8084 = vmatprep.mubr.msk.bf16.mxu0 %vm8855_vm0, %v8854_v10  ;;  %v8574_v10 = vld [vmem:[%s11002_s7 + $0x124] ss:$8 sps:$4 sm:$0xff]   ;;  %v8632_v0 = vld [vmem:[%s11006_s11 + $0x70] ss:$8 sps:$4 sm:$0xff]   ;;  %vm6584_vm0 = vcmp.lt.s32.totalorder %v548_v27, 512 }
 0xd41   : > { %4981 = vmatprep.subr.bf16.mxu0 %v8568_v34  ;;  %5242 = vmatpush1.bf16.msra.mxu1 %v8602_v57  ;;  %v8601_v34 = vld [vmem:[%s11006_s11 + $0x114] ss:$8 sps:$4 sm:$0xff]   ;;  %v8667_v57 = vld [vmem:[%s11006_s11 + $0x1c4] ss:$8 sps:$4 sm:$0xff]  }
 0xd42   : > { %5243 = vmatprep.subr.bf16.mxu1 %v8610_v52  ;;  %v8665_v52 = vld [vmem:[%s11006_s11 + $0x1c0] ss:$8 sps:$4 sm:$0xff]  }
 0xd45   : > { %5244 = vmatpush1.bf16.msra.mxu1 %v8608_v58  ;;  %v8670_v58 = vld [vmem:[%s11006_s11 + $0xd4] ss:$8 sps:$4 sm:$0xff]  }
 0xd46   : > { %5245 = vmatprep.subr.bf16.mxu1 %v8616_v46  ;;  %v8668_v46 = vld [vmem:[%s11006_s11 + $0xd0] ss:$8 sps:$4 sm:$0xff]  }
 0xd47   : > { %8085 = vmatmul.mubr.msk.bf16.vlgmr.msra.gmra.mrb[92].mxu0 %vm4475_vm10, %v10196_v14  ;;  %v8577_v14 = vld [vmem:[%s11002_s7 + $0x134] ss:$8 sps:$4 sm:$0xff]  }
 0xd48   : > { %4982 = vmatpush1.bf16.msra.mxu0 %v8566_v37  ;;  %5013 = vmatprep.mubr.bf16.mxu0 %v8856_v2  ;;  %v8599_v37 = vld [vmem:[%s11006_s11 + $0x110] ss:$8 sps:$4 sm:$0xff]  }
 0xd49   : > { %4983 = vmatprep.subr.bf16.mxu0 %v8571_v39  ;;  %5246 = vmatpush1.bf16.msra.mxu1 %v8614_v59  ;;  %v8607_v39 = vld [vmem:[%s11006_s11 + $0x124] ss:$8 sps:$4 sm:$0xff]   ;;  %v8673_v59 = vld [vmem:[%s11006_s11 + $0x1d4] ss:$8 sps:$4 sm:$0xff]  }
 0xd4a   : > { %5247 = vmatprep.subr.bf16.mxu1 %v8622_v45  ;;  %v8671_v45 = vld [vmem:[%s11006_s11 + $0x1d0] ss:$8 sps:$4 sm:$0xff]  }
 0xd4c   : > { %4984 = vmatpush1.bf16.msra.mxu0 %v8569_v40  ;;  %v8605_v40 = vld [vmem:[%s11006_s11 + $0x120] ss:$8 sps:$4 sm:$0xff]  }
 0xd4d   : > { %4985 = vmatprep.subr.bf16.mxu0 %v8574_v10  ;;  %5248 = vmatpush1.bf16.msra.mxu1 %v8620_v60  ;;  %v8613_v10 = vld [vmem:[%s11006_s11 + $0x134] ss:$8 sps:$4 sm:$0xff]   ;;  %v8676_v60 = vld [vmem:[%s11006_s11 + $0xe4] ss:$8 sps:$4 sm:$0xff]  }
 0xd4e   : > { %5249 = vmatprep.subr.bf16.mxu1 %v8628_v61  ;;  %v8674_v61 = vld [vmem:[%s11006_s11 + $0xe0] ss:$8 sps:$4 sm:$0xff]  }
 0xd50   : > { %4986 = vmatpush1.bf16.msra.mxu0 %v8572_v42  ;;  %v8611_v42 = vld [vmem:[%s11006_s11 + $0x130] ss:$8 sps:$4 sm:$0xff]  }
 0xd51   : > { %4987 = vmatprep.subr.bf16.mxu0 %v8577_v14  ;;  %5250 = vmatpush1.bf16.msra.mxu1 %v8626_v62  ;;  %v8619_v14 = vld [vmem:[%s11006_s11 + $0x144] ss:$8 sps:$4 sm:$0xff]  }
 0xd52   : > { %5251 = vmatprep.subr.bf16.mxu1 %v8634_v63  ;;  %v8679_v62 = vld [vmem:[%s11006_s11 + $0x1e4] ss:$8 sps:$4 sm:$0xff]   ;;  %v8677_v63 = vld [vmem:[%s11006_s11 + $0x1e0] ss:$8 sps:$4 sm:$0xff]  }
 0xd54   : > { %4988 = vmatpush1.bf16.msra.mxu0 %v8575_v33  ;;  %v8617_v33 = vld [vmem:[%s11006_s11 + $0x140] ss:$8 sps:$4 sm:$0xff]  }
 0xd55   : > { %4989 = vmatprep.subr.bf16.mxu0 %v8580_v41  ;;  %5252 = vmatpush1.bf16.msra.mxu1 %v8632_v0  ;;  %v8623_v41 = vld [vmem:[%s11006_s11 + $0x150] ss:$8 sps:$4 sm:$0xff]   ;;  %v8682_v0 = vld [vmem:[%s11006_s11 + $0xf4] ss:$8 sps:$4 sm:$0xff]  }
 0xd56   : > { %5253 = vmatprep.subr.bf16.mxu1 %v8640_v1  ;;  %v8680_v1 = vld [vmem:[%s11006_s11 + $0xf0] ss:$8 sps:$4 sm:$0xff]  }
 0xd58   : > { %4990 = vmatpush1.bf16.msra.mxu0 %v8578_v44  ;;  %v8625_v44 = vld [vmem:[%s11006_s11 + $0x154] ss:$8 sps:$4 sm:$0xff]  }
 0xd59   : > { %4991 = vmatprep.subr.bf16.mxu0 %v8583_v47  ;;  %5254 = vmatpush1.bf16.msra.mxu1 %v8638_v3  ;;  %v8631_v47 = vld [vmem:[%s11006_s11 + $0x164] ss:$8 sps:$4 sm:$0xff]   ;;  %v8683_v3 = vld [vmem:[%s11006_s11 + $0x1f0] ss:$8 sps:$4 sm:$0xff]  }
 0xd5a   : > { %5255 = vmatprep.subr.bf16.mxu1 %v8646_v5  ;;  %v8685_v5 = vld [vmem:[%s11006_s11 + $0x1f4] ss:$8 sps:$4 sm:$0xff]  }
 0xd5c   : > { %4992 = vmatpush1.bf16.msra.mxu0 %v8581_v48  ;;  %v8629_v48 = vld [vmem:[%s11006_s11 + $0x160] ss:$8 sps:$4 sm:$0xff]  }
 0xd5d   : > { %4993 = vmatprep.subr.bf16.mxu0 %v8586_v49  ;;  %5256 = vmatpush1.bf16.msra.mxu1 %v8644_v17  ;;  %v8635_v49 = vld [vmem:[%s11006_s11 + $0x170] ss:$8 sps:$4 sm:$0xff]   ;;  %v8688_v17 = vld [vmem:[%s11006_s11 + $0x204] ss:$8 sps:$4 sm:$0xff]  }
 0xd5e   : > { %5257 = vmatprep.subr.bf16.mxu1 %v8652_v6  ;;  %v8691_v6 = vld [vmem:[%s11006_s11 + $0x304] ss:$8 sps:$4 sm:$0xff]  }
 0xd60   : > { %4994 = vmatpush1.bf16.msra.mxu0 %v8584_v43  ;;  %v8637_v43 = vld [vmem:[%s11006_s11 + $0x174] ss:$8 sps:$4 sm:$0xff]  }
 0xd61   : > { %4995 = vmatprep.subr.bf16.mxu0 %v8589_v50  ;;  %5258 = vmatpush1.bf16.msra.mxu1 %v8650_v7  ;;  %v8643_v50 = vld [vmem:[%s11006_s11 + $0x184] ss:$8 sps:$4 sm:$0xff]   ;;  %v10598_v7 = vsub.s32 0, %v9039_v28 }
 0xd62   : > { %5259 = vmatprep.subr.bf16.mxu1 %v8658_v38  ;;  %v3535_v38 = vld [vmem:[%s11005_s10] sm:$0x3] }
 0xd64   : > { %4996 = vmatpush1.bf16.msra.mxu0 %v8587_v30  ;;  %v8641_v30 = vld [vmem:[%s11006_s11 + $0x180] ss:$8 sps:$4 sm:$0xff]  }
 0xd65   : > { %5498 = vmatprep.subr.bf16.mxu0 %v8595_v54  ;;  %5260 = vmatpush1.bf16.msra.mxu1 %v8656_v9  ;;  %v8655_v54 = vld [vmem:[%s11006_s11 + $0x1a4] ss:$8 sps:$4 sm:$0xff]   ;;  %v10604_v9 = vsub.s32 1, %v9039_v28 }
 0xd66   : > { %5261 = vmatprep.subr.bf16.mxu1 %v8664_v12  ;;  %v5024_v12 = vld [vmem:[%s11003_s8] sm:$0x3] }
 0xd69   : > { %5262 = vmatpush1.bf16.msra.mxu1 %v8662_v15  ;;  %v3540_v15 = vrot.slane %v3535_v38, %v10598_v7 }
 0xd6a   : > { %5263 = vmatprep.subr.bf16.mxu1 %v8670_v58  ;;  %v8718_v58 = vld [vmem:[%s11006_s11 + $0x254] ss:$8 sps:$4 sm:$0xff]  }
 0xd6d   : > { %5264 = vmatpush1.bf16.msra.mxu1 %v8668_v46  ;;  %v8713_v46 = vld [vmem:[%s11006_s11 + $0x340] ss:$8 sps:$4 sm:$0xff]  }
 0xd6e   : > { %5265 = vmatprep.subr.bf16.mxu1 %v8676_v60  ;;  %v8724_v60 = vld [vmem:[%s11006_s11 + $0x264] ss:$8 sps:$4 sm:$0xff]  }
 0xd71   : > { %5266 = vmatpush1.bf16.msra.mxu1 %v8674_v61  ;;  %v8719_v61 = vld [vmem:[%s11006_s11 + $0x350] ss:$8 sps:$4 sm:$0xff]  }
 0xd72   : > { %5267 = vmatprep.subr.bf16.mxu1 %v8682_v0  ;;  %v8730_v0 = vld [vmem:[%s11006_s11 + $0x274] ss:$8 sps:$4 sm:$0xff]  }
 0xd75   : > { %5268 = vmatpush1.bf16.msra.mxu1 %v8680_v1  ;;  %v8725_v1 = vld [vmem:[%s11006_s11 + $0x360] ss:$8 sps:$4 sm:$0xff]  }
 0xd76   : > { %5757 = vmatprep.subr.bf16.mxu1 %v8688_v17  ;;  %v8736_v17 = vld [vmem:[%s11006_s11 + $0x284] ss:$8 sps:$4 sm:$0xff]  }
 0xe0a   : > { %v4834_v16 = vpop.f32.mrb[92].mxu1 }
 0xe0b   : > { %v4836_v56 = vpop.f32.mrb[93].mxu1 }
 0xe0c   : > { %v4838_v4 = vpop.f32.mrb[94].mxu1 }
 0xe0d   : > { %v4839_v8 = vpop.f32.mrb[95].mxu1 }
 0xe0e   : > { %v5033_v8 = vrot.slane %v5024_v12, %v10604_v9 }
 0xe12   : > { %v4713_v19 = vpop.f32.mrb[88].mxu0 }
 0xe13   : > { %v10476_v18 = vadd.f32 %v4834_v16, %v4713_v19  ;;  %v4715_v23 = vpop.f32.mrb[89].mxu0  ;;  %v3544_v16 = vrot.slane %v3535_v38, %v10604_v9  ;;  %v3547_v19 = vadd.f32 %v3540_v15, %v10097_v11  ;;  %v8739_v38 = vld [vmem:[%s11006_s11 + $0x384] ss:$8 sps:$4 sm:$0xff]   ;;  %v8742_v15 = vld [vmem:[%s11006_s11 + $0x294] ss:$8 sps:$4 sm:$0xff]  }
 0xe14   : > { %v10478_v24 = vadd.f32 %v4836_v56, %v4715_v23  ;;  %v4717_v21 = vpop.f32.mrb[90].mxu0  ;;  %v5029_v56 = vrot.slane %v5024_v12, %v10598_v7  ;;  %v8734_v12 = vld [vmem:[%s11006_s11 + $0x280] ss:$8 sps:$4 sm:$0xff]  }
 0xe15   : > { %v4718_v22 = vpop.f32.mrb[91].mxu0 }
 0xe16   : > { %v3548_v22 = vadd.f32 %v3544_v16, %v10100_v13  ;;  %v8737_v16 = vld [vmem:[%s11006_s11 + $0x380] ss:$8 sps:$4 sm:$0xff]  }
 0xe1a   : > { %v4877_v29 = vpop.f32.mrb[92].mxu0 }
 0xe1b   : > { %v4883_v25 = vpack.c.bf16 %v4877_v29, %v4877_v29  ;;  %v8086_v26 = vpop.f32.mrb[93].mxu0 }
 0xe1c   : > { %v4880_v35 = vpop.f32.mrb[94].mxu0 }
 0xe1d   : > { %5014 = vmatmul.mubr.bf16.vlgmr.msra.gmra.mrb[96].mxu0 %v4883_v25  ;;  %v8087_v36 = vpop.f32.mrb[95].mxu0  ;;  %v3549_v35 = vmax.f32 %v3547_v19, 0.0  ;;  %v8743_v19 = vld [vmem:[%s11006_s11 + $0x390] ss:$8 sps:$4 sm:$0xff]  }
 0xe1e   : > { %5499 = vmatpush1.bf16.msra.mxu0 %v8593_v31 }
 0xe1f   : > { %5500 = vmatprep.subr.bf16.mxu0 %v8601_v34 }
 0xe22   : > { %5501 = vmatpush1.bf16.msra.mxu0 %v8599_v37  ;;  %v3550_v37 = vmax.f32 %v3548_v22, 0.0  ;;  %v8754_v22 = vld [vmem:[%s11006_s11 + $0x2b4] ss:$8 sps:$4 sm:$0xff]  }
 0xe23   : > { %5502 = vmatprep.subr.bf16.mxu0 %v8607_v39 }
 0xe26   : > { %5503 = vmatpush1.bf16.msra.mxu0 %v8605_v40 }
 0xe27   : > { %5504 = vmatprep.subr.bf16.mxu0 %v8613_v10 }
 0xe2a   : > { %5505 = vmatpush1.bf16.msra.mxu0 %v8611_v42 }
 0xe2b   : > { %5506 = vmatprep.subr.bf16.mxu0 %v8619_v14  ;;  %v8689_v14 = vld [vmem:[%s11006_s11 + $0x300] ss:$8 sps:$4 sm:$0xff]  }
 0xe2e   : > { %5507 = vmatpush1.bf16.msra.mxu0 %v8617_v33  ;;  %v8694_v33 = vld [vmem:[%s11006_s11 + $0x214] ss:$8 sps:$4 sm:$0xff]  }
 0xe2f   : > { %5508 = vmatprep.subr.bf16.mxu0 %v8625_v44 }
 0xe32   : > { %5509 = vmatpush1.bf16.msra.mxu0 %v8623_v41  ;;  %v8697_v41 = vld [vmem:[%s11006_s11 + $0x314] ss:$8 sps:$4 sm:$0xff]  }
 0xe33   : > { %5510 = vmatprep.subr.bf16.mxu0 %v8631_v47  ;;  %v8692_v47 = vld [vmem:[%s11006_s11 + $0x210] ss:$8 sps:$4 sm:$0xff]  }
 0xe36   : > { %5511 = vmatpush1.bf16.msra.mxu0 %v8629_v48 }
 0xe37   : > { %5512 = vmatprep.subr.bf16.mxu0 %v8637_v43  ;;  %v8700_v43 = vld [vmem:[%s11006_s11 + $0x224] ss:$8 sps:$4 sm:$0xff]  }
 0xe3a   : > { %5513 = vmatpush1.bf16.msra.mxu0 %v8635_v49  ;;  %v8695_v49 = vld [vmem:[%s11006_s11 + $0x310] ss:$8 sps:$4 sm:$0xff]  }
 0xe3b   : > { %5514 = vmatprep.subr.bf16.mxu0 %v8643_v50  ;;  %v8703_v50 = vld [vmem:[%s11006_s11 + $0x324] ss:$8 sps:$4 sm:$0xff]  }
 0xe3e   : > { %5515 = vmatpush1.bf16.msra.mxu0 %v8641_v30  ;;  %v8698_v30 = vld [vmem:[%s11006_s11 + $0x220] ss:$8 sps:$4 sm:$0xff]  }
 0xe3f   : > { %5516 = vmatprep.subr.bf16.mxu0 %v8649_v51  ;;  %v8706_v51 = vld [vmem:[%s11006_s11 + $0x234] ss:$8 sps:$4 sm:$0xff]  }
 0xe42   : > { %5517 = vmatpush1.bf16.msra.mxu0 %v8647_v53  ;;  %v8701_v53 = vld [vmem:[%s11006_s11 + $0x320] ss:$8 sps:$4 sm:$0xff]  }
 0xe43   : > { %5518 = vmatprep.subr.bf16.mxu0 %v8655_v54  ;;  %v8709_v54 = vld [vmem:[%s11006_s11 + $0x334] ss:$8 sps:$4 sm:$0xff]  }
 0xe46   : > { %5519 = vmatpush1.bf16.msra.mxu0 %v8653_v55  ;;  %v8704_v55 = vld [vmem:[%s11006_s11 + $0x230] ss:$8 sps:$4 sm:$0xff]  }
 0xe47   : > { %5520 = vmatprep.subr.bf16.mxu0 %v8661_v20  ;;  %v8712_v20 = vld [vmem:[%s11006_s11 + $0x244] ss:$8 sps:$4 sm:$0xff]  }
 0xe4a   : > { %5521 = vmatpush1.bf16.msra.mxu0 %v8659_v32  ;;  %v8707_v32 = vld [vmem:[%s11006_s11 + $0x330] ss:$8 sps:$4 sm:$0xff]  }
 0xe4b   : > { %5522 = vmatprep.subr.bf16.mxu0 %v8667_v57  ;;  %v8715_v57 = vld [vmem:[%s11006_s11 + $0x344] ss:$8 sps:$4 sm:$0xff]  }
 0xe4e   : > { %5523 = vmatpush1.bf16.msra.mxu0 %v8665_v52  ;;  %v8710_v52 = vld [vmem:[%s11006_s11 + $0x240] ss:$8 sps:$4 sm:$0xff]  }
 0xe4f   : > { %5524 = vmatprep.subr.bf16.mxu0 %v8673_v59  ;;  %v8721_v59 = vld [vmem:[%s11006_s11 + $0x354] ss:$8 sps:$4 sm:$0xff]  }
 0xe52   : > { %5525 = vmatpush1.bf16.msra.mxu0 %v8671_v45  ;;  %v8716_v45 = vld [vmem:[%s11006_s11 + $0x250] ss:$8 sps:$4 sm:$0xff]  }
 0xe53   : > { %5526 = vmatprep.subr.bf16.mxu0 %v8679_v62  ;;  %v8727_v62 = vld [vmem:[%s11006_s11 + $0x364] ss:$8 sps:$4 sm:$0xff]  }
 0xe56   : > { %5527 = vmatpush1.bf16.msra.mxu0 %v8677_v63  ;;  %v8722_v63 = vld [vmem:[%s11006_s11 + $0x260] ss:$8 sps:$4 sm:$0xff]  }
 0xe57   : > { %5528 = vmatprep.subr.bf16.mxu0 %v8685_v5  ;;  %v8728_v5 = vld [vmem:[%s11006_s11 + $0x270] ss:$8 sps:$4 sm:$0xff]  }
 0xe5a   : > { %5529 = vmatpush1.bf16.msra.mxu0 %v8683_v3  ;;  %v8733_v3 = vld [vmem:[%s11006_s11 + $0x374] ss:$8 sps:$4 sm:$0xff]  }
 0xe5b   : > { %6014 = vmatprep.subr.bf16.mxu0 %v8691_v6  ;;  %v8731_v6 = vld [vmem:[%s11006_s11 + $0x370] ss:$8 sps:$4 sm:$0xff]  }
 0xef0   : > { %v5015_v4 = vpop.f32.mrb[96].mxu0 }
 0xef1   : > { %v5022_v23 = vadd.f32 %v5015_v4, %v10476_v18  ;;  %v5017_v21 = vpop.f32.mrb[97].mxu0  ;;  %v8686_v18 = vld [vmem:[%s11006_s11 + $0x200] ss:$8 sps:$4 sm:$0xff]   ;;  %v8740_v4 = vld [vmem:[%s11006_s11 + $0x290] ss:$8 sps:$4 sm:$0xff]  }
 0xef2   : > { %v5023_v29 = vadd.f32 %v5017_v21, %v10478_v24  ;;  %v5019_v31 = vpop.f32.mrb[98].mxu0  ;;  %v8746_v21 = vld [vmem:[%s11006_s11 + $0x2a0] ss:$8 sps:$4 sm:$0xff]  }
 0xef3   : > { %v5036_v25 = vadd.f32 %v5029_v56, %v5022_v23  ;;  %v5020_v26 = vpop.f32.mrb[99].mxu0  ;;  %v8745_v56 = vld [vmem:[%s11006_s11 + $0x394] ss:$8 sps:$4 sm:$0xff]   ;;  %v8751_v23 = vld [vmem:[%s11006_s11 + $0x3a4] ss:$8 sps:$4 sm:$0xff]  }
 0xef4   : > { %v5037_v34 = vadd.f32 %v5033_v8, %v5023_v29  ;;  %v8748_v8 = vld [vmem:[%s11006_s11 + $0x2a4] ss:$8 sps:$4 sm:$0xff]   ;;  %v8749_v29 = vld [vmem:[%s11006_s11 + $0x3a0] ss:$8 sps:$4 sm:$0xff]   ;;  %v8757_v31 = vld [vmem:[%s11006_s11 + $0x3b4] ss:$8 sps:$4 sm:$0xff]  }
 0xef5   : > { %v5038_v36 = vmax.f32 %v5036_v25, 0.0  ;;  %v8752_v25 = vld [vmem:[%s11006_s11 + $0x2b0] ss:$8 sps:$4 sm:$0xff]   ;;  %v8760_v26 = vld [vmem:[%s11006_s11 + $0x2c4] ss:$8 sps:$4 sm:$0xff]  }
 0xef6   : > { %v5039_v39 = vmax.f32 %v5037_v34, 0.0  ;;  %v8755_v34 = vld [vmem:[%s11006_s11 + $0x3b0] ss:$8 sps:$4 sm:$0xff]  }
 0xef7   : > { %v5040_v40 = vadd.f32 %v5038_v36, %v3549_v35  ;;  %v8763_v35 = vld [vmem:[%s11006_s11 + $0x3c4] ss:$8 sps:$4 sm:$0xff]   ;;  %v8758_v36 = vld [vmem:[%s11006_s11 + $0x2c0] ss:$8 sps:$4 sm:$0xff]  }
 0xef8   : > { %v5041_v10 = vadd.f32 %v5039_v39, %v3550_v37  ;;  %v8766_v37 = vld [vmem:[%s11006_s11 + $0x2d4] ss:$8 sps:$4 sm:$0xff]   ;;  %v8761_v39 = vld [vmem:[%s11006_s11 + $0x3c0] ss:$8 sps:$4 sm:$0xff]  }
 0xef9   : > { %v10617_v42 = vpack.c.bf16 %v5040_v40, %v5040_v40  ;;  %v8769_v40 = vld [vmem:[%s11006_s11 + $0x3d4] ss:$8 sps:$4 sm:$0xff]  }
 0xefa   : > { %v5044_v11 = vpack.c.bf16 %v5041_v10, %v5041_v10  ;;  %v8764_v10 = vld [vmem:[%s11006_s11 + $0x2d0] ss:$8 sps:$4 sm:$0xff]  }
 0xefb   : > { %v5331_v44 = vshrl.u32 %v10617_v42, 16 }
 0xefc   : > { %5269 = vmatprep.mubr.bf16.mxu1 %v5044_v11  ;;  %v5334_v13 = vshrl.u32 %v5044_v11, 16  ;;  %v5594_v24 = vrot.slane %v5044_v11, 1  ;;  %v8772_v11 = vld [vmem:[%s11006_s11 + $0x2e4] ss:$8 sps:$4 sm:$0xff]  }
 0xefd   : > { %5270 = vmatmul.mubr.bf16.vlgmr.msra.gmra.mrb[96].mxu1 %v10617_v42 }
 0xefe   : > { %5758 = vmatpush1.bf16.msra.mxu1 %v8686_v18  ;;  %5530 = vmatprep.mubr.bf16.mxu0 %v5334_v13  ;;  %v5851_v48 = vrot.slane %v5334_v13, 1  ;;  %v8767_v18 = vld [vmem:[%s11006_s11 + $0x3d0] ss:$8 sps:$4 sm:$0xff]   ;;  %v8775_v13 = vld [vmem:[%s11006_s11 + $0x3e4] ss:$8 sps:$4 sm:$0xff]  }
 0xeff   : > { %5789 = vmatprep.mubr.bf16.mxu1 %v5594_v24  ;;  %5531 = vmatmul.mubr.bf16.vlgmr.msra.gmra.mrb[100].mxu0 %v5331_v44  ;;  %v8770_v24 = vld [vmem:[%s11006_s11 + $0x2e0] ss:$8 sps:$4 sm:$0xff]  }
 0xf00   : > { %6015 = vmatpush1.bf16.msra.mxu0 %v8689_v14  ;;  %5759 = vmatprep.subr.bf16.mxu1 %v8694_v33  ;;  %v8778_v14 = vld [vmem:[%s11006_s11 + $0x2f4] ss:$8 sps:$4 sm:$0xff]   ;;  %v8773_v33 = vld [vmem:[%s11006_s11 + $0x3e0] ss:$8 sps:$4 sm:$0xff]  }
 0xf01   : > { %6046 = vmatprep.mubr.bf16.mxu0 %v5851_v48  ;;  %6016 = vmatprep.subr.bf16.mxu0 %v8697_v41  ;;  %v8781_v41 = vld [vmem:[%s11006_s11 + $0x3f4] ss:$8 sps:$4 sm:$0xff]   ;;  %v8779_v48 = vld [vmem:[%s11006_s11 + $0x3f0] ss:$8 sps:$4 sm:$0xff]  }
 0xf02   : > { %5760 = vmatpush1.bf16.msra.mxu1 %v8692_v47  ;;  %v8776_v47 = vld [vmem:[%s11006_s11 + $0x2f0] ss:$8 sps:$4 sm:$0xff]  }
 0xf03   : > { %5761 = vmatprep.subr.bf16.mxu1 %v8700_v43  ;;  %v5593_v43 = vrot.slane %v10617_v42, 1  ;;  %v8785_v42 = vld [vmem:[%s11008_s13 + $0x8] sm:$0xff]  }
 0xf04   : > { %6017 = vmatpush1.bf16.msra.mxu0 %v8695_v49  ;;  %v5850_v49 = vrot.slane %v5331_v44, 1  ;;  %v8786_v44 = vld [vmem:[%s11008_s13 + $0x50] sm:$0xff]  }
 0xf05   : > { %6018 = vmatprep.subr.bf16.mxu0 %v8703_v50  ;;  %v8782_v50 = vld [vmem:[%s11008_s13 + $0x40] sm:$0xff]  }
 0xf06   : > { %5762 = vmatpush1.bf16.msra.mxu1 %v8698_v30  ;;  %v8783_v30 = vld [vmem:[%s11008_s13] sm:$0xff]  }
 0xf07   : > { %5763 = vmatprep.subr.bf16.mxu1 %v8706_v51  ;;  %v8784_v51 = vld [vmem:[%s11008_s13 + $0x48] sm:$0xff]  }
 0xf08   : > { %6019 = vmatpush1.bf16.msra.mxu0 %v8701_v53  ;;  %v8787_v53 = vld [vmem:[%s11008_s13 + $0x10] sm:$0xff]  }
 0xf09   : > { %6020 = vmatprep.subr.bf16.mxu0 %v8709_v54  ;;  %v8788_v54 = vld [vmem:[%s11008_s13 + $0x58] sm:$0xff]  }
 0xf0a   : > { %5764 = vmatpush1.bf16.msra.mxu1 %v8704_v55  ;;  %v8789_v55 = vld [vmem:[%s11008_s13 + $0x18] sm:$0xff]  }
 0xf0b   : > { %5765 = vmatprep.subr.bf16.mxu1 %v8712_v20  ;;  %v8790_v20 = vld [vmem:[%s11008_s13 + $0x60] sm:$0xff]  }
 0xf0c   : > { %6021 = vmatpush1.bf16.msra.mxu0 %v8707_v32  ;;  %v8791_v32 = vld [vmem:[%s11008_s13 + $0x20] sm:$0xff]  }
 0xf0d   : > { %6022 = vmatprep.subr.bf16.mxu0 %v8715_v57  ;;  %v8792_v57 = vld [vmem:[%s11008_s13 + $0x68] sm:$0xff]  }
 0xf0e   : > { %5766 = vmatpush1.bf16.msra.mxu1 %v8710_v52  ;;  %v8793_v52 = vld [vmem:[%s11008_s13 + $0x28] sm:$0xff]  }
 0xf0f   : > { %5767 = vmatprep.subr.bf16.mxu1 %v8718_v58  ;;  %v8794_v58 = vld [vmem:[%s11008_s13 + $0x70] sm:$0xff]  }
 0xf10   : > { %6023 = vmatpush1.bf16.msra.mxu0 %v8713_v46  ;;  %v8795_v46 = vld [vmem:[%s11008_s13 + $0x30] sm:$0xff]  }
 0xf11   : > { %6024 = vmatprep.subr.bf16.mxu0 %v8721_v59  ;;  %v8796_v59 = vld [vmem:[%s11008_s13 + $0x78] sm:$0xff]  }
 0xf12   : > { %5768 = vmatpush1.bf16.msra.mxu1 %v8716_v45  ;;  %v8797_v45 = vld [vmem:[%s11008_s13 + $0x38] sm:$0xff]  }
 0xf13   : > { %5769 = vmatprep.subr.bf16.mxu1 %v8724_v60  ;;  %v8798_v60 = vld [vmem:[%s11010_s15] ss:$16 sps:$4 sm:$0xff]  }
 0xf14   : > { %6025 = vmatpush1.bf16.msra.mxu0 %v8719_v61  ;;  %v8800_v61 = vld [vmem:[%s11010_s15 + $0x4] ss:$16 sps:$4 sm:$0xff]  }
 0xf15   : > { %6026 = vmatprep.subr.bf16.mxu0 %v8727_v62  ;;  %v8803_v62 = vld [vmem:[%s11010_s15 + $0xc] ss:$16 sps:$4 sm:$0xff]  }
 0xf16   : > { %5770 = vmatpush1.bf16.msra.mxu1 %v8722_v63  ;;  %v8806_v63 = vld [vmem:[%s11010_s15 + $0x24] ss:$16 sps:$4 sm:$0xff]  }
 0xf17   : > { %5771 = vmatprep.subr.bf16.mxu1 %v8730_v0  ;;  %v8804_v0 = vld [vmem:[%s11010_s15 + $0x20] ss:$16 sps:$4 sm:$0xff]  }
 0xf18   : > { %6027 = vmatpush1.bf16.msra.mxu0 %v8725_v1  ;;  %v8812_v1 = vld [vmem:[%s11010_s15 + $0x44] ss:$16 sps:$4 sm:$0xff]  }
 0xf19   : > { %6028 = vmatprep.subr.bf16.mxu0 %v8733_v3  ;;  %v8810_v3 = vld [vmem:[%s11010_s15 + $0x40] ss:$16 sps:$4 sm:$0xff]  }
 0xf1a   : > { %5772 = vmatpush1.bf16.msra.mxu1 %v8728_v5  ;;  %v8818_v5 = vld [vmem:[%s11010_s15 + $0x64] ss:$16 sps:$4 sm:$0xff]  }
 0xf1b   : > { %5773 = vmatprep.subr.bf16.mxu1 %v8736_v17  ;;  %v8816_v17 = vld [vmem:[%s11010_s15 + $0x60] ss:$16 sps:$4 sm:$0xff]  }
 0xf1c   : > { %6029 = vmatpush1.bf16.msra.mxu0 %v8731_v6  ;;  %v8824_v6 = vld [vmem:[%s11010_s15 + $0x84] ss:$16 sps:$4 sm:$0xff]  }
 0xf1d   : > { %6030 = vmatprep.subr.bf16.mxu0 %v8739_v38  ;;  %v8822_v38 = vld [vmem:[%s11010_s15 + $0x80] ss:$16 sps:$4 sm:$0xff]  }
 0xf1e   : > { %5774 = vmatpush1.bf16.msra.mxu1 %v8734_v12  ;;  %v8830_v12 = vld [vmem:[%s11010_s15 + $0xa4] ss:$16 sps:$4 sm:$0xff]  }
 0xf1f   : > { %5775 = vmatprep.subr.bf16.mxu1 %v8742_v15  ;;  %v8828_v15 = vld [vmem:[%s11010_s15 + $0xa0] ss:$16 sps:$4 sm:$0xff]  }
 0xf20   : > { %6031 = vmatpush1.bf16.msra.mxu0 %v8737_v16  ;;  %v8857_v16 = vmov 1966171168  }
 0xf21   : > { %6032 = vmatprep.subr.bf16.mxu0 %v8745_v56  ;;  %v5282_v56 = vunpack.c.l.s4 %v8857_v16 }
 0xf22   : > { %5776 = vmatpush1.bf16.msra.mxu1 %v8740_v4 }
 0xf23   : > { %5777 = vmatprep.subr.bf16.mxu1 %v8748_v8  ;;  %v5283_v4 = vunpack.c.0.s8 %v5282_v56  ;;  %v6119_v56 = vld [vmem:[%s11009_s14] sm:$0x1] }
 0xf24   : > { %6033 = vmatpush1.bf16.msra.mxu0 %v8743_v19 }
 0xf25   : > { %6034 = vmatprep.subr.bf16.mxu0 %v8751_v23  ;;  %v10901_v19 = vsub.s32 %v5283_v4, %v9039_v28 }
 0xf26   : > { %5778 = vmatpush1.bf16.msra.mxu1 %v8746_v21 }
 0xf27   : > { %5779 = vmatprep.subr.bf16.mxu1 %v8754_v22 }
 0xf28   : > { %6035 = vmatpush1.bf16.msra.mxu0 %v8749_v29 }
 0xf29   : > { %6036 = vmatprep.subr.bf16.mxu0 %v8757_v31 }
 0xf2a   : > { %5780 = vmatpush1.bf16.msra.mxu1 %v8752_v25 }
 0xf2b   : > { %5781 = vmatprep.subr.bf16.mxu1 %v8760_v26 }
 0xf2c   : > { %6037 = vmatpush1.bf16.msra.mxu0 %v8755_v34 }
 0xf2d   : > { %6038 = vmatprep.subr.bf16.mxu0 %v8763_v35 }
 0xf2e   : > { %5782 = vmatpush1.bf16.msra.mxu1 %v8758_v36  ;;  %v5042_v36 = vld [vmem:[%s11007_s12] sm:$0x3] }
 0xf2f   : > { %5783 = vmatprep.subr.bf16.mxu1 %v8766_v37 }
 0xf30   : > { %6039 = vmatpush1.bf16.msra.mxu0 %v8761_v39 }
 0xf31   : > { %6040 = vmatprep.subr.bf16.mxu0 %v8769_v40 }
 0xf32   : > { %5784 = vmatpush1.bf16.msra.mxu1 %v8764_v10 }
 0xf33   : > { %5785 = vmatprep.subr.bf16.mxu1 %v8772_v11 }
 0xf34   : > { %6041 = vmatpush1.bf16.msra.mxu0 %v8767_v18 }
 0xf35   : > { %6042 = vmatprep.subr.bf16.mxu0 %v8775_v13 }
 0xf36   : > { %5786 = vmatpush1.bf16.msra.mxu1 %v8770_v24 }
 0xf37   : > { %5787 = vmatprep.subr.bf16.mxu1 %v8778_v14 }
 0xf38   : > { %6043 = vmatpush1.bf16.msra.mxu0 %v8773_v33 }
 0xf39   : > { %6044 = vmatprep.subr.bf16.mxu0 %v8781_v41 }
 0xf3a   : > { %5788 = vmatpush1.bf16.msra.mxu1 %v8776_v47 }
 0xf3b   : > { %7746 = vmatprep.subr.bf16.mxu1 %v8782_v50 }
 0xf3c   : > { %6045 = vmatpush1.bf16.msra.mxu0 %v8779_v48 }
 0xf3d   : > { %5790 = vmatmul.mubr.bf16.vlgmr.msra.gmra.mrb[100].mxu1 %v5593_v43  ;;  %6471 = vmatprep.subr.bf16.mxu0 %v8800_v61  ;;  %v8827_v61 = vld [vmem:[%s11010_s15 + $0x8c] ss:$16 sps:$4 sm:$0xff]  }
 0xf3e   : > { %7747 = vmatpush3.bf16.msra.mxu1 %v8783_v30 }
 0xf3f   : > { %6047 = vmatmul.mubr.bf16.vlgmr.msra.gmra.mrb[104].mxu0 %v5850_v49  ;;  %7748 = vmatprep.subr.bf16.mxu1 %v8784_v51 }
 0xf40   : > { %6503 = vmatprep.mubr.bf16.mxu0 %v8856_v2  ;;  %6472 = vmatpush1.bf16.msra.mxu0 %v8798_v60  ;;  %v8821_v60 = vld [vmem:[%s11010_s15 + $0x6c] ss:$16 sps:$4 sm:$0xff]  }
 0xf41   : > { %6473 = vmatprep.subr.bf16.mxu0 %v8806_v63  ;;  %v8833_v63 = vld [vmem:[%s11010_s15 + $0xac] ss:$16 sps:$4 sm:$0xff]  }
 0xf42   : > { %7749 = vmatpush3.bf16.msra.mxu1 %v8785_v42 }
 0xf43   : > { %7750 = vmatprep.subr.bf16.mxu1 %v8786_v44 }
 0xf44   : > { %6474 = vmatpush1.bf16.msra.mxu0 %v8804_v0  ;;  %v8831_v0 = vld [vmem:[%s11010_s15 + $0xa8] ss:$16 sps:$4 sm:$0xff]  }
 0xf45   : > { %6475 = vmatprep.subr.bf16.mxu0 %v8812_v1  ;;  %v8836_v1 = vld [vmem:[%s11010_s15 + $0xc4] ss:$16 sps:$4 sm:$0xff]  }
 0xf46   : > { %7751 = vmatpush3.bf16.msra.mxu1 %v8787_v53 }
 0xf47   : > { %7752 = vmatprep.subr.bf16.mxu1 %v8788_v54 }
 0xf48   : > { %6476 = vmatpush1.bf16.msra.mxu0 %v8810_v3  ;;  %v8839_v3 = vld [vmem:[%s11010_s15 + $0xcc] ss:$16 sps:$4 sm:$0xff]  }
 0xf49   : > { %6477 = vmatprep.subr.bf16.mxu0 %v8818_v5  ;;  %v8834_v5 = vld [vmem:[%s11010_s15 + $0xc0] ss:$16 sps:$4 sm:$0xff]  }
 0xf4a   : > { %7753 = vmatpush3.bf16.msra.mxu1 %v8789_v55 }
 0xf4b   : > { %7754 = vmatprep.subr.bf16.mxu1 %v8790_v20 }
 0xf4c   : > { %6478 = vmatpush1.bf16.msra.mxu0 %v8816_v17  ;;  %v8837_v17 = vld [vmem:[%s11010_s15 + $0xc8] ss:$16 sps:$4 sm:$0xff]  }
 0xf4d   : > { %6479 = vmatprep.subr.bf16.mxu0 %v8824_v6  ;;  %v8842_v6 = vld [vmem:[%s11010_s15 + $0xe4] ss:$16 sps:$4 sm:$0xff]  }
 0xf4e   : > { %7755 = vmatpush3.bf16.msra.mxu1 %v8791_v32 }
 0xf4f   : > { %7756 = vmatprep.subr.bf16.mxu1 %v8792_v57 }
 0xf50   : > { %6480 = vmatpush1.bf16.msra.mxu0 %v8822_v38  ;;  %v8845_v38 = vld [vmem:[%s11010_s15 + $0xec] ss:$16 sps:$4 sm:$0xff]  }
 0xf51   : > { %6481 = vmatprep.subr.bf16.mxu0 %v8830_v12  ;;  %v8840_v12 = vld [vmem:[%s11010_s15 + $0xe0] ss:$16 sps:$4 sm:$0xff]  }
 0xf52   : > { %7757 = vmatpush3.bf16.msra.mxu1 %v8793_v52  ;;  %v8801_v52 = vld [vmem:[%s11010_s15 + $0x8] ss:$16 sps:$4 sm:$0xff]  }
 0xf53   : > { %7758 = vmatprep.subr.bf16.mxu1 %v8794_v58  ;;  %v8809_v58 = vld [vmem:[%s11010_s15 + $0x2c] ss:$16 sps:$4 sm:$0xff]  }
 0xf54   : > { %6482 = vmatpush1.bf16.msra.mxu0 %v8828_v15  ;;  %v8843_v15 = vld [vmem:[%s11010_s15 + $0xe8] ss:$16 sps:$4 sm:$0xff]  }
 0xf55   : > { %6483 = vmatprep.subr.bf16.mxu0 %v8836_v1 }
 0xf56   : > { %7759 = vmatpush3.bf16.msra.mxu1 %v8795_v46  ;;  %v8807_v46 = vld [vmem:[%s11010_s15 + $0x28] ss:$16 sps:$4 sm:$0xff]  }
 0xf57   : > { %7760 = vmatprep.subr.bf16.mxu1 %v8796_v59  ;;  %v8815_v59 = vld [vmem:[%s11010_s15 + $0x4c] ss:$16 sps:$4 sm:$0xff]  }
 0xf58   : > { %6484 = vmatpush1.bf16.msra.mxu0 %v8834_v5 }
 0xf59   : > { %6485 = vmatprep.subr.bf16.mxu0 %v8842_v6 }
 0xf5a   : > { %7761 = vmatpush3.bf16.msra.mxu1 %v8797_v45  ;;  %v8813_v45 = vld [vmem:[%s11010_s15 + $0x48] ss:$16 sps:$4 sm:$0xff]  }
 0xf5b   : > { %6512 = vmatprep.subr.bf16.mxu1 %v8803_v62  ;;  %v8825_v62 = vld [vmem:[%s11010_s15 + $0x88] ss:$16 sps:$4 sm:$0xff]  }
 0xf5c   : > { %6486 = vmatpush1.bf16.msra.mxu0 %v8840_v12 }
 0xfd0   : > { %v5271_v8 = vpop.f32.mrb[96].mxu1 }
 0xfd1   : > { %v5273_v23 = vpop.f32.mrb[97].mxu1 }
 0xfd2   : > { %v5280_v21 = vcombine.low %v5271_v8, %v5273_v23  ;;  %v5275_v22 = vpop.f32.mrb[98].mxu1  ;;  %v5532_v29 = vpop.f32.mrb[100].mxu0 }
 0xfd3   : > { %v5276_v31 = vpop.f32.mrb[99].mxu1  ;;  %v5534_v25 = vpop.f32.mrb[101].mxu0 }
 0xfd4   : > { %v5287_v26 = vrot.slane %v5280_v21, %v10901_v19  ;;  %v5541_v34 = vcombine.low %v5532_v29, %v5534_v25  ;;  %v5536_v35 = vpop.f32.mrb[102].mxu0  ;;  %v6461_v31 = vsub.s32 2, %v9039_v28  ;;  %v6289_v25 = vld [vmem:[%s11011_s16] sm:$0xf] }
 0xfd5   : > { %v5537_v37 = vpop.f32.mrb[103].mxu0 }
 0xfd6   : > { %v5294_v39 = vrot.slane %v5287_v26, %v10901_v19  ;;  %v5548_v40 = vrot.slane %v5541_v34, %v10901_v19  ;;  %v6465_v26 = vsub.s32 3, %v9039_v28  ;;  %v6454_v34 = vrot.slane %v6289_v25, %v10598_v7 }
 0xfd7   : > { %v6462_v35 = vrot.slane %v6289_v25, %v6461_v31 }
 0xfd8   : > { %v5296_v10 = vadd.f32 %v5294_v39, %v5042_v36  ;;  %v5555_v11 = vrot.slane %v5548_v40, %v10901_v19  ;;  %v6458_v36 = vrot.slane %v6289_v25, %v10604_v9  ;;  %v6466_v37 = vrot.slane %v6289_v25, %v6465_v26 }
 0xfda   : > { %v5557_v18 = vadd.f32 %v5555_v11, %v5296_v10 }
0x1010   : > { %v5791_v13 = vpop.f32.mrb[100].mxu1 }
0x1011   : > { %v5793_v24 = vpop.f32.mrb[101].mxu1 }
0x1012   : > { %v5800_v14 = vcombine.low %v5791_v13, %v5793_v24  ;;  %v5795_v33 = vpop.f32.mrb[102].mxu1  ;;  %v6048_v41 = vpop.f32.mrb[104].mxu0 }
0x1013   : > { %v5796_v47 = vpop.f32.mrb[103].mxu1  ;;  %v6050_v48 = vpop.f32.mrb[105].mxu0 }
0x1014   : > { %v5807_v43 = vrot.slane %v5800_v14, %v10901_v19  ;;  %v6057_v49 = vcombine.low %v6048_v41, %v6050_v48  ;;  %v6052_v50 = vpop.f32.mrb[106].mxu0 }
0x1015   : > { %v6053_v30 = vpop.f32.mrb[107].mxu0 }
0x1016   : > { %v5814_v51 = vrot.slane %v5807_v43, %v10901_v19  ;;  %v6064_v42 = vrot.slane %v6057_v49, %v10901_v19 }
0x1018   : > { %v5816_v44 = vadd.f32 %v5814_v51, %v5557_v18  ;;  %v6071_v53 = vrot.slane %v6064_v42, %v10901_v19 }
0x101a   : > { %v6073_v54 = vadd.f32 %v6071_v53, %v5816_v44 }
0x101c   : > { %v6082_v55 = vrot.slane %v6073_v54, %v10604_v9  ;;  %v6078_v20 = vrot.slane %v6073_v54, %v10598_v7 }
0x101e   : > { %v6086_v32 = vpack.c.bf16 %v6082_v55, %v6082_v55  ;;  %v6085_v57 = vpack.c.bf16 %v6078_v20, %v6078_v20 }
0x1020   : > { %6248 = vmatprep.mubr.bf16.mxu1 %v6086_v32 }
0x1021   : > { %6249 = vmatmul.mubr.bf16.vlgmr.msra.gmra.mrb[104].mxu1 %v6085_v57 }
0x1022   : > { %6513 = vmatpush1.bf16.msra.mxu1 %v8801_v52  ;;  %6544 = vmatprep.mubr.bf16.mxu1 %v8856_v2  ;;  %v8819_v2 = vld [vmem:[%s11010_s15 + $0x68] ss:$16 sps:$4 sm:$0xff]  }
0x1023   : > { %6514 = vmatprep.subr.bf16.mxu1 %v8809_v58 }
0x1026   : > { %6515 = vmatpush1.bf16.msra.mxu1 %v8807_v46 }
0x1027   : > { %6516 = vmatprep.subr.bf16.mxu1 %v8815_v59 }
0x102a   : > { %6517 = vmatpush1.bf16.msra.mxu1 %v8813_v45 }
0x102b   : > { %6518 = vmatprep.subr.bf16.mxu1 %v8821_v60 }
0x102e   : > { %6519 = vmatpush1.bf16.msra.mxu1 %v8819_v2 }
0x102f   : > { %6520 = vmatprep.subr.bf16.mxu1 %v8827_v61 }
0x1032   : > { %6521 = vmatpush1.bf16.msra.mxu1 %v8825_v62 }
0x1033   : > { %6522 = vmatprep.subr.bf16.mxu1 %v8833_v63 }
0x1036   : > { %6523 = vmatpush1.bf16.msra.mxu1 %v8831_v0 }
0x1037   : > { %6524 = vmatprep.subr.bf16.mxu1 %v8839_v3 }
0x103a   : > { %6525 = vmatpush1.bf16.msra.mxu1 %v8837_v17 }
0x103b   : > { %6526 = vmatprep.subr.bf16.mxu1 %v8845_v38 }
0x103e   : > { %6527 = vmatpush1.bf16.msra.mxu1 %v8843_v15 }
0x10f4   : > { %v7762_v16 = vpop.f32.mrb[104].mxu1 }
0x10f5   : > { %v7763_v4 = vpop.f32.mrb[105].mxu1 }
0x10f6   : > { %v7764_v8 = vadd.f32 %v7763_v4, %v7762_v16  ;;  %v7765_v23 = vpop.f32.mrb[106].mxu1 }
0x10f7   : > { %v7766_v21 = vpop.f32.mrb[107].mxu1 }
0x10f8   : > { %v6251_v22 = vadd.f32 %v7764_v8, %v6119_v56 }
0x10fa   : > { %v6256_v29 = vpack.c.bf16 %v6251_v22, %v6251_v22 }
0x10fc   : > { %6504 = vmatmul.mubr.bf16.vlgmr.msra.gmra.mrb[108].mxu0 %v6256_v29  ;;  %6545 = vmatmul.mubr.bf16.vlgmr.msra.gmra.mrb[108].mxu1 %v6256_v29 }
0x11cf   : > { %v6505_v39 = vpop.f32.mrb[108].mxu0  ;;  %v6546_v40 = vpop.f32.mrb[108].mxu1 }
0x11d0   : > { %v6506_v10 = vadd.f32 %v6505_v39, %v6454_v34  ;;  %v6547_v11 = vadd.f32 %v6546_v40, %v6462_v35  ;;  %v6507_v18 = vpop.f32.mrb[109].mxu0  ;;  %v6548_v13 = vpop.f32.mrb[109].mxu1 }
0x11d1   : > { %v6508_v24 = vadd.f32 %v6507_v18, %v6458_v36  ;;  %v6549_v14 = vadd.f32 %v6548_v13, %v6466_v37  ;;  %v6509_v33 = vpop.f32.mrb[110].mxu0  ;;  %v6550_v41 = vpop.f32.mrb[110].mxu1 }
0x11d2   : > { %v6510_v47 = vpop.f32.mrb[111].mxu0  ;;  %v6551_v48 = vpop.f32.mrb[111].mxu1 }
0x11d3   : > { %v6557_v28 = vcombine.low %v6506_v10, %v6508_v24  ;;  %v6558_v43 = vcombine.low %v6547_v11, %v6549_v14 }
0x11d5   : > { %v6565_v7 = vrot.slane %v6557_v28, %v10901_v19  ;;  %v6572_v9 = vrot.slane %v6558_v43, %v10901_v19 }
0x11d7   : > { %v6573_v49 = vcombine.low %v6565_v7, %v6572_v9 }
0x11d9   : > { %v6580_v50 = vrot.slane %v6573_v49, %v10901_v19 }
0x11db   : > { %6586 = vst.msk [vmem:[%s546_s20] sm:$0xf] %vm6584_vm0, %v6580_v50 }
0x11dc PF: > { %s27_s24 = sadd.s32 1, %s8852_s24  }
0x11dd   : > { %p24_p4 = scmp.ge.s32.totalorder %s27_s24, 6  }
0x11df   :  { %26 = sbr.rel (!%p24_p4) target bundleno = 3 (0x3), region = 141 }

</bundles_post_ra>
